<compile_context>
chip_gen: v6e
topology: v6e:2x2x1
jax: 0.10.0
libtpu: 0.0.40
codegen_flags: <defaults>
</compile_context>

<pallas_src>
import functools

import jax
import jax.numpy as jnp
from jax.experimental import pallas as pl
from jax.experimental.pallas import tpu as pltpu


# ---------------------------------------------------------------------------
# Pallas kernels
# ---------------------------------------------------------------------------
def _conv_tower_kernel(*refs, num_conv, nb, h, w, ho, wo, c0p, k1):
    """Fused conv tower: conv1 (3x3,s1,p1,ReLU) ... convN (3x3,s2,p1,ReLU).

    refs = (x_ref, [s1_ref], s2_ref, w0, b0, ..., w_{nc-1}, b_{nc-1}, o_ref)
      x_ref : (nb, h+2, w+2, c0p)  bf16   spatially padded NHWC input tile
      s1_ref: (9, h*w,  h*w)       bf16   stride-1 gather (only if num_conv>2)
      s2_ref: (9, ho*wo, h*w)      bf16   stride-2 gather (handles pad + stride)
      wK    : (9, cin_K, k1)       bf16,  bK: (1, k1) f32
      o_ref : (nb*ho*wo, k1)       bf16
    """
    pos = 0
    x_ref = refs[pos]; pos += 1
    s1_ref = None
    if num_conv > 2:
        s1_ref = refs[pos]; pos += 1
    s2_ref = refs[pos]; pos += 1
    conv_refs = refs[pos:pos + 2 * num_conv]; pos += 2 * num_conv
    o_ref = refs[pos]

    hw, howo = h * w, ho * wo

    for r in range(nb):                                   # unrolled, nb is small
        xr = x_ref[r]                                     # (h+2, w+2, c0p) bf16

        # ---- conv 0: stride 1, pad 1 -> 9 shifted-slice dots, f32 accum ----
        w0, b0 = conv_refs[0], conv_refs[1]
        acc = jnp.zeros((hw, k1), jnp.float32)
        for dh in range(3):
            for dw in range(3):
                idx = dh * 3 + dw
                lhs = xr[dh:dh + h, dw:dw + w, :].reshape(hw, c0p)   # (hw, c0p)
                acc = acc + jnp.dot(lhs, w0[idx],
                                    preferred_element_type=jnp.float32)
        act = jnp.maximum(acc + b0[...], 0.0).astype(jnp.bfloat16)   # (hw, k1)

        # ---- remaining convs: constant 0/1 gather matmul per (dh,dw) shift --
        # (last conv has stride 2; the gather matrix also supplies the zero pad)
        for kc in range(1, num_conv):
            wk, bk = conv_refs[2 * kc], conv_refs[2 * kc + 1]
            last = kc == num_conv - 1
            g_ref = s2_ref if last else s1_ref
            rows = howo if last else hw
            acc = jnp.zeros((rows, k1), jnp.float32)
            for idx in range(9):
                gathered = jnp.dot(g_ref[idx], act,
                                   preferred_element_type=jnp.float32)
                acc = acc + jnp.dot(gathered.astype(jnp.bfloat16), wk[idx],
                                    preferred_element_type=jnp.float32)
            act = jnp.maximum(acc + bk[...], 0.0).astype(jnp.bfloat16)

        o_ref[r * howo:(r + 1) * howo, :] = act


def _fc_head_kernel(x_ref, w1_ref, b1_ref, w2_ref, b2_ref, w3_ref, b3_ref,
                    o_ref):
    """relu(fc1) -> relu(fc2) -> sor, all chained in VMEM (bf16 MXU, f32 acc)."""
    a = jnp.dot(x_ref[...], w1_ref[...], preferred_element_type=jnp.float32)
    a = jnp.maximum(a + b1_ref[...], 0.0).astype(jnp.bfloat16)
    a = jnp.dot(a, w2_ref[...], preferred_element_type=jnp.float32)
    a = jnp.maximum(a + b2_ref[...], 0.0).astype(jnp.bfloat16)
    out = jnp.dot(a, w3_ref[...], preferred_element_type=jnp.float32) + b3_ref[...]
    o_ref[...] = out.astype(o_ref.dtype)


# ---------------------------------------------------------------------------
# Wrapper-side helpers (cheap one-time layout / constant construction)
# ---------------------------------------------------------------------------
def _gather_matrix(h_in, w_in, h_out, w_out, stride):
    """(9, h_out*w_out, h_in*w_in) 0/1 matrices.  G[dh*3+dw] @ act picks, for
    each output position, the (dh,dw)-shifted input row of a 3x3 / pad=1 conv
    with the given stride; out-of-bounds (padding) rows are all-zero."""
    yo = jnp.arange(h_out)[:, None]
    xo = jnp.arange(w_out)[None, :]
    src_ids = jnp.arange(h_in * w_in)[None, :]
    mats = []
    for dh in range(3):
        for dw in range(3):
            y = stride * yo + dh - 1                     # (h_out, 1)
            x = stride * xo + dw - 1                     # (1, w_out)
            valid = (y >= 0) & (y < h_in) & (x >= 0) & (x < w_in)
            src = y * w_in + x                           # (h_out, w_out)
            sel = (src.reshape(-1, 1) == src_ids) & valid.reshape(-1, 1)
            mats.append(sel.astype(jnp.bfloat16))
    return jnp.stack(mats, axis=0)


def _maxpool2x2(mask_nchw):
    """MaxPool2d(2,2) on the single-channel mask, lane-dense (W stays last)."""
    m = mask_nchw[:, 0]                                  # (N, 2H, 2W)
    return jnp.maximum(
        jnp.maximum(m[:, 0::2, 0::2], m[:, 0::2, 1::2]),
        jnp.maximum(m[:, 1::2, 0::2], m[:, 1::2, 1::2]))  # (N, H, W)


# ---------------------------------------------------------------------------
# SinglePredictor: parameter init + forward
# ---------------------------------------------------------------------------
def init_params(key, *, in_channels, width, conv_dims, num_conv,
                dense_dim, obj_dim, num_ranks):
    """Deterministic synthetic init (kaiming-style normals, zero biases)."""
    input_channels = in_channels + 1
    resolution = width // 2
    keys = jax.random.split(key, num_conv + 3)
    params = {"convs": []}
    cin = input_channels
    for k in range(num_conv):
        fan_out = conv_dims * 3 * 3
        std = (2.0 / fan_out) ** 0.5
        # conv weight stored HWIO (3, 3, Cin, Cout); equivalent to torch OIHW.
        w = jax.random.normal(keys[k], (3, 3, cin, conv_dims), jnp.float32) * std
        b = jnp.zeros((conv_dims,), jnp.float32)
        params["convs"].append((w, b))
        cin = conv_dims
    fc1_in = conv_dims * resolution * resolution
    params["fc1_w"] = jax.random.normal(keys[num_conv], (fc1_in, dense_dim),
                                        jnp.float32) * (2.0 / dense_dim) ** 0.5
    params["fc1_b"] = jnp.zeros((dense_dim,), jnp.float32)
    params["fc2_w"] = jax.random.normal(keys[num_conv + 1], (dense_dim, obj_dim),
                                        jnp.float32) * (2.0 / obj_dim) ** 0.5
    params["fc2_b"] = jnp.zeros((obj_dim,), jnp.float32)
    params["sor_w"] = jax.random.normal(keys[num_conv + 2], (obj_dim, num_ranks),
                                        jnp.float32) * 0.01
    params["sor_b"] = jnp.zeros((num_ranks,), jnp.float32)
    return params


@functools.partial(jax.jit, static_argnames=("block_rois",))
def single_predictor_forward(x, mask, params, *, block_rois=1):
    """Reproduces SinglePredictor.forward(x, mask) -> (N, num_ranks)."""
    n, c, h, w = x.shape
    convs = params["convs"]
    num_conv = len(convs)
    # TODO(synk): NUM_CONV == 1 (a single stride-2 conv straight off the input)
    # is not wired up; the fused conv tower assumes at least one stride-1 conv.
    assert num_conv >= 2, "fused conv tower supports NUM_CONV >= 2"
    assert n % block_rois == 0

    k1 = convs[0][0].shape[-1]                           # CONV_DIM
    ho, wo = h // 2, w // 2
    hw, howo = h * w, ho * wo

    cin = c + 1
    c0p = ((cin + 7) // 8) * 8                           # pad reduction dim to x8

    # ---- mask pool + channel concat + NHWC + channel/spatial zero pad ------
    pooled = _maxpool2x2(mask)                                       # (N, H, W)
    feat = jnp.concatenate([jnp.transpose(x, (0, 2, 3, 1)),
                            pooled[..., None]], axis=-1)             # (N,H,W,cin)
    feat = jnp.pad(feat, ((0, 0), (1, 1), (1, 1), (0, c0p - cin)))
    feat = feat.astype(jnp.bfloat16)                                 # (N,H+2,W+2,c0p)

    # ---- constant gather matrices for the gather-matmul convs --------------
    s2 = _gather_matrix(h, w, ho, wo, stride=2)          # (9, howo, hw) bf16
    s1 = _gather_matrix(h, w, h, w, stride=1) if num_conv > 2 else None

    # ---- conv weights: HWIO -> (9, Cin_pad, Cout), bf16 ---------------------
    conv_args = []
    for kc, (wk, bk) in enumerate(convs):
        _, _, ci, co = wk.shape
        if kc == 0 and ci < c0p:
            wk = jnp.pad(wk, ((0, 0), (0, 0), (0, c0p - ci), (0, 0)))
        conv_args.append(wk.reshape(9, -1, co).astype(jnp.bfloat16))
        conv_args.append(bk.reshape(1, co).astype(jnp.float32))

    # ---- kernel 1: fused conv tower, grid over ROIs (parallel on v7x) ------
    in_arrays = [feat] + ([s1] if s1 is not None else []) + [s2] + conv_args
    in_specs = [pl.BlockSpec((block_rois, h + 2, w + 2, c0p),
                             lambda i: (i, 0, 0, 0))]
    if s1 is not None:
        in_specs.append(pl.BlockSpec((9, hw, hw), lambda i: (0, 0, 0)))
    in_specs.append(pl.BlockSpec((9, howo, hw), lambda i: (0, 0, 0)))
    for kc in range(num_conv):
        ci_k = conv_args[2 * kc].shape[1]
        co_k = conv_args[2 * kc].shape[2]
        in_specs.append(pl.BlockSpec((9, ci_k, co_k), lambda i: (0, 0, 0)))
        in_specs.append(pl.BlockSpec((1, co_k), lambda i: (0, 0)))

    conv_out = pl.pallas_call(
        functools.partial(_conv_tower_kernel, num_conv=num_conv, nb=block_rois,
                          h=h, w=w, ho=ho, wo=wo, c0p=c0p, k1=k1),
        out_shape=jax.ShapeDtypeStruct((n * howo, k1), jnp.bfloat16),
        grid=(n // block_rois,),
        in_specs=in_specs,
        out_specs=pl.BlockSpec((block_rois * howo, k1), lambda i: (i, 0)),
        compiler_params=pltpu.CompilerParams(
            dimension_semantics=("parallel",)),
    )(*in_arrays)                                        # (N*howo, k1) bf16

    # ---- kernel 2: fused fc1 + fc2 + sor ------------------------------------
    d1 = params["fc1_w"].shape[1]
    d2 = params["fc2_w"].shape[1]
    nr = params["sor_w"].shape[1]
    fcin = howo * k1

    # torch.flatten(x, 1) is channel-major (c, yo, xo); conv_out rows are
    # (roi, yo, xo) with channels on lanes -> fold the permutation into fc1's
    # weight rows (free, wrapper-side) instead of transposing the activation.
    fc1_w = params["fc1_w"].reshape(k1, ho, wo, d1).transpose(1, 2, 0, 3)
    fc1_w = fc1_w.reshape(fcin, d1)

    flat = conv_out.reshape(n, fcin)                     # free, row-major

    bm = min(n, 256)
    out = pl.pallas_call(
        _fc_head_kernel,
        out_shape=jax.ShapeDtypeStruct((n, nr), jnp.float32),
        grid=(pl.cdiv(n, bm),),
        in_specs=[
            pl.BlockSpec((bm, fcin), lambda i: (i, 0)),
            pl.BlockSpec((fcin, d1), lambda i: (0, 0)),
            pl.BlockSpec((1, d1), lambda i: (0, 0)),
            pl.BlockSpec((d1, d2), lambda i: (0, 0)),
            pl.BlockSpec((1, d2), lambda i: (0, 0)),
            pl.BlockSpec((d2, nr), lambda i: (0, 0)),
            pl.BlockSpec((1, nr), lambda i: (0, 0)),
        ],
        out_specs=pl.BlockSpec((bm, nr), lambda i: (i, 0)),
        compiler_params=pltpu.CompilerParams(
            dimension_semantics=("parallel",)),
    )(flat,
      fc1_w.astype(jnp.bfloat16),
      params["fc1_b"].reshape(1, d1).astype(jnp.float32),
      params["fc2_w"].astype(jnp.bfloat16),
      params["fc2_b"].reshape(1, d2).astype(jnp.float32),
      params["sor_w"].astype(jnp.bfloat16),
      params["sor_b"].reshape(1, nr).astype(jnp.float32))
    return out


# ---------------------------------------------------------------------------
if __name__ == "__main__":
    # Synthetic small config (consistent with the module's __init__):
    #   input_shape.channels=4, input_shape.width=16 -> resolution=8
    #   NUM_CONV=2, CONV_DIM=32, DENSE_DIM=32, OBJ_DIM=32, NUM_RANKS=8
    N, C, H, W = 2, 4, 16, 16
    CONV_DIM, NUM_CONV = 32, 2
    DENSE_DIM, OBJ_DIM, NUM_RANKS = 32, 32, 8

    key = jax.random.PRNGKey(0)
    kx, km, kp = jax.random.split(key, 3)
    x = jax.random.normal(kx, (N, C, H, W), jnp.float32)
    mask = jax.random.normal(km, (N, 1, 2 * H, 2 * W), jnp.float32)

    params = init_params(kp, in_channels=C, width=W, conv_dims=CONV_DIM,
                         num_conv=NUM_CONV, dense_dim=DENSE_DIM,
                         obj_dim=OBJ_DIM, num_ranks=NUM_RANKS)

    out = single_predictor_forward(x, mask, params)
    out = jax.block_until_ready(out)
    assert out.shape == (N, NUM_RANKS), out.shape
    print("KERNEL_OK")
</pallas_src>

<mosaic_0001>
module attributes {stable_mosaic.version = 11 : i64} {
  func.func @_conv_tower_kernel(%arg0: i32, %arg1: memref<1x18x18x8xbf16, #tpu.memory_space<vmem>>, %arg2: memref<9x64x256xbf16, #tpu.memory_space<vmem>>, %arg3: memref<9x8x32xbf16, #tpu.memory_space<vmem>>, %arg4: memref<1x32xf32, #tpu.memory_space<vmem>>, %arg5: memref<9x32x32xbf16, #tpu.memory_space<vmem>>, %arg6: memref<1x32xf32, #tpu.memory_space<vmem>>, %arg7: memref<64x32xbf16, #tpu.memory_space<vmem>>) attributes {dimension_semantics = [#tpu.dimension_semantics<parallel>], iteration_bounds = array<i64: 2>, scalar_prefetch = 0 : i64, scratch_operands = 0 : i64, tpu.core_type = #tpu.core_type<tc>, window_params = [{transform_indices = @transform_0, window_bounds = array<i64: 1, 18, 18, 8>}, {pipeline_mode = #tpu.pipeline_mode<synchronous>, transform_indices = @transform_1, window_bounds = array<i64: 9, 64, 256>}, {pipeline_mode = #tpu.pipeline_mode<synchronous>, transform_indices = @transform_2, window_bounds = array<i64: 9, 8, 32>}, {pipeline_mode = #tpu.pipeline_mode<synchronous>, transform_indices = @transform_3, window_bounds = array<i64: 1, 32>}, {pipeline_mode = #tpu.pipeline_mode<synchronous>, transform_indices = @transform_4, window_bounds = array<i64: 9, 32, 32>}, {pipeline_mode = #tpu.pipeline_mode<synchronous>, transform_indices = @transform_5, window_bounds = array<i64: 1, 32>}, {transform_indices = @transform_6, window_bounds = array<i64: 64, 32>}]} {
    %c0 = arith.constant 0 : index
    %c0_0 = arith.constant 0 : index
    %c0_1 = arith.constant 0 : index
    %c0_2 = arith.constant 0 : index
    %0 = vector.load %arg1[%c0, %c0_0, %c0_1, %c0_2] : memref<1x18x18x8xbf16, #tpu.memory_space<vmem>>, vector<1x18x18x8xbf16>
    %1 = vector.shape_cast %0 : vector<1x18x18x8xbf16> to vector<18x18x8xbf16>
    %cst = arith.constant 0.000000e+00 : f32
    %2 = vector.broadcast %cst : f32 to vector<256x32xf32>
    %3 = vector.extract_strided_slice %1 {offsets = [0, 0, 0], sizes = [16, 16, 8], strides = [1, 1, 1]} : vector<18x18x8xbf16> to vector<16x16x8xbf16>
    %4 = vector.shape_cast %3 : vector<16x16x8xbf16> to vector<256x8xbf16>
    %c0_3 = arith.constant 0 : index
    %c0_4 = arith.constant 0 : index
    %c0_5 = arith.constant 0 : index
    %5 = vector.load %arg3[%c0_3, %c0_4, %c0_5] : memref<9x8x32xbf16, #tpu.memory_space<vmem>>, vector<1x8x32xbf16>
    %6 = vector.shape_cast %5 : vector<1x8x32xbf16> to vector<8x32xbf16>
    %cst_6 = arith.constant dense<0.000000e+00> : vector<256x32xf32>
    %7 = tpu.matmul %4, %6, %cst_6 {dimension_numbers = #tpu.dot_dimension_numbers<[1], [0], [0], [1], [0, 0, 1, 1], [], []>} : vector<256x8xbf16>, vector<8x32xbf16>, vector<256x32xf32> -> vector<256x32xf32>
    %8 = arith.addf %2, %7 : vector<256x32xf32>
    %9 = vector.extract_strided_slice %1 {offsets = [0, 1, 0], sizes = [16, 16, 8], strides = [1, 1, 1]} : vector<18x18x8xbf16> to vector<16x16x8xbf16>
    %10 = vector.shape_cast %9 : vector<16x16x8xbf16> to vector<256x8xbf16>
    %c1 = arith.constant 1 : index
    %c0_7 = arith.constant 0 : index
    %c0_8 = arith.constant 0 : index
    %11 = vector.load %arg3[%c1, %c0_7, %c0_8] : memref<9x8x32xbf16, #tpu.memory_space<vmem>>, vector<1x8x32xbf16>
    %12 = vector.shape_cast %11 : vector<1x8x32xbf16> to vector<8x32xbf16>
    %cst_9 = arith.constant dense<0.000000e+00> : vector<256x32xf32>
    %13 = tpu.matmul %10, %12, %cst_9 {dimension_numbers = #tpu.dot_dimension_numbers<[1], [0], [0], [1], [0, 0, 1, 1], [], []>} : vector<256x8xbf16>, vector<8x32xbf16>, vector<256x32xf32> -> vector<256x32xf32>
    %14 = arith.addf %8, %13 : vector<256x32xf32>
    %15 = vector.extract_strided_slice %1 {offsets = [0, 2, 0], sizes = [16, 16, 8], strides = [1, 1, 1]} : vector<18x18x8xbf16> to vector<16x16x8xbf16>
    %16 = vector.shape_cast %15 : vector<16x16x8xbf16> to vector<256x8xbf16>
    %c2 = arith.constant 2 : index
    %c0_10 = arith.constant 0 : index
    %c0_11 = arith.constant 0 : index
    %17 = vector.load %arg3[%c2, %c0_10, %c0_11] : memref<9x8x32xbf16, #tpu.memory_space<vmem>>, vector<1x8x32xbf16>
    %18 = vector.shape_cast %17 : vector<1x8x32xbf16> to vector<8x32xbf16>
    %cst_12 = arith.constant dense<0.000000e+00> : vector<256x32xf32>
    %19 = tpu.matmul %16, %18, %cst_12 {dimension_numbers = #tpu.dot_dimension_numbers<[1], [0], [0], [1], [0, 0, 1, 1], [], []>} : vector<256x8xbf16>, vector<8x32xbf16>, vector<256x32xf32> -> vector<256x32xf32>
    %20 = arith.addf %14, %19 : vector<256x32xf32>
    %21 = vector.extract_strided_slice %1 {offsets = [1, 0, 0], sizes = [16, 16, 8], strides = [1, 1, 1]} : vector<18x18x8xbf16> to vector<16x16x8xbf16>
    %22 = vector.shape_cast %21 : vector<16x16x8xbf16> to vector<256x8xbf16>
    %c3 = arith.constant 3 : index
    %c0_13 = arith.constant 0 : index
    %c0_14 = arith.constant 0 : index
    %23 = vector.load %arg3[%c3, %c0_13, %c0_14] : memref<9x8x32xbf16, #tpu.memory_space<vmem>>, vector<1x8x32xbf16>
    %24 = vector.shape_cast %23 : vector<1x8x32xbf16> to vector<8x32xbf16>
    %cst_15 = arith.constant dense<0.000000e+00> : vector<256x32xf32>
    %25 = tpu.matmul %22, %24, %cst_15 {dimension_numbers = #tpu.dot_dimension_numbers<[1], [0], [0], [1], [0, 0, 1, 1], [], []>} : vector<256x8xbf16>, vector<8x32xbf16>, vector<256x32xf32> -> vector<256x32xf32>
    %26 = arith.addf %20, %25 : vector<256x32xf32>
    %27 = vector.extract_strided_slice %1 {offsets = [1, 1, 0], sizes = [16, 16, 8], strides = [1, 1, 1]} : vector<18x18x8xbf16> to vector<16x16x8xbf16>
    %28 = vector.shape_cast %27 : vector<16x16x8xbf16> to vector<256x8xbf16>
    %c4 = arith.constant 4 : index
    %c0_16 = arith.constant 0 : index
    %c0_17 = arith.constant 0 : index
    %29 = vector.load %arg3[%c4, %c0_16, %c0_17] : memref<9x8x32xbf16, #tpu.memory_space<vmem>>, vector<1x8x32xbf16>
    %30 = vector.shape_cast %29 : vector<1x8x32xbf16> to vector<8x32xbf16>
    %cst_18 = arith.constant dense<0.000000e+00> : vector<256x32xf32>
    %31 = tpu.matmul %28, %30, %cst_18 {dimension_numbers = #tpu.dot_dimension_numbers<[1], [0], [0], [1], [0, 0, 1, 1], [], []>} : vector<256x8xbf16>, vector<8x32xbf16>, vector<256x32xf32> -> vector<256x32xf32>
    %32 = arith.addf %26, %31 : vector<256x32xf32>
    %33 = vector.extract_strided_slice %1 {offsets = [1, 2, 0], sizes = [16, 16, 8], strides = [1, 1, 1]} : vector<18x18x8xbf16> to vector<16x16x8xbf16>
    %34 = vector.shape_cast %33 : vector<16x16x8xbf16> to vector<256x8xbf16>
    %c5 = arith.constant 5 : index
    %c0_19 = arith.constant 0 : index
    %c0_20 = arith.constant 0 : index
    %35 = vector.load %arg3[%c5, %c0_19, %c0_20] : memref<9x8x32xbf16, #tpu.memory_space<vmem>>, vector<1x8x32xbf16>
    %36 = vector.shape_cast %35 : vector<1x8x32xbf16> to vector<8x32xbf16>
    %cst_21 = arith.constant dense<0.000000e+00> : vector<256x32xf32>
    %37 = tpu.matmul %34, %36, %cst_21 {dimension_numbers = #tpu.dot_dimension_numbers<[1], [0], [0], [1], [0, 0, 1, 1], [], []>} : vector<256x8xbf16>, vector<8x32xbf16>, vector<256x32xf32> -> vector<256x32xf32>
    %38 = arith.addf %32, %37 : vector<256x32xf32>
    %39 = vector.extract_strided_slice %1 {offsets = [2, 0, 0], sizes = [16, 16, 8], strides = [1, 1, 1]} : vector<18x18x8xbf16> to vector<16x16x8xbf16>
    %40 = vector.shape_cast %39 : vector<16x16x8xbf16> to vector<256x8xbf16>
    %c6 = arith.constant 6 : index
    %c0_22 = arith.constant 0 : index
    %c0_23 = arith.constant 0 : index
    %41 = vector.load %arg3[%c6, %c0_22, %c0_23] : memref<9x8x32xbf16, #tpu.memory_space<vmem>>, vector<1x8x32xbf16>
    %42 = vector.shape_cast %41 : vector<1x8x32xbf16> to vector<8x32xbf16>
    %cst_24 = arith.constant dense<0.000000e+00> : vector<256x32xf32>
    %43 = tpu.matmul %40, %42, %cst_24 {dimension_numbers = #tpu.dot_dimension_numbers<[1], [0], [0], [1], [0, 0, 1, 1], [], []>} : vector<256x8xbf16>, vector<8x32xbf16>, vector<256x32xf32> -> vector<256x32xf32>
    %44 = arith.addf %38, %43 : vector<256x32xf32>
    %45 = vector.extract_strided_slice %1 {offsets = [2, 1, 0], sizes = [16, 16, 8], strides = [1, 1, 1]} : vector<18x18x8xbf16> to vector<16x16x8xbf16>
    %46 = vector.shape_cast %45 : vector<16x16x8xbf16> to vector<256x8xbf16>
    %c7 = arith.constant 7 : index
    %c0_25 = arith.constant 0 : index
    %c0_26 = arith.constant 0 : index
    %47 = vector.load %arg3[%c7, %c0_25, %c0_26] : memref<9x8x32xbf16, #tpu.memory_space<vmem>>, vector<1x8x32xbf16>
    %48 = vector.shape_cast %47 : vector<1x8x32xbf16> to vector<8x32xbf16>
    %cst_27 = arith.constant dense<0.000000e+00> : vector<256x32xf32>
    %49 = tpu.matmul %46, %48, %cst_27 {dimension_numbers = #tpu.dot_dimension_numbers<[1], [0], [0], [1], [0, 0, 1, 1], [], []>} : vector<256x8xbf16>, vector<8x32xbf16>, vector<256x32xf32> -> vector<256x32xf32>
    %50 = arith.addf %44, %49 : vector<256x32xf32>
    %51 = vector.extract_strided_slice %1 {offsets = [2, 2, 0], sizes = [16, 16, 8], strides = [1, 1, 1]} : vector<18x18x8xbf16> to vector<16x16x8xbf16>
    %52 = vector.shape_cast %51 : vector<16x16x8xbf16> to vector<256x8xbf16>
    %c8 = arith.constant 8 : index
    %c0_28 = arith.constant 0 : index
    %c0_29 = arith.constant 0 : index
    %53 = vector.load %arg3[%c8, %c0_28, %c0_29] : memref<9x8x32xbf16, #tpu.memory_space<vmem>>, vector<1x8x32xbf16>
    %54 = vector.shape_cast %53 : vector<1x8x32xbf16> to vector<8x32xbf16>
    %cst_30 = arith.constant dense<0.000000e+00> : vector<256x32xf32>
    %55 = tpu.matmul %52, %54, %cst_30 {dimension_numbers = #tpu.dot_dimension_numbers<[1], [0], [0], [1], [0, 0, 1, 1], [], []>} : vector<256x8xbf16>, vector<8x32xbf16>, vector<256x32xf32> -> vector<256x32xf32>
    %56 = arith.addf %50, %55 : vector<256x32xf32>
    %c0_31 = arith.constant 0 : index
    %c0_32 = arith.constant 0 : index
    %57 = vector.load %arg4[%c0_31, %c0_32] : memref<1x32xf32, #tpu.memory_space<vmem>>, vector<1x32xf32>
    %58 = vector.broadcast %57 : vector<1x32xf32> to vector<256x32xf32>
    %59 = arith.addf %56, %58 : vector<256x32xf32>
    %cst_33 = arith.constant 0.000000e+00 : f32
    %60 = vector.broadcast %cst_33 : f32 to vector<256x32xf32>
    %61 = arith.maximumf %59, %60 : vector<256x32xf32>
    %62 = arith.truncf %61 : vector<256x32xf32> to vector<256x32xbf16>
    %cst_34 = arith.constant 0.000000e+00 : f32
    %63 = vector.broadcast %cst_34 : f32 to vector<64x32xf32>
    %c0_35 = arith.constant 0 : index
    %c0_36 = arith.constant 0 : index
    %c0_37 = arith.constant 0 : index
    %64 = vector.load %arg2[%c0_35, %c0_36, %c0_37] : memref<9x64x256xbf16, #tpu.memory_space<vmem>>, vector<1x64x256xbf16>
    %65 = vector.shape_cast %64 : vector<1x64x256xbf16> to vector<64x256xbf16>
    %cst_38 = arith.constant dense<0.000000e+00> : vector<64x32xf32>
    %66 = tpu.matmul %65, %62, %cst_38 {dimension_numbers = #tpu.dot_dimension_numbers<[1], [0], [0], [1], [0, 0, 1, 1], [], []>} : vector<64x256xbf16>, vector<256x32xbf16>, vector<64x32xf32> -> vector<64x32xf32>
    %67 = arith.truncf %66 : vector<64x32xf32> to vector<64x32xbf16>
    %c0_39 = arith.constant 0 : index
    %c0_40 = arith.constant 0 : index
    %c0_41 = arith.constant 0 : index
    %68 = vector.load %arg5[%c0_39, %c0_40, %c0_41] : memref<9x32x32xbf16, #tpu.memory_space<vmem>>, vector<1x32x32xbf16>
    %69 = vector.shape_cast %68 : vector<1x32x32xbf16> to vector<32x32xbf16>
    %cst_42 = arith.constant dense<0.000000e+00> : vector<64x32xf32>
    %70 = tpu.matmul %67, %69, %cst_42 {dimension_numbers = #tpu.dot_dimension_numbers<[1], [0], [0], [1], [0, 0, 1, 1], [], []>} : vector<64x32xbf16>, vector<32x32xbf16>, vector<64x32xf32> -> vector<64x32xf32>
    %71 = arith.addf %63, %70 : vector<64x32xf32>
    %c1_43 = arith.constant 1 : index
    %c0_44 = arith.constant 0 : index
    %c0_45 = arith.constant 0 : index
    %72 = vector.load %arg2[%c1_43, %c0_44, %c0_45] : memref<9x64x256xbf16, #tpu.memory_space<vmem>>, vector<1x64x256xbf16>
    %73 = vector.shape_cast %72 : vector<1x64x256xbf16> to vector<64x256xbf16>
    %cst_46 = arith.constant dense<0.000000e+00> : vector<64x32xf32>
    %74 = tpu.matmul %73, %62, %cst_46 {dimension_numbers = #tpu.dot_dimension_numbers<[1], [0], [0], [1], [0, 0, 1, 1], [], []>} : vector<64x256xbf16>, vector<256x32xbf16>, vector<64x32xf32> -> vector<64x32xf32>
    %75 = arith.truncf %74 : vector<64x32xf32> to vector<64x32xbf16>
    %c1_47 = arith.constant 1 : index
    %c0_48 = arith.constant 0 : index
    %c0_49 = arith.constant 0 : index
    %76 = vector.load %arg5[%c1_47, %c0_48, %c0_49] : memref<9x32x32xbf16, #tpu.memory_space<vmem>>, vector<1x32x32xbf16>
    %77 = vector.shape_cast %76 : vector<1x32x32xbf16> to vector<32x32xbf16>
    %cst_50 = arith.constant dense<0.000000e+00> : vector<64x32xf32>
    %78 = tpu.matmul %75, %77, %cst_50 {dimension_numbers = #tpu.dot_dimension_numbers<[1], [0], [0], [1], [0, 0, 1, 1], [], []>} : vector<64x32xbf16>, vector<32x32xbf16>, vector<64x32xf32> -> vector<64x32xf32>
    %79 = arith.addf %71, %78 : vector<64x32xf32>
    %c2_51 = arith.constant 2 : index
    %c0_52 = arith.constant 0 : index
    %c0_53 = arith.constant 0 : index
    %80 = vector.load %arg2[%c2_51, %c0_52, %c0_53] : memref<9x64x256xbf16, #tpu.memory_space<vmem>>, vector<1x64x256xbf16>
    %81 = vector.shape_cast %80 : vector<1x64x256xbf16> to vector<64x256xbf16>
    %cst_54 = arith.constant dense<0.000000e+00> : vector<64x32xf32>
    %82 = tpu.matmul %81, %62, %cst_54 {dimension_numbers = #tpu.dot_dimension_numbers<[1], [0], [0], [1], [0, 0, 1, 1], [], []>} : vector<64x256xbf16>, vector<256x32xbf16>, vector<64x32xf32> -> vector<64x32xf32>
    %83 = arith.truncf %82 : vector<64x32xf32> to vector<64x32xbf16>
    %c2_55 = arith.constant 2 : index
    %c0_56 = arith.constant 0 : index
    %c0_57 = arith.constant 0 : index
    %84 = vector.load %arg5[%c2_55, %c0_56, %c0_57] : memref<9x32x32xbf16, #tpu.memory_space<vmem>>, vector<1x32x32xbf16>
    %85 = vector.shape_cast %84 : vector<1x32x32xbf16> to vector<32x32xbf16>
    %cst_58 = arith.constant dense<0.000000e+00> : vector<64x32xf32>
    %86 = tpu.matmul %83, %85, %cst_58 {dimension_numbers = #tpu.dot_dimension_numbers<[1], [0], [0], [1], [0, 0, 1, 1], [], []>} : vector<64x32xbf16>, vector<32x32xbf16>, vector<64x32xf32> -> vector<64x32xf32>
    %87 = arith.addf %79, %86 : vector<64x32xf32>
    %c3_59 = arith.constant 3 : index
    %c0_60 = arith.constant 0 : index
    %c0_61 = arith.constant 0 : index
    %88 = vector.load %arg2[%c3_59, %c0_60, %c0_61] : memref<9x64x256xbf16, #tpu.memory_space<vmem>>, vector<1x64x256xbf16>
    %89 = vector.shape_cast %88 : vector<1x64x256xbf16> to vector<64x256xbf16>
    %cst_62 = arith.constant dense<0.000000e+00> : vector<64x32xf32>
    %90 = tpu.matmul %89, %62, %cst_62 {dimension_numbers = #tpu.dot_dimension_numbers<[1], [0], [0], [1], [0, 0, 1, 1], [], []>} : vector<64x256xbf16>, vector<256x32xbf16>, vector<64x32xf32> -> vector<64x32xf32>
    %91 = arith.truncf %90 : vector<64x32xf32> to vector<64x32xbf16>
    %c3_63 = arith.constant 3 : index
    %c0_64 = arith.constant 0 : index
    %c0_65 = arith.constant 0 : index
    %92 = vector.load %arg5[%c3_63, %c0_64, %c0_65] : memref<9x32x32xbf16, #tpu.memory_space<vmem>>, vector<1x32x32xbf16>
    %93 = vector.shape_cast %92 : vector<1x32x32xbf16> to vector<32x32xbf16>
    %cst_66 = arith.constant dense<0.000000e+00> : vector<64x32xf32>
    %94 = tpu.matmul %91, %93, %cst_66 {dimension_numbers = #tpu.dot_dimension_numbers<[1], [0], [0], [1], [0, 0, 1, 1], [], []>} : vector<64x32xbf16>, vector<32x32xbf16>, vector<64x32xf32> -> vector<64x32xf32>
    %95 = arith.addf %87, %94 : vector<64x32xf32>
    %c4_67 = arith.constant 4 : index
    %c0_68 = arith.constant 0 : index
    %c0_69 = arith.constant 0 : index
    %96 = vector.load %arg2[%c4_67, %c0_68, %c0_69] : memref<9x64x256xbf16, #tpu.memory_space<vmem>>, vector<1x64x256xbf16>
    %97 = vector.shape_cast %96 : vector<1x64x256xbf16> to vector<64x256xbf16>
    %cst_70 = arith.constant dense<0.000000e+00> : vector<64x32xf32>
    %98 = tpu.matmul %97, %62, %cst_70 {dimension_numbers = #tpu.dot_dimension_numbers<[1], [0], [0], [1], [0, 0, 1, 1], [], []>} : vector<64x256xbf16>, vector<256x32xbf16>, vector<64x32xf32> -> vector<64x32xf32>
    %99 = arith.truncf %98 : vector<64x32xf32> to vector<64x32xbf16>
    %c4_71 = arith.constant 4 : index
    %c0_72 = arith.constant 0 : index
    %c0_73 = arith.constant 0 : index
    %100 = vector.load %arg5[%c4_71, %c0_72, %c0_73] : memref<9x32x32xbf16, #tpu.memory_space<vmem>>, vector<1x32x32xbf16>
    %101 = vector.shape_cast %100 : vector<1x32x32xbf16> to vector<32x32xbf16>
    %cst_74 = arith.constant dense<0.000000e+00> : vector<64x32xf32>
    %102 = tpu.matmul %99, %101, %cst_74 {dimension_numbers = #tpu.dot_dimension_numbers<[1], [0], [0], [1], [0, 0, 1, 1], [], []>} : vector<64x32xbf16>, vector<32x32xbf16>, vector<64x32xf32> -> vector<64x32xf32>
    %103 = arith.addf %95, %102 : vector<64x32xf32>
    %c5_75 = arith.constant 5 : index
    %c0_76 = arith.constant 0 : index
    %c0_77 = arith.constant 0 : index
    %104 = vector.load %arg2[%c5_75, %c0_76, %c0_77] : memref<9x64x256xbf16, #tpu.memory_space<vmem>>, vector<1x64x256xbf16>
    %105 = vector.shape_cast %104 : vector<1x64x256xbf16> to vector<64x256xbf16>
    %cst_78 = arith.constant dense<0.000000e+00> : vector<64x32xf32>
    %106 = tpu.matmul %105, %62, %cst_78 {dimension_numbers = #tpu.dot_dimension_numbers<[1], [0], [0], [1], [0, 0, 1, 1], [], []>} : vector<64x256xbf16>, vector<256x32xbf16>, vector<64x32xf32> -> vector<64x32xf32>
    %107 = arith.truncf %106 : vector<64x32xf32> to vector<64x32xbf16>
    %c5_79 = arith.constant 5 : index
    %c0_80 = arith.constant 0 : index
    %c0_81 = arith.constant 0 : index
    %108 = vector.load %arg5[%c5_79, %c0_80, %c0_81] : memref<9x32x32xbf16, #tpu.memory_space<vmem>>, vector<1x32x32xbf16>
    %109 = vector.shape_cast %108 : vector<1x32x32xbf16> to vector<32x32xbf16>
    %cst_82 = arith.constant dense<0.000000e+00> : vector<64x32xf32>
    %110 = tpu.matmul %107, %109, %cst_82 {dimension_numbers = #tpu.dot_dimension_numbers<[1], [0], [0], [1], [0, 0, 1, 1], [], []>} : vector<64x32xbf16>, vector<32x32xbf16>, vector<64x32xf32> -> vector<64x32xf32>
    %111 = arith.addf %103, %110 : vector<64x32xf32>
    %c6_83 = arith.constant 6 : index
    %c0_84 = arith.constant 0 : index
    %c0_85 = arith.constant 0 : index
    %112 = vector.load %arg2[%c6_83, %c0_84, %c0_85] : memref<9x64x256xbf16, #tpu.memory_space<vmem>>, vector<1x64x256xbf16>
    %113 = vector.shape_cast %112 : vector<1x64x256xbf16> to vector<64x256xbf16>
    %cst_86 = arith.constant dense<0.000000e+00> : vector<64x32xf32>
    %114 = tpu.matmul %113, %62, %cst_86 {dimension_numbers = #tpu.dot_dimension_numbers<[1], [0], [0], [1], [0, 0, 1, 1], [], []>} : vector<64x256xbf16>, vector<256x32xbf16>, vector<64x32xf32> -> vector<64x32xf32>
    %115 = arith.truncf %114 : vector<64x32xf32> to vector<64x32xbf16>
    %c6_87 = arith.constant 6 : index
    %c0_88 = arith.constant 0 : index
    %c0_89 = arith.constant 0 : index
    %116 = vector.load %arg5[%c6_87, %c0_88, %c0_89] : memref<9x32x32xbf16, #tpu.memory_space<vmem>>, vector<1x32x32xbf16>
    %117 = vector.shape_cast %116 : vector<1x32x32xbf16> to vector<32x32xbf16>
    %cst_90 = arith.constant dense<0.000000e+00> : vector<64x32xf32>
    %118 = tpu.matmul %115, %117, %cst_90 {dimension_numbers = #tpu.dot_dimension_numbers<[1], [0], [0], [1], [0, 0, 1, 1], [], []>} : vector<64x32xbf16>, vector<32x32xbf16>, vector<64x32xf32> -> vector<64x32xf32>
    %119 = arith.addf %111, %118 : vector<64x32xf32>
    %c7_91 = arith.constant 7 : index
    %c0_92 = arith.constant 0 : index
    %c0_93 = arith.constant 0 : index
    %120 = vector.load %arg2[%c7_91, %c0_92, %c0_93] : memref<9x64x256xbf16, #tpu.memory_space<vmem>>, vector<1x64x256xbf16>
    %121 = vector.shape_cast %120 : vector<1x64x256xbf16> to vector<64x256xbf16>
    %cst_94 = arith.constant dense<0.000000e+00> : vector<64x32xf32>
    %122 = tpu.matmul %121, %62, %cst_94 {dimension_numbers = #tpu.dot_dimension_numbers<[1], [0], [0], [1], [0, 0, 1, 1], [], []>} : vector<64x256xbf16>, vector<256x32xbf16>, vector<64x32xf32> -> vector<64x32xf32>
    %123 = arith.truncf %122 : vector<64x32xf32> to vector<64x32xbf16>
    %c7_95 = arith.constant 7 : index
    %c0_96 = arith.constant 0 : index
    %c0_97 = arith.constant 0 : index
    %124 = vector.load %arg5[%c7_95, %c0_96, %c0_97] : memref<9x32x32xbf16, #tpu.memory_space<vmem>>, vector<1x32x32xbf16>
    %125 = vector.shape_cast %124 : vector<1x32x32xbf16> to vector<32x32xbf16>
    %cst_98 = arith.constant dense<0.000000e+00> : vector<64x32xf32>
    %126 = tpu.matmul %123, %125, %cst_98 {dimension_numbers = #tpu.dot_dimension_numbers<[1], [0], [0], [1], [0, 0, 1, 1], [], []>} : vector<64x32xbf16>, vector<32x32xbf16>, vector<64x32xf32> -> vector<64x32xf32>
    %127 = arith.addf %119, %126 : vector<64x32xf32>
    %c8_99 = arith.constant 8 : index
    %c0_100 = arith.constant 0 : index
    %c0_101 = arith.constant 0 : index
    %128 = vector.load %arg2[%c8_99, %c0_100, %c0_101] : memref<9x64x256xbf16, #tpu.memory_space<vmem>>, vector<1x64x256xbf16>
    %129 = vector.shape_cast %128 : vector<1x64x256xbf16> to vector<64x256xbf16>
    %cst_102 = arith.constant dense<0.000000e+00> : vector<64x32xf32>
    %130 = tpu.matmul %129, %62, %cst_102 {dimension_numbers = #tpu.dot_dimension_numbers<[1], [0], [0], [1], [0, 0, 1, 1], [], []>} : vector<64x256xbf16>, vector<256x32xbf16>, vector<64x32xf32> -> vector<64x32xf32>
    %131 = arith.truncf %130 : vector<64x32xf32> to vector<64x32xbf16>
    %c8_103 = arith.constant 8 : index
    %c0_104 = arith.constant 0 : index
    %c0_105 = arith.constant 0 : index
    %132 = vector.load %arg5[%c8_103, %c0_104, %c0_105] : memref<9x32x32xbf16, #tpu.memory_space<vmem>>, vector<1x32x32xbf16>
    %133 = vector.shape_cast %132 : vector<1x32x32xbf16> to vector<32x32xbf16>
    %cst_106 = arith.constant dense<0.000000e+00> : vector<64x32xf32>
    %134 = tpu.matmul %131, %133, %cst_106 {dimension_numbers = #tpu.dot_dimension_numbers<[1], [0], [0], [1], [0, 0, 1, 1], [], []>} : vector<64x32xbf16>, vector<32x32xbf16>, vector<64x32xf32> -> vector<64x32xf32>
    %135 = arith.addf %127, %134 : vector<64x32xf32>
    %c0_107 = arith.constant 0 : index
    %c0_108 = arith.constant 0 : index
    %136 = vector.load %arg6[%c0_107, %c0_108] : memref<1x32xf32, #tpu.memory_space<vmem>>, vector<1x32xf32>
    %137 = vector.broadcast %136 : vector<1x32xf32> to vector<64x32xf32>
    %138 = arith.addf %135, %137 : vector<64x32xf32>
    %cst_109 = arith.constant 0.000000e+00 : f32
    %139 = vector.broadcast %cst_109 : f32 to vector<64x32xf32>
    %140 = arith.maximumf %138, %139 : vector<64x32xf32>
    %141 = arith.truncf %140 : vector<64x32xf32> to vector<64x32xbf16>
    %c0_110 = arith.constant 0 : index
    %c0_111 = arith.constant 0 : index
    %142 = vector.load %arg7[%c0_110, %c0_111] : memref<64x32xbf16, #tpu.memory_space<vmem>>, vector<64x32xbf16>
    tpu.vector_store %arg7[%c0_110, %c0_111], %141 {strides = array<i32>} : memref<64x32xbf16, #tpu.memory_space<vmem>>, vector<64x32xbf16>,
    return
  }
  func.func @transform_0(%arg0: i32) -> (i32, i32, i32, i32) {
    %c0_i32 = arith.constant 0 : i32
    %c0_i32_0 = arith.constant 0 : i32
    %c0_i32_1 = arith.constant 0 : i32
    %c0_i32_2 = arith.constant 0 : i32
    return %arg0, %c0_i32, %c0_i32_0, %c0_i32_1 : i32, i32, i32, i32
  }
  func.func @transform_1(%arg0: i32) -> (i32, i32, i32) {
    %c0_i32 = arith.constant 0 : i32
    %c0_i32_0 = arith.constant 0 : i32
    %c0_i32_1 = arith.constant 0 : i32
    %c0_i32_2 = arith.constant 0 : i32
    return %c0_i32, %c0_i32_0, %c0_i32_1 : i32, i32, i32
  }
  func.func @transform_2(%arg0: i32) -> (i32, i32, i32) {
    %c0_i32 = arith.constant 0 : i32
    %c0_i32_0 = arith.constant 0 : i32
    %c0_i32_1 = arith.constant 0 : i32
    %c0_i32_2 = arith.constant 0 : i32
    return %c0_i32, %c0_i32_0, %c0_i32_1 : i32, i32, i32
  }
  func.func @transform_3(%arg0: i32) -> (i32, i32) {
    %c0_i32 = arith.constant 0 : i32
    %c0_i32_0 = arith.constant 0 : i32
    %c0_i32_1 = arith.constant 0 : i32
    return %c0_i32, %c0_i32_0 : i32, i32
  }
  func.func @transform_4(%arg0: i32) -> (i32, i32, i32) {
    %c0_i32 = arith.constant 0 : i32
    %c0_i32_0 = arith.constant 0 : i32
    %c0_i32_1 = arith.constant 0 : i32
    %c0_i32_2 = arith.constant 0 : i32
    return %c0_i32, %c0_i32_0, %c0_i32_1 : i32, i32, i32
  }
  func.func @transform_5(%arg0: i32) -> (i32, i32) {
    %c0_i32 = arith.constant 0 : i32
    %c0_i32_0 = arith.constant 0 : i32
    %c0_i32_1 = arith.constant 0 : i32
    return %c0_i32, %c0_i32_0 : i32, i32
  }
  func.func @transform_6(%arg0: i32) -> (i32, i32) {
    %c0_i32 = arith.constant 0 : i32
    %c0_i32_0 = arith.constant 0 : i32
    return %arg0, %c0_i32 : i32, i32
  }
}

module attributes {stable_mosaic.version = 11 : i64} {
  func.func @_fc_head_kernel(%arg0: i32, %arg1: memref<2x2048xbf16, #tpu.memory_space<vmem>>, %arg2: memref<2048x32xbf16, #tpu.memory_space<vmem>>, %arg3: memref<1x32xf32, #tpu.memory_space<vmem>>, %arg4: memref<32x32xbf16, #tpu.memory_space<vmem>>, %arg5: memref<1x32xf32, #tpu.memory_space<vmem>>, %arg6: memref<32x8xbf16, #tpu.memory_space<vmem>>, %arg7: memref<1x8xf32, #tpu.memory_space<vmem>>, %arg8: memref<2x8xf32, #tpu.memory_space<vmem>>) attributes {dimension_semantics = [#tpu.dimension_semantics<parallel>], iteration_bounds = array<i64: 1>, scalar_prefetch = 0 : i64, scratch_operands = 0 : i64, tpu.core_type = #tpu.core_type<tc>, window_params = [{transform_indices = @transform_0, window_bounds = array<i64: 2, 2048>}, {pipeline_mode = #tpu.pipeline_mode<synchronous>, transform_indices = @transform_1, window_bounds = array<i64: 2048, 32>}, {pipeline_mode = #tpu.pipeline_mode<synchronous>, transform_indices = @transform_2, window_bounds = array<i64: 1, 32>}, {pipeline_mode = #tpu.pipeline_mode<synchronous>, transform_indices = @transform_3, window_bounds = array<i64: 32, 32>}, {pipeline_mode = #tpu.pipeline_mode<synchronous>, transform_indices = @transform_4, window_bounds = array<i64: 1, 32>}, {pipeline_mode = #tpu.pipeline_mode<synchronous>, transform_indices = @transform_5, window_bounds = array<i64: 32, 8>}, {pipeline_mode = #tpu.pipeline_mode<synchronous>, transform_indices = @transform_6, window_bounds = array<i64: 1, 8>}, {transform_indices = @transform_7, window_bounds = array<i64: 2, 8>}]} {
    %c0 = arith.constant 0 : index
    %c0_0 = arith.constant 0 : index
    %0 = vector.load %arg1[%c0, %c0_0] : memref<2x2048xbf16, #tpu.memory_space<vmem>>, vector<2x2048xbf16>
    %c0_1 = arith.constant 0 : index
    %c0_2 = arith.constant 0 : index
    %1 = vector.load %arg2[%c0_1, %c0_2] : memref<2048x32xbf16, #tpu.memory_space<vmem>>, vector<2048x32xbf16>
    %cst = arith.constant dense<0.000000e+00> : vector<2x32xf32>
    %2 = tpu.matmul %0, %1, %cst {dimension_numbers = #tpu.dot_dimension_numbers<[1], [0], [0], [1], [0, 0, 1, 1], [], []>} : vector<2x2048xbf16>, vector<2048x32xbf16>, vector<2x32xf32> -> vector<2x32xf32>
    %c0_3 = arith.constant 0 : index
    %c0_4 = arith.constant 0 : index
    %3 = vector.load %arg3[%c0_3, %c0_4] : memref<1x32xf32, #tpu.memory_space<vmem>>, vector<1x32xf32>
    %4 = vector.broadcast %3 : vector<1x32xf32> to vector<2x32xf32>
    %5 = arith.addf %2, %4 : vector<2x32xf32>
    %cst_5 = arith.constant 0.000000e+00 : f32
    %6 = vector.broadcast %cst_5 : f32 to vector<2x32xf32>
    %7 = arith.maximumf %5, %6 : vector<2x32xf32>
    %8 = arith.truncf %7 : vector<2x32xf32> to vector<2x32xbf16>
    %c0_6 = arith.constant 0 : index
    %c0_7 = arith.constant 0 : index
    %9 = vector.load %arg4[%c0_6, %c0_7] : memref<32x32xbf16, #tpu.memory_space<vmem>>, vector<32x32xbf16>
    %cst_8 = arith.constant dense<0.000000e+00> : vector<2x32xf32>
    %10 = tpu.matmul %8, %9, %cst_8 {dimension_numbers = #tpu.dot_dimension_numbers<[1], [0], [0], [1], [0, 0, 1, 1], [], []>} : vector<2x32xbf16>, vector<32x32xbf16>, vector<2x32xf32> -> vector<2x32xf32>
    %c0_9 = arith.constant 0 : index
    %c0_10 = arith.constant 0 : index
    %11 = vector.load %arg5[%c0_9, %c0_10] : memref<1x32xf32, #tpu.memory_space<vmem>>, vector<1x32xf32>
    %12 = vector.broadcast %11 : vector<1x32xf32> to vector<2x32xf32>
    %13 = arith.addf %10, %12 : vector<2x32xf32>
    %cst_11 = arith.constant 0.000000e+00 : f32
    %14 = vector.broadcast %cst_11 : f32 to vector<2x32xf32>
    %15 = arith.maximumf %13, %14 : vector<2x32xf32>
    %16 = arith.truncf %15 : vector<2x32xf32> to vector<2x32xbf16>
    %c0_12 = arith.constant 0 : index
    %c0_13 = arith.constant 0 : index
    %17 = vector.load %arg6[%c0_12, %c0_13] : memref<32x8xbf16, #tpu.memory_space<vmem>>, vector<32x8xbf16>
    %cst_14 = arith.constant dense<0.000000e+00> : vector<2x8xf32>
    %18 = tpu.matmul %16, %17, %cst_14 {dimension_numbers = #tpu.dot_dimension_numbers<[1], [0], [0], [1], [0, 0, 1, 1], [], []>} : vector<2x32xbf16>, vector<32x8xbf16>, vector<2x8xf32> -> vector<2x8xf32>
    %c0_15 = arith.constant 0 : index
    %c0_16 = arith.constant 0 : index
    %19 = vector.load %arg7[%c0_15, %c0_16] : memref<1x8xf32, #tpu.memory_space<vmem>>, vector<1x8xf32>
    %20 = vector.broadcast %19 : vector<1x8xf32> to vector<2x8xf32>
    %21 = arith.addf %18, %20 : vector<2x8xf32>
    %c0_17 = arith.constant 0 : index
    %c0_18 = arith.constant 0 : index
    %22 = vector.load %arg8[%c0_17, %c0_18] : memref<2x8xf32, #tpu.memory_space<vmem>>, vector<2x8xf32>
    tpu.vector_store %arg8[%c0_17, %c0_18], %21 {strides = array<i32>} : memref<2x8xf32, #tpu.memory_space<vmem>>, vector<2x8xf32>,
    return
  }
  func.func @transform_0(%arg0: i32) -> (i32, i32) {
    %c0_i32 = arith.constant 0 : i32
    %c0_i32_0 = arith.constant 0 : i32
    return %arg0, %c0_i32 : i32, i32
  }
  func.func @transform_1(%arg0: i32) -> (i32, i32) {
    %c0_i32 = arith.constant 0 : i32
    %c0_i32_0 = arith.constant 0 : i32
    %c0_i32_1 = arith.constant 0 : i32
    return %c0_i32, %c0_i32_0 : i32, i32
  }
  func.func @transform_2(%arg0: i32) -> (i32, i32) {
    %c0_i32 = arith.constant 0 : i32
    %c0_i32_0 = arith.constant 0 : i32
    %c0_i32_1 = arith.constant 0 : i32
    return %c0_i32, %c0_i32_0 : i32, i32
  }
  func.func @transform_3(%arg0: i32) -> (i32, i32) {
    %c0_i32 = arith.constant 0 : i32
    %c0_i32_0 = arith.constant 0 : i32
    %c0_i32_1 = arith.constant 0 : i32
    return %c0_i32, %c0_i32_0 : i32, i32
  }
  func.func @transform_4(%arg0: i32) -> (i32, i32) {
    %c0_i32 = arith.constant 0 : i32
    %c0_i32_0 = arith.constant 0 : i32
    %c0_i32_1 = arith.constant 0 : i32
    return %c0_i32, %c0_i32_0 : i32, i32
  }
  func.func @transform_5(%arg0: i32) -> (i32, i32) {
    %c0_i32 = arith.constant 0 : i32
    %c0_i32_0 = arith.constant 0 : i32
    %c0_i32_1 = arith.constant 0 : i32
    return %c0_i32, %c0_i32_0 : i32, i32
  }
  func.func @transform_6(%arg0: i32) -> (i32, i32) {
    %c0_i32 = arith.constant 0 : i32
    %c0_i32_0 = arith.constant 0 : i32
    %c0_i32_1 = arith.constant 0 : i32
    return %c0_i32, %c0_i32_0 : i32, i32
  }
  func.func @transform_7(%arg0: i32) -> (i32, i32) {
    %c0_i32 = arith.constant 0 : i32
    %c0_i32_0 = arith.constant 0 : i32
    return %arg0, %c0_i32 : i32, i32
  }
}

</mosaic_0001>

<bundles_post_ra>
// kernel: single_predictor_forward.3
= control target key start
LH: loop header
LB: loop body
LE: loop exit
PB: predicated region body
PF: predicated region fallthrough
CT: control target
= control target key end

     0   :  { %v299_v28 = vlaneseq  ;;  %v2145_v36 = vmov 1966171168   ;;  %s2627_s0 = inlined_call_operand.vmem [shape: bf16[2,2048], index: 0, kind: input, shape index: {}]   ;;  %s2628_s1 = inlined_call_operand.vmem [shape: bf16[2048,32], index: 1, kind: input, shape index: {}]   ;;  %s2629_s2 = inlined_call_operand.vmem [shape: f32[1,32], index: 2, kind: input, shape index: {}]   ;;  %s2630_s3 = inlined_call_operand.vmem [shape: bf16[32,32], index: 3, kind: input, shape index: {}]   ;;  %s2631_s4 = inlined_call_operand.vmem [shape: f32[1,32], index: 4, kind: input, shape index: {}]   ;;  %s2632_s5 = inlined_call_operand.vmem [shape: bf16[32,8], index: 5, kind: input, shape index: {}]   ;;  %s2633_s6 = inlined_call_operand.vmem [shape: f32[1,8], index: 6, kind: input, shape index: {}]   ;;  %s2634_s7 = inlined_call_operand.hbm [shape: f32[2,8], index: 7, kind: output, shape index: {}]  }
   0x1   :  { %v1989_v0 = vld [vmem:[%s2628_s1 + $0x78] sm:$0xff]   ;;  %v1993_v4 = vld [vmem:[%s2628_s1 + $0x70] sm:$0xff]   ;;  %v1997_v8 = vld [vmem:[%s2628_s1 + $0x68] sm:$0xff]   ;;  %v297_v37 = vunpack.c.l.s4 %v2145_v36 }
   0x2   :  { %v1990_v1 = vld [vmem:[%s2628_s1 + $0xf8] sm:$0xff]   ;;  %1787 = vmatprep.subr.bf16.mxu0 %v1989_v0  ;;  %v1994_v5 = vld [vmem:[%s2628_s1 + $0xf0] sm:$0xff]   ;;  %v1998_v9 = vld [vmem:[%s2628_s1 + $0xe8] sm:$0xff]   ;;  %v300_v33 = vshrl.u32 %v299_v28, 7 }
   0x3   :  { %v1991_v2 = vld [vmem:[%s2628_s1 + $0x38] sm:$0xff]   ;;  %1809 = vmatprep.subr.bf16.mxu1 %v1990_v1  ;;  %v1995_v6 = vld [vmem:[%s2628_s1 + $0x30] sm:$0xff]   ;;  %v1999_v10 = vld [vmem:[%s2628_s1 + $0x28] sm:$0xff]   ;;  %v298_v40 = vunpack.c.0.s8 %v297_v37 }
   0x4   :  { %v1992_v3 = vld [vmem:[%s2628_s1 + $0xb8] sm:$0xff]   ;;  %1788 = vmatpush3.bf16.msra.mxu0 %v1991_v2  ;;  %v1996_v7 = vld [vmem:[%s2628_s1 + $0xb0] sm:$0xff]   ;;  %v2000_v11 = vld [vmem:[%s2628_s1 + $0xa8] sm:$0xff]  }
   0x5   :  { %1810 = vmatpush3.bf16.msra.mxu1 %v1992_v3  ;;  %1789 = vmatprep.subr.bf16.mxu0 %v1993_v4  ;;  %v2001_v12 = vld [vmem:[%s2628_s1 + $0x60] sm:$0xff]   ;;  %v2005_v16 = vld [vmem:[%s2628_s1 + $0x58] sm:$0xff]   ;;  %v2009_v20 = vld [vmem:[%s2628_s1 + $0x50] sm:$0xff]   ;;  %v2294_v41 = vsub.s32 %v298_v40, %v300_v33 }
   0x6   :  { %1811 = vmatprep.subr.bf16.mxu1 %v1994_v5  ;;  %v2002_v13 = vld [vmem:[%s2628_s1 + $0xe0] sm:$0xff]   ;;  %v2006_v17 = vld [vmem:[%s2628_s1 + $0xd8] sm:$0xff]   ;;  %v2010_v21 = vld [vmem:[%s2628_s1 + $0xd0] sm:$0xff]  }
   0x7   :  { %v2003_v14 = vld [vmem:[%s2628_s1 + $0x20] sm:$0xff]   ;;  %v2007_v18 = vld [vmem:[%s2628_s1 + $0x18] sm:$0xff]   ;;  %v2011_v22 = vld [vmem:[%s2628_s1 + $0x10] sm:$0xff]  }
   0x8   :  { %1790 = vmatpush3.bf16.msra.mxu0 %v1995_v6  ;;  %v2004_v15 = vld [vmem:[%s2628_s1 + $0xa0] sm:$0xff]   ;;  %v2008_v19 = vld [vmem:[%s2628_s1 + $0x98] sm:$0xff]   ;;  %v2012_v23 = vld [vmem:[%s2628_s1 + $0x90] sm:$0xff]  }
   0x9   :  { %1812 = vmatpush3.bf16.msra.mxu1 %v1996_v7  ;;  %1791 = vmatprep.subr.bf16.mxu0 %v1997_v8  ;;  %v2013_v24 = vld [vmem:[%s2628_s1 + $0x48] sm:$0xff]   ;;  %v2017_v29 = vld [vmem:[%s2628_s1 + $0x40] sm:$0xff]   ;;  %v2022_v35 = vld [vmem:[%s2628_s1 + $0x178] sm:$0xff]  }
   0xa   :  { %1813 = vmatprep.subr.bf16.mxu1 %v1998_v9  ;;  %v2014_v25 = vld [vmem:[%s2628_s1 + $0xc8] sm:$0xff]   ;;  %v2018_v30 = vld [vmem:[%s2628_s1 + $0xc0] sm:$0xff]   ;;  %v2023_v38 = vld [vmem:[%s2628_s1 + $0x1f8] sm:$0xff]  }
   0xb   :  { %v2015_v26 = vld [vmem:[%s2628_s1 + $0x8] sm:$0xff]   ;;  %v2019_v31 = vld [vmem:[%s2628_s1] sm:$0xff]   ;;  %v2024_v47 = vld [vmem:[%s2628_s1 + $0x138] sm:$0xff]  }
   0xc   :  { %1792 = vmatpush3.bf16.msra.mxu0 %v1999_v10  ;;  %v2016_v27 = vld [vmem:[%s2628_s1 + $0x88] sm:$0xff]   ;;  %v2020_v32 = vld [vmem:[%s2628_s1 + $0x80] sm:$0xff]   ;;  %v2025_v49 = vld [vmem:[%s2628_s1 + $0x1b8] sm:$0xff]  }
   0xd   :  { %1814 = vmatpush3.bf16.msra.mxu1 %v2000_v11  ;;  %1793 = vmatprep.subr.bf16.mxu0 %v2001_v12  ;;  %v28_v34 = vld [vmem:[%s2627_s0] sm:$0xff]  ;;  %v2026_v52 = vld [vmem:[%s2628_s1 + $0x170] sm:$0xff]   ;;  %v2030_v58 = vld [vmem:[%s2628_s1 + $0x168] sm:$0xff]  }
   0xe   :  { %1815 = vmatprep.subr.bf16.mxu1 %v2002_v13  ;;  %v295_v39 = vcombine.high %v28_v34, %v28_v34  ;;  %v302_v42 = vrot.slane %v28_v34, %v2294_v41  ;;  %v2027_v54 = vld [vmem:[%s2628_s1 + $0x1f0] sm:$0xff]   ;;  %v2031_v59 = vld [vmem:[%s2628_s1 + $0x1e8] sm:$0xff]   ;;  %v2034_v62 = vld [vmem:[%s2628_s1 + $0x160] sm:$0xff]  }
   0xf   :  { %v2028_v55 = vld [vmem:[%s2628_s1 + $0x130] sm:$0xff]   ;;  %v2032_v60 = vld [vmem:[%s2628_s1 + $0x128] sm:$0xff]   ;;  %v2035_v63 = vld [vmem:[%s2628_s1 + $0x1e0] sm:$0xff]  }
  0x10   :  { %1794 = vmatpush3.bf16.msra.mxu0 %v2003_v14  ;;  %v2298_v43 = vrot.slane %v295_v39, %v2294_v41  ;;  %v310_v44 = vcombine.high %v302_v42, %v302_v42  ;;  %v318_v45 = vrot.slane %v302_v42, %v2294_v41  ;;  %v2029_v57 = vld [vmem:[%s2628_s1 + $0x1b0] sm:$0xff]   ;;  %v2033_v61 = vld [vmem:[%s2628_s1 + $0x1a8] sm:$0xff]   ;;  %v2036_v0 = vld [vmem:[%s2628_s1 + $0x120] sm:$0xff]  }
  0x11   :  { %1816 = vmatpush3.bf16.msra.mxu1 %v2004_v15  ;;  %1795 = vmatprep.subr.bf16.mxu0 %v2005_v16  ;;  %v2037_v1 = vld [vmem:[%s2628_s1 + $0x1a0] sm:$0xff]   ;;  %v2038_v2 = vld [vmem:[%s2628_s1 + $0x158] sm:$0xff]   ;;  %v2042_v6 = vld [vmem:[%s2628_s1 + $0x150] sm:$0xff]  }
  0x12   :  { %1817 = vmatprep.subr.bf16.mxu1 %v2006_v17  ;;  %v311_v46 = vcombine.high %v2298_v43, %v2298_v43  ;;  %v332_v48 = vrot.slane %v310_v44, %v2294_v41  ;;  %v340_v51 = vcombine.high %v318_v45, %v318_v45  ;;  %v2039_v3 = vld [vmem:[%s2628_s1 + $0x1d8] sm:$0xff]   ;;  %v2043_v7 = vld [vmem:[%s2628_s1 + $0x1d0] sm:$0xff]   ;;  %v2046_v10 = vld [vmem:[%s2628_s1 + $0x148] sm:$0xff]  }
  0x13   :  { %v2040_v4 = vld [vmem:[%s2628_s1 + $0x118] sm:$0xff]   ;;  %v2044_v8 = vld [vmem:[%s2628_s1 + $0x110] sm:$0xff]   ;;  %v2047_v11 = vld [vmem:[%s2628_s1 + $0x1c8] sm:$0xff]  }
  0x14   :  { %1796 = vmatpush3.bf16.msra.mxu0 %v2007_v18  ;;  %v339_v50 = vrot.slane %v311_v46, %v2294_v41  ;;  %1209 = vmatprep.mubr.bf16.mxu0 %v332_v48  ;;  %v342_v53 = vcombine.high %v332_v48, %v332_v48  ;;  %v2041_v5 = vld [vmem:[%s2628_s1 + $0x198] sm:$0xff]   ;;  %v2045_v9 = vld [vmem:[%s2628_s1 + $0x190] sm:$0xff]   ;;  %v2048_v12 = vld [vmem:[%s2628_s1 + $0x108] sm:$0xff]   ;;  %v325_v18 = vrot.slane %v2298_v43, %v2294_v41 }
  0x15   :  { %1818 = vmatpush3.bf16.msra.mxu1 %v2008_v19  ;;  %1797 = vmatprep.subr.bf16.mxu0 %v2009_v20  ;;  %v2049_v13 = vld [vmem:[%s2628_s1 + $0x188] sm:$0xff]   ;;  %v2050_v14 = vld [vmem:[%s2628_s1 + $0x140] sm:$0xff]   ;;  %v2054_v19 = vld [vmem:[%s2628_s1 + $0x278] sm:$0xff]  }
  0x16   :  { %1819 = vmatprep.subr.bf16.mxu1 %v2010_v21  ;;  %v343_v56 = vcombine.high %v339_v50, %v339_v50  ;;  %1249 = vmatprep.mubr.bf16.mxu1 %v342_v53  ;;  %v2051_v15 = vld [vmem:[%s2628_s1 + $0x1c0] sm:$0xff]   ;;  %v2055_v20 = vld [vmem:[%s2628_s1 + $0x2f8] sm:$0xff]   ;;  %v2062_v28 = vld [vmem:[%s2628_s1 + $0x268] sm:$0xff]  }
  0x17   :  { %v2052_v16 = vld [vmem:[%s2628_s1 + $0x100] sm:$0xff]   ;;  %v2056_v21 = vld [vmem:[%s2628_s1 + $0x238] sm:$0xff]   ;;  %v2074_v40 = vld [vmem:[%s2628_s1 + $0x250] sm:$0xff]  }
  0x18   :  { %1798 = vmatpush3.bf16.msra.mxu0 %v2011_v22  ;;  %v2053_v17 = vld [vmem:[%s2628_s1 + $0x180] sm:$0xff]   ;;  %v2057_v22 = vld [vmem:[%s2628_s1 + $0x2b8] sm:$0xff]   ;;  %v2075_v42 = vld [vmem:[%s2628_s1 + $0x2d0] sm:$0xff]  }
  0x19   :  { %1820 = vmatpush3.bf16.msra.mxu1 %v2012_v23  ;;  %1799 = vmatprep.subr.bf16.mxu0 %v2013_v24  ;;  %v341_v23 = vcombine.high %v325_v18, %v325_v18  ;;  %v2058_v24 = vld [vmem:[%s2628_s1 + $0x270] sm:$0xff]   ;;  %v2067_v33 = vld [vmem:[%s2628_s1 + $0x2e0] sm:$0xff]   ;;  %v2070_v36 = vld [vmem:[%s2628_s1 + $0x258] sm:$0xff]  }
  0x1a   :  { %1821 = vmatprep.subr.bf16.mxu1 %v2014_v25  ;;  %v2059_v25 = vld [vmem:[%s2628_s1 + $0x2f0] sm:$0xff]   ;;  %v2068_v34 = vld [vmem:[%s2628_s1 + $0x220] sm:$0xff]   ;;  %v2071_v37 = vld [vmem:[%s2628_s1 + $0x2d8] sm:$0xff]  }
  0x1b   :  { %v2073_v39 = vld [vmem:[%s2628_s1 + $0x298] sm:$0xff]   ;;  %v2076_v43 = vld [vmem:[%s2628_s1 + $0x210] sm:$0xff]   ;;  %v29_v46 = vld [vmem:[%s2627_s0 + $0x8] sm:$0xff] }
  0x1c   :  { %1800 = vmatpush3.bf16.msra.mxu0 %v2015_v26  ;;  %v2060_v26 = vld [vmem:[%s2628_s1 + $0x230] sm:$0xff]   ;;  %v351_v48 = vrot.slane %v29_v46, %v2294_v41 }
  0x1d   :  { %1822 = vmatpush3.bf16.msra.mxu1 %v2016_v27  ;;  %1801 = vmatprep.subr.bf16.mxu0 %v2017_v29  ;;  %v2061_v27 = vld [vmem:[%s2628_s1 + $0x2b0] sm:$0xff]   ;;  %v2063_v29 = vld [vmem:[%s2628_s1 + $0x2e8] sm:$0xff]  }
  0x1e   :  { %1823 = vmatprep.subr.bf16.mxu1 %v2018_v30  ;;  %v2064_v30 = vld [vmem:[%s2628_s1 + $0x228] sm:$0xff]   ;;  %v2077_v44 = vld [vmem:[%s2628_s1 + $0x290] sm:$0xff]  }
  0x20   :  { %1802 = vmatpush3.bf16.msra.mxu0 %v2019_v31  ;;  %v2065_v31 = vld [vmem:[%s2628_s1 + $0x2a8] sm:$0xff]  }
  0x21   :  { %1824 = vmatpush3.bf16.msra.mxu1 %v2020_v32  ;;  %1831 = vmatprep.subr.bf16.mxu0 %v2022_v35  ;;  %v2066_v32 = vld [vmem:[%s2628_s1 + $0x260] sm:$0xff]  }
  0x22   :  { %1853 = vmatprep.subr.bf16.mxu1 %v2023_v38  ;;  %v2069_v35 = vld [vmem:[%s2628_s1 + $0x2a0] sm:$0xff]   ;;  %v2072_v38 = vld [vmem:[%s2628_s1 + $0x218] sm:$0xff]  }
  0x23   :  { %1210 = vmatmul.mubr.bf16.vlgmr.msra.gmra.mxu0 %v318_v45  ;;  %v2078_v45 = vld [vmem:[%s2628_s1 + $0x248] sm:$0xff]  }
  0x24   :  { %1832 = vmatpush3.bf16.msra.mxu0 %v2024_v47  ;;  %1250 = vmatmul.mubr.bf16.vlgmr.msra.gmra.mxu1 %v340_v51  ;;  %v2079_v47 = vld [vmem:[%s2628_s1 + $0x2c8] sm:$0xff]  }
  0x25   :  { %1833 = vmatprep.subr.bf16.mxu0 %v2026_v52  ;;  %1854 = vmatpush3.bf16.msra.mxu1 %v2025_v49  ;;  %v344_v49 = vcombine.high %v29_v46, %v29_v46  ;;  %v2081_v51 = vld [vmem:[%s2628_s1 + $0x288] sm:$0xff]   ;;  %v359_v52 = vcombine.high %v351_v48, %v351_v48 }
  0x26   :  { %1289 = vmatprep.mubr.bf16.mxu0 %v339_v50  ;;  %1855 = vmatprep.subr.bf16.mxu1 %v2027_v54  ;;  %v2080_v50 = vld [vmem:[%s2628_s1 + $0x208] sm:$0xff]   ;;  %v2082_v54 = vld [vmem:[%s2628_s1 + $0x240] sm:$0xff]  }
  0x27   :  { %1329 = vmatprep.mubr.bf16.mxu1 %v343_v56  ;;  %v2486_v53 = vrot.slane %v344_v49, %v2294_v41  ;;  %v381_v56 = vrot.slane %v359_v52, %v2294_v41 }
  0x28   :  { %1834 = vmatpush3.bf16.msra.mxu0 %v2028_v55  ;;  %v2083_v55 = vld [vmem:[%s2628_s1 + $0x2c0] sm:$0xff]  }
  0x29   :  { %1835 = vmatprep.subr.bf16.mxu0 %v2030_v58  ;;  %1856 = vmatpush3.bf16.msra.mxu1 %v2029_v57  ;;  %v360_v57 = vcombine.high %v2486_v53, %v2486_v53  ;;  %v2084_v58 = vld [vmem:[%s2628_s1 + $0x200] sm:$0xff]  }
  0x2a   :  { %1857 = vmatprep.subr.bf16.mxu1 %v2031_v59  ;;  %v2085_v59 = vld [vmem:[%s2628_s1 + $0x280] sm:$0xff]  }
  0x2c   :  { %1836 = vmatpush3.bf16.msra.mxu0 %v2032_v60  ;;  %v391_v60 = vcombine.high %v381_v56, %v381_v56 }
  0x2d   :  { %1837 = vmatprep.subr.bf16.mxu0 %v2034_v62  ;;  %1858 = vmatpush3.bf16.msra.mxu1 %v2033_v61  ;;  %v367_v61 = vrot.slane %v351_v48, %v2294_v41  ;;  %v2086_v62 = vld [vmem:[%s2628_s1 + $0x378] sm:$0xff]  }
  0x2e   :  { %1859 = vmatprep.subr.bf16.mxu1 %v2035_v63  ;;  %v2087_v63 = vld [vmem:[%s2628_s1 + $0x3f8] sm:$0xff]  }
  0x30   :  { %1838 = vmatpush3.bf16.msra.mxu0 %v2036_v0  ;;  %v388_v0 = vrot.slane %v360_v57, %v2294_v41 }
  0x31   :  { %1839 = vmatprep.subr.bf16.mxu0 %v2038_v2  ;;  %1860 = vmatpush3.bf16.msra.mxu1 %v2037_v1  ;;  %v2088_v1 = vld [vmem:[%s2628_s1 + $0x338] sm:$0xff]  }
  0x32   :  { %1861 = vmatprep.subr.bf16.mxu1 %v2039_v3  ;;  %v2089_v2 = vld [vmem:[%s2628_s1 + $0x3b8] sm:$0xff]   ;;  %v389_v3 = vcombine.high %v367_v61, %v367_v61 }
  0x34   :  { %1840 = vmatpush3.bf16.msra.mxu0 %v2040_v4  ;;  %v2090_v4 = vld [vmem:[%s2628_s1 + $0x370] sm:$0xff]  }
  0x35   :  { %1841 = vmatprep.subr.bf16.mxu0 %v2042_v6  ;;  %1862 = vmatpush3.bf16.msra.mxu1 %v2041_v5  ;;  %v2091_v5 = vld [vmem:[%s2628_s1 + $0x3f0] sm:$0xff]   ;;  %v392_v6 = vcombine.high %v388_v0, %v388_v0 }
  0x36   :  { %1863 = vmatprep.subr.bf16.mxu1 %v2043_v7  ;;  %v2092_v7 = vld [vmem:[%s2628_s1 + $0x330] sm:$0xff]  }
  0x38   :  { %1842 = vmatpush3.bf16.msra.mxu0 %v2044_v8  ;;  %v2093_v8 = vld [vmem:[%s2628_s1 + $0x3b0] sm:$0xff]  }
  0x39   :  { %1843 = vmatprep.subr.bf16.mxu0 %v2046_v10  ;;  %1864 = vmatpush3.bf16.msra.mxu1 %v2045_v9  ;;  %v2094_v9 = vld [vmem:[%s2628_s1 + $0x368] sm:$0xff]  }
  0x3a   :  { %1865 = vmatprep.subr.bf16.mxu1 %v2047_v11  ;;  %v2095_v10 = vld [vmem:[%s2628_s1 + $0x3e8] sm:$0xff]  }
  0x3b   :  { %v2096_v11 = vld [vmem:[%s2628_s1 + $0x328] sm:$0xff]  }
  0x3c   :  { %1844 = vmatpush3.bf16.msra.mxu0 %v2048_v12  ;;  %v2097_v12 = vld [vmem:[%s2628_s1 + $0x3a8] sm:$0xff]  }
  0x3d   :  { %1845 = vmatprep.subr.bf16.mxu0 %v2050_v14  ;;  %1866 = vmatpush3.bf16.msra.mxu1 %v2049_v13  ;;  %v2098_v13 = vld [vmem:[%s2628_s1 + $0x360] sm:$0xff]  }
  0x3e   :  { %1867 = vmatprep.subr.bf16.mxu1 %v2051_v15  ;;  %v2099_v14 = vld [vmem:[%s2628_s1 + $0x3e0] sm:$0xff]  }
  0x3f   :  { %v2100_v15 = vld [vmem:[%s2628_s1 + $0x320] sm:$0xff]  }
  0x40   :  { %1846 = vmatpush3.bf16.msra.mxu0 %v2052_v16  ;;  %v2101_v16 = vld [vmem:[%s2628_s1 + $0x3a0] sm:$0xff]  }
  0x41   :  { %1875 = vmatprep.subr.bf16.mxu0 %v2054_v19  ;;  %1868 = vmatpush3.bf16.msra.mxu1 %v2053_v17  ;;  %v2102_v17 = vld [vmem:[%s2628_s1 + $0x358] sm:$0xff]  }
  0x42   :  { %1897 = vmatprep.subr.bf16.mxu1 %v2055_v20  ;;  %v2104_v19 = vld [vmem:[%s2628_s1 + $0x318] sm:$0xff]  }
  0x43   :  { %1290 = vmatmul.mubr.bf16.vlgmr.msra.gmra.mxu0 %v325_v18  ;;  %v2103_v18 = vld [vmem:[%s2628_s1 + $0x3d8] sm:$0xff]  }
  0x44   :  { %1876 = vmatpush3.bf16.msra.mxu0 %v2056_v21  ;;  %1330 = vmatmul.mubr.bf16.vlgmr.msra.gmra.mxu1 %v341_v23  ;;  %v2105_v20 = vld [vmem:[%s2628_s1 + $0x398] sm:$0xff]   ;;  %v2106_v21 = vld [vmem:[%s2628_s1 + $0x350] sm:$0xff]  }
  0x45   :  { %1877 = vmatprep.subr.bf16.mxu0 %v2058_v24  ;;  %1898 = vmatpush3.bf16.msra.mxu1 %v2057_v22  ;;  %v2107_v22 = vld [vmem:[%s2628_s1 + $0x3d0] sm:$0xff]  }
  0x46   :  { %1899 = vmatprep.subr.bf16.mxu1 %v2059_v25  ;;  %1369 = vmatprep.mubr.bf16.mxu0 %v381_v56  ;;  %v2108_v23 = vld [vmem:[%s2628_s1 + $0x310] sm:$0xff]   ;;  %v2110_v25 = vld [vmem:[%s2628_s1 + $0x348] sm:$0xff]  }
  0x47   :  { %1409 = vmatprep.mubr.bf16.mxu1 %v391_v60  ;;  %v2109_v24 = vld [vmem:[%s2628_s1 + $0x390] sm:$0xff]  }
  0x48   :  { %1878 = vmatpush3.bf16.msra.mxu0 %v2060_v26  ;;  %v2111_v26 = vld [vmem:[%s2628_s1 + $0x3c8] sm:$0xff]  }
  0x49   :  { %1879 = vmatprep.subr.bf16.mxu0 %v2062_v28  ;;  %1900 = vmatpush3.bf16.msra.mxu1 %v2061_v27  ;;  %v2112_v27 = vld [vmem:[%s2628_s1 + $0x308] sm:$0xff]  }
  0x4a   :  { %1901 = vmatprep.subr.bf16.mxu1 %v2063_v29 }
  0x4c   :  { %1880 = vmatpush3.bf16.msra.mxu0 %v2064_v30 }
  0x4d   :  { %1881 = vmatprep.subr.bf16.mxu0 %v2066_v32  ;;  %1902 = vmatpush3.bf16.msra.mxu1 %v2065_v31 }
  0x4e   :  { %1903 = vmatprep.subr.bf16.mxu1 %v2067_v33 }
  0x50   :  { %1882 = vmatpush3.bf16.msra.mxu0 %v2068_v34 }
  0x51   :  { %1883 = vmatprep.subr.bf16.mxu0 %v2070_v36  ;;  %1904 = vmatpush3.bf16.msra.mxu1 %v2069_v35 }
  0x52   :  { %1905 = vmatprep.subr.bf16.mxu1 %v2071_v37 }
  0x54   :  { %1884 = vmatpush3.bf16.msra.mxu0 %v2072_v38 }
  0x55   :  { %1885 = vmatprep.subr.bf16.mxu0 %v2074_v40  ;;  %1906 = vmatpush3.bf16.msra.mxu1 %v2073_v39 }
  0x56   :  { %1907 = vmatprep.subr.bf16.mxu1 %v2075_v42 }
  0x58   :  { %1886 = vmatpush3.bf16.msra.mxu0 %v2076_v43 }
  0x59   :  { %1887 = vmatprep.subr.bf16.mxu0 %v2078_v45  ;;  %1908 = vmatpush3.bf16.msra.mxu1 %v2077_v44 }
  0x5a   :  { %1909 = vmatprep.subr.bf16.mxu1 %v2079_v47 }
  0x5c   :  { %1888 = vmatpush3.bf16.msra.mxu0 %v2080_v50 }
  0x5d   :  { %1889 = vmatprep.subr.bf16.mxu0 %v2082_v54  ;;  %1910 = vmatpush3.bf16.msra.mxu1 %v2081_v51 }
  0x5e   :  { %1911 = vmatprep.subr.bf16.mxu1 %v2083_v55 }
  0x60   :  { %1890 = vmatpush3.bf16.msra.mxu0 %v2084_v58 }
  0x61   :  { %1919 = vmatprep.subr.bf16.mxu0 %v2086_v62  ;;  %1912 = vmatpush3.bf16.msra.mxu1 %v2085_v59 }
  0x62   :  { %1941 = vmatprep.subr.bf16.mxu1 %v2087_v63 }
  0x63   :  { %1370 = vmatmul.mubr.bf16.vlgmr.msra.gmra.mxu0 %v367_v61 }
  0x64   :  { %1920 = vmatpush3.bf16.msra.mxu0 %v2088_v1  ;;  %1449 = vmatprep.mubr.bf16.mxu0 %v388_v0 }
  0x65   :  { %1410 = vmatmul.mubr.bf16.vlgmr.msra.gmra.mxu1 %v389_v3  ;;  %1921 = vmatprep.subr.bf16.mxu0 %v2090_v4 }
  0x66   :  { %1942 = vmatpush3.bf16.msra.mxu1 %v2089_v2  ;;  %1489 = vmatprep.mubr.bf16.mxu1 %v392_v6 }
  0x67   :  { %1943 = vmatprep.subr.bf16.mxu1 %v2091_v5 }
  0x68   :  { %1922 = vmatpush3.bf16.msra.mxu0 %v2092_v7 }
  0x69   :  { %1923 = vmatprep.subr.bf16.mxu0 %v2094_v9 }
  0x6a   :  { %1944 = vmatpush3.bf16.msra.mxu1 %v2093_v8 }
  0x6b   :  { %1945 = vmatprep.subr.bf16.mxu1 %v2095_v10 }
  0x6c   :  { %1924 = vmatpush3.bf16.msra.mxu0 %v2096_v11 }
  0x6d   :  { %1925 = vmatprep.subr.bf16.mxu0 %v2098_v13 }
  0x6e   :  { %1946 = vmatpush3.bf16.msra.mxu1 %v2097_v12 }
  0x6f   :  { %1947 = vmatprep.subr.bf16.mxu1 %v2099_v14 }
  0x70   :  { %1926 = vmatpush3.bf16.msra.mxu0 %v2100_v15 }
  0x71   :  { %1927 = vmatprep.subr.bf16.mxu0 %v2102_v17 }
  0x72   :  { %1948 = vmatpush3.bf16.msra.mxu1 %v2101_v16 }
  0x73   :  { %1949 = vmatprep.subr.bf16.mxu1 %v2103_v18 }
  0x74   :  { %1928 = vmatpush3.bf16.msra.mxu0 %v2104_v19 }
  0x75   :  { %1929 = vmatprep.subr.bf16.mxu0 %v2106_v21 }
  0x76   :  { %1950 = vmatpush3.bf16.msra.mxu1 %v2105_v20 }
  0x77   :  { %1951 = vmatprep.subr.bf16.mxu1 %v2107_v22 }
  0x78   :  { %1930 = vmatpush3.bf16.msra.mxu0 %v2108_v23 }
  0x79   :  { %12 = vsyncpa [#allocation3], 0  ;;  %1931 = vmatprep.subr.bf16.mxu0 %v2110_v25  ;;  %v2114_v28 = vld [vmem:[%s2628_s1 + $0x340] sm:$0xff]   ;;  %v2113_v29 = vld [vmem:[%s2628_s1 + $0x388] sm:$0xff]   ;;  %v374_v32 = vrot.slane %v2486_v53, %v2294_v41  ;;  %v2146_v36 = vmov 0.0   ;;  %vm2147_vm0 = vmmov 0  }
  0x7a   :  { %1952 = vmatpush3.bf16.msra.mxu1 %v2109_v24  ;;  %v2115_v30 = vld [vmem:[%s2628_s1 + $0x3c0] sm:$0xff]   ;;  %v2119_v35 = vld [vmem:[%s2630_s3 + $0x8] sm:$0xff]   ;;  %vm1522_vm1 = vcmask 261120   ;;  %s2148_s15 = smov [#allocation2]   ;;  %vm1634_vm2 = vcmask 58368  }
  0x7b   :  { %1953 = vmatprep.subr.bf16.mxu1 %v2111_v26  ;;  %v2116_v31 = vld [vmem:[%s2628_s1 + $0x300] sm:$0xff]   ;;  %v390_v34 = vcombine.high %v374_v32, %v374_v32  ;;  %v2121_v37 = vld [vmem:[%s2632_s5 + $0x8] sm:$0xff]   ;;  %s1642_s16 = sshll.u32 %s2148_s15, 4  ;;  %s1643_s16 = int_to_ptr.vmem [resolvable:$true] %s1642_s16 }
  0x7c   :  { %1932 = vmatpush3.bf16.msra.mxu0 %v2112_v27  ;;  %v2117_v33 = vld [vmem:[%s2628_s1 + $0x380] sm:$0xff]   ;;  %p2128_p1 = scmp.lt.s32.totalorder %s1643_s16, %s1643_s16 }
  0x7d   :  { %1933 = vmatprep.subr.bf16.mxu0 %v2114_v28  ;;  %v2120_v41 = vld [vmem:[%s2630_s3] sm:$0xff]  }
  0x7e   :  { %1954 = vmatpush3.bf16.msra.mxu1 %v2113_v29  ;;  %v1650_v40 = vld [vmem:[%s2629_s2] ss:$0 sm:$0xff] }
  0x7f   :  { %1955 = vmatprep.subr.bf16.mxu1 %v2115_v30  ;;  %v2122_v26 = vld [vmem:[%s2632_s5] sm:$0xff]  }
  0x80   :  { %1934 = vmatpush3.bf16.msra.mxu0 %v2116_v31  ;;  %v1779_v27 = vld [vmem:[%s2631_s4] ss:$0 sm:$0xff]  ;;  %s2123_s4 = scalar_lea.vmem %s1643_s16, 32 }
  0x81   :  { %1969 = vmatprep.subr.bf16.mxu0 %v2146_v36  ;;  %p2124_p0 = scmp.ne.s32.totalorder %s1643_s16, %s2123_s4  ;;  %p2129_p2 = scmp.lt.s32.totalorder %s2123_s4, %s2123_s4 }
  0x82   :  { %1956 = vmatpush3.bf16.msra.mxu1 %v2117_v33 }
  0x83   :  { %1450 = vmatmul.mubr.bf16.vlgmr.msra.gmra.mxu0 %v374_v32  ;;  %1977 = vmatprep.subr.bf16.mxu1 %v2146_v36  ;;  %p2130_p3 = por %p2129_p2, %p2128_p1 }
  0x84   :  { %1970 = vmatpush3.bf16.msra.mxu0 %v2119_v35  ;;  %1973 = vmatprep.mubr.msk.bf16.mxu0 %vm2147_vm0, %v2146_v36  ;;  %v1783_v35 = vld [vmem:[%s2633_s6] ss:$0 sm:$0xff] }
  0x85   :  { %1490 = vmatmul.mubr.bf16.vlgmr.msra.gmra.mxu1 %v390_v34  ;;  %1971 = vmatprep.subr.bf16.mxu0 %v2146_v36  ;;  %p2131_p4 = pnand %p2130_p3, %p2124_p0 }
  0x86   :  { %1981 = vmatprep.mubr.msk.bf16.mxu1 %vm2147_vm0, %v2146_v36  ;;  %1978 = vmatpush3.bf16.msra.mxu1 %v2121_v37 }
  0x87   :  { %1979 = vmatprep.subr.bf16.mxu1 %v2146_v36 }
  0x88   :  { %1972 = vmatpush3.bf16.msra.mxu0 %v2120_v41 }
  0x8a   :  { %1980 = vmatpush3.bf16.msra.mxu1 %v2122_v26 }
  0xe3   :  { %v1803_v38 = vpop.f32.mrf.mxu0 }
  0xe4   :  { %v1825_v39 = vpop.f32.mrf.mxu1 }
  0xe5   :  { %v1804_v42 = vpop.f32.mrf.mxu0 }
  0xe6   :  { %v1805_v43 = vadd.f32 %v1804_v42, %v1803_v38  ;;  %v1826_v44 = vpop.f32.mrf.mxu1 }
  0xe7   :  { %v1806_v45 = vpop.f32.mrf.mxu0  ;;  %v1827_v47 = vadd.f32 %v1826_v44, %v1825_v39 }
  0xe8   :  { %v1212_v46 = vadd.f32 %v1805_v43, %v1650_v40  ;;  %v1828_v48 = vpop.f32.mrf.mxu1 }
  0xe9   :  { %v1807_v49 = vpop.f32.mrf.mxu0 }
  0xea   :  { %v1252_v50 = vadd.f32 %v1827_v47, %v1212_v46  ;;  %v1829_v51 = vpop.f32.mrf.mxu1 }
 0x103   :  { %v1847_v52 = vpop.f32.mrf.mxu0 }
 0x104   :  { %v1869_v53 = vpop.f32.mrf.mxu1 }
 0x105   :  { %v1848_v54 = vpop.f32.mrf.mxu0 }
 0x106   :  { %v1870_v55 = vpop.f32.mrf.mxu1  ;;  %v1849_v4 = vadd.f32 %v1848_v54, %v1847_v52 }
 0x107   :  { %v1850_v56 = vpop.f32.mrf.mxu0  ;;  %v1871_v6 = vadd.f32 %v1870_v55, %v1869_v53 }
 0x108   :  { %v1872_v57 = vpop.f32.mrf.mxu1  ;;  %v1292_v5 = vadd.f32 %v1849_v4, %v1252_v50 }
 0x109   :  { %v1851_v58 = vpop.f32.mrf.mxu0 }
 0x10a   :  { %v1873_v59 = vpop.f32.mrf.mxu1  ;;  %v1332_v8 = vadd.f32 %v1871_v6, %v1292_v5 }
 0x123   :  { %v1891_v60 = vpop.f32.mrf.mxu0 }
 0x125   :  { %v1913_v61 = vpop.f32.mrf.mxu1  ;;  %v1892_v62 = vpop.f32.mrf.mxu0 }
 0x126   :  { %v1893_v7 = vadd.f32 %v1892_v62, %v1891_v60 }
 0x127   :  { %v1914_v63 = vpop.f32.mrf.mxu1  ;;  %v1894_v0 = vpop.f32.mrf.mxu0 }
 0x128   :  { %v1372_v9 = vadd.f32 %v1893_v7, %v1332_v8  ;;  %v1915_v10 = vadd.f32 %v1914_v63, %v1913_v61 }
 0x129   :  { %v1916_v1 = vpop.f32.mrf.mxu1  ;;  %v1895_v2 = vpop.f32.mrf.mxu0 }
 0x12a   :  { %v1412_v14 = vadd.f32 %v1915_v10, %v1372_v9 }
 0x12b   :  { %v1917_v3 = vpop.f32.mrf.mxu1 }
 0x143   :  { %v1935_v11 = vpop.f32.mrf.mxu0 }
 0x145   :  { %v1957_v12 = vpop.f32.mrf.mxu1  ;;  %v1936_v13 = vpop.f32.mrf.mxu0 }
 0x146   :  { %v1937_v15 = vadd.f32 %v1936_v13, %v1935_v11 }
 0x147   :  { %v1958_v16 = vpop.f32.mrf.mxu1  ;;  %v1938_v17 = vpop.f32.mrf.mxu0 }
 0x148   :  { %v1452_v18 = vadd.f32 %v1937_v15, %v1412_v14  ;;  %v1959_v19 = vadd.f32 %v1958_v16, %v1957_v12 }
 0x149   :  { %v1960_v20 = vpop.f32.mrf.mxu1  ;;  %v1939_v21 = vpop.f32.mrf.mxu0 }
 0x14a   :  { %v1492_v22 = vadd.f32 %v1959_v19, %v1452_v18 }
 0x14b   :  { %v1961_v23 = vpop.f32.mrf.mxu1 }
 0x14c   :  { %v1497_v24 = vmax.f32 %v1492_v22, 0.0 }
 0x14e   :  { %v1498_v25 = vpack.c.bf16 %v1497_v24, %v1497_v24 }
 0x150   :  { %1974 = vmatmul.mubr.msk.bf16.vlgmr.msra.gmra.mxu0 %vm1522_vm1, %v1498_v25 }
 0x210   :  { %v1560_v28 = vpop.f32.mrf.mxu0 }
 0x211   :  { %v1561_v29 = vadd.f32 %v1779_v27, %v1560_v28 }
 0x212   :  { %v1975_v30 = vpop.f32.mrf.mxu0 }
 0x213   :  { %v1566_v31 = vmax.f32 %v1561_v29, 0.0 }
 0x214   :  { %v1563_v32 = vpop.f32.mrf.mxu0 }
 0x215   :  { %v1567_v33 = vpack.c.bf16 %v1566_v31, %v1566_v31 }
 0x216   :  { %v1976_v34 = vpop.f32.mrf.mxu0 }
 0x217   :  { %1982 = vmatmul.mubr.msk.bf16.vlgmr.msra.gmra.mxu1 %vm1522_vm1, %v1567_v33 }
 0x2d7   :  { %v1628_v36 = vpop.f32.mrf.mxu1 }
 0x2d8   :  { %v1629_v41 = vadd.f32 %v1783_v35, %v1628_v36 }
 0x2d9   :  { %v1983_v37 = vpop.f32.mrf.mxu1 }
 0x2da   :  { %1635 = vst.msk [vmem:[#allocation2] sm:$0x3] %vm1634_vm2, %v1629_v41 }
 0x2db   :  { %v1631_v38 = vpop.f32.mrf.mxu1 }
 0x2dc   :  { %2134 = shalt.err (!%p2131_p4)
}
 0x2dd   :  { %1645 = dma.vmem_to_hbm [thread:$0]  %s1643_s16, 32, %s2634_s7, [#allocation3]   ;;  %v1984_v39 = vpop.f32.mrf.mxu1 }
 0x2de   :  { %2143 = dma.done.wait [#allocation3], 32  }
 0x2df   :  { %2144 = vsyncadd [#allocation3], 4294967264 }
 0x2e0   :  { %1649 = vsyncpa [#allocation3], 1 }

// kernel: single_predictor_forward.2
= control target key start
LH: loop header
LB: loop body
LE: loop exit
PB: predicated region body
PF: predicated region fallthrough
CT: control target
= control target key end

     0   :  { %s6802_s21 = smov 0   ;;  %s8917_s0 = inlined_call_operand.vmem [shape: bf16[2,18,18,8], index: 0, kind: input, shape index: {}]   ;;  %s8918_s1 = inlined_call_operand.vmem [shape: bf16[9,64,256], index: 1, kind: input, shape index: {}]   ;;  %s8919_s2 = inlined_call_operand.vmem [shape: bf16[9,8,32], index: 2, kind: input, shape index: {}]   ;;  %s8920_s3 = inlined_call_operand.vmem [shape: f32[1,32], index: 3, kind: input, shape index: {}]   ;;  %s8921_s4 = inlined_call_operand.vmem [shape: bf16[9,32,32], index: 4, kind: input, shape index: {}]   ;;  %s8922_s5 = inlined_call_operand.vmem [shape: f32[1,32], index: 5, kind: input, shape index: {}]   ;;  %s8923_s6 = inlined_call_operand.vmem [shape: bf16[128,32], index: 6, kind: output, shape index: {}]  }
   0x1 LB: > { %s6808_s22 = sadd.s32 4294967295, %s6765_s21   ;;  %p5143_p0 = scmp.ge.s32.totalorder %s6765_s21, 1  ;;  %s6765_s21 = sphi %s6802_s21, %s16_s21  }
   0x2   : > { %p212_p1 = scmp.lt.s32.totalorder %s6765_s21, 3 }
   0x4   : > { %p213_p2 = pnand %p5143_p0, %p212_p1 }
   0x6   : > { %216 = sbr.rel (%p213_p2) target bundleno = 2134 (0x856), region = 44 }
   0xb   : > { %v5147_v0 = vld [vmem:[%s8919_s2 + $0x4] sm:$0xf]  ;;  %vm795_vm0 = vcmask 1043456   ;;  %p242_p3 = scmp.lt.s32.totalorder %s6808_s22, 1  ;;  %v308_v2 = vld [vmem:[%s8919_s2] sm:$0xf] }
   0xc   : > { %6596 = vmatprep.subr.msk.bf16.mxu0 %vm795_vm0, %v5147_v0  ;;  %v797_v1 = vsel %vm795_vm0, %v5147_v0, 0  ;;  %6598 = vmatprep.subr.msk.bf16.mxu1 %vm795_vm0, %v308_v2  ;;  %v6824_v3 = vsel %vm795_vm0, %v308_v2, 0  ;;  %v5261_v4 = vld [vmem:[%s8919_s2 + $0xc] sm:$0xf]  ;;  %vm309_vm1 = vsmask.f32 3328 }
   0xd   : > { %6181 = vmatpush3.bf16.msra.mxu0 %v797_v1  ;;  %s243_s27 = scalar_select %p242_p3, %s6808_s22, 1  ;;  %6595 = vmatpush3.bf16.msra.mxu1 %v6824_v3  ;;  %v6834_v5 = vld [vmem:[%s8919_s2 + $0x8] sm:$0xf]  ;;  %vm310_vm2 = vsmask.f32 7440  ;;  %v6847_v7 = vsel %vm795_vm0, %v5261_v4, 0 }
   0xe   : > { %6597 = vmatprep.subr.msk.bf16.mxu0 %vm795_vm0, %v308_v2  ;;  %6600 = vmatprep.subr.msk.bf16.mxu1 %vm795_vm0, %v5261_v4  ;;  %v6844_v6 = vsel %vm795_vm0, %v6834_v5, 0  ;;  %vm746_vm3 = vcmask 64512   ;;  %vm6888_vm4 = vmor %vm309_vm1, %vm310_vm2  ;;  %vm1268_vm5 = vcmask 1042432   ;;  %vm1269_vm6 = vcmask 1046532   ;;  %s5145_s30 = sshll.u32 %s6808_s22, 3 }
   0xf   : > { %s6606_s8 = smul.u32 216, %s243_s27  ;;  %vm7295_vm7 = vmor %vm1268_vm5, %vm1269_vm6  ;;  %vm3312_vm8 = vcmask 261120   ;;  %p248_p4 = scmp.lt.s32.totalorder %s5145_s30, 15  ;;  %vm5074_vm9 = vcmask 257024  }
  0x11   : > { %s6840_s11 = scalar_lea.vmem %s8917_s0, %s6606_s8  ;;  %s9129_s30 = smov (!%p248_p4, %s5145_s30), 15 }
  0x12   : > { %v6850_v8 = vld [vmem:[%s6840_s11] sm:$0xf]  ;;  %v6853_v9 = vld [vmem:[%s6840_s11 + $0x4] sm:$0xf]  ;;  %v6856_v10 = vld [vmem:[%s6840_s11 + $0x8] sm:$0x1] }
  0x13   : > { %v313_v11 = vshrl.u32 %v6850_v8, 16  ;;  %v316_v12 = vshll.u32 %v6850_v8, 16  ;;  %v322_v13 = vshll.u32 %v6853_v9, 16  ;;  %v326_v14 = vshrl.u32 %v6853_v9, 16  ;;  %v6863_v15 = vld [vmem:[%s6840_s11 + $0xc] sm:$0xf] }
  0x14   : > { %v332_v16 = vshll.u32 %v6856_v10, 16  ;;  %v6868_v18 = vld [vmem:[%s6840_s11 + $0x10] sm:$0xf]  ;;  %v6871_v19 = vld [vmem:[%s6840_s11 + $0x14] sm:$0x1]  ;;  %v337_v26 = vshrl.u32 %v6863_v15, 16 }
  0x15   : > { %v315_v21 = vrot.slane %v313_v11, 4  ;;  %v318_v22 = vrot.slane %v316_v12, 5  ;;  %v324_v23 = vrot.slane %v322_v13, 5  ;;  %v328_v24 = vrot.slane %v326_v14, 4  ;;  %v6881_v33 = vld [vmem:[%s6840_s11 + $0x18] sm:$0xf] }
  0x16   : > { %v334_v25 = vrot.slane %v332_v16, 5  ;;  %v340_v27 = vshll.u32 %v6863_v15, 16  ;;  %v346_v28 = vshll.u32 %v6868_v18, 16  ;;  %v350_v31 = vshrl.u32 %v6868_v18, 16  ;;  %v6884_v34 = vld [vmem:[%s6840_s11 + $0x1c] sm:$0xf] }
  0x17   : > { %v319_v29 = vor.u32 %v318_v22, %v315_v21  ;;  %v329_v30 = vor.u32 %v328_v24, %v324_v23  ;;  %v356_v32 = vshll.u32 %v6871_v19, 16  ;;  %v339_v36 = vrot.slane %v337_v26, 4  ;;  %v6894_v45 = vld [vmem:[%s6840_s11 + $0x20] sm:$0x1]  ;;  %v6905_v53 = vld [vmem:[%s6840_s11 + $0x24] sm:$0xf] }
  0x18   : > { %v342_v37 = vrot.slane %v340_v27, 5  ;;  %v348_v38 = vrot.slane %v346_v28, 5  ;;  %v352_v42 = vrot.slane %v350_v31, 4  ;;  %v361_v46 = vshrl.u32 %v6881_v33, 16  ;;  %v6909_v62 = vld [vmem:[%s6840_s11 + $0x28] sm:$0xf] }
  0x19   : > { %v320_v40 = vrot.slane %v319_v29, 4  ;;  %v330_v41 = vrot.slane %v329_v30, 4  ;;  %v358_v43 = vrot.slane %v356_v32, 5  ;;  %v364_v47 = vshll.u32 %v6881_v33, 16  ;;  %v6919_v2 = vld [vmem:[%s6840_s11 + $0x2c] sm:$0x1] }
  0x1a   : > { %v343_v44 = vor.u32 %v342_v37, %v339_v36  ;;  %v370_v48 = vshll.u32 %v6884_v34, 16  ;;  %v353_v51 = vor.u32 %v352_v42, %v348_v38  ;;  %v374_v52 = vshrl.u32 %v6884_v34, 16  ;;  %v6926_v16 = vld [vmem:[%s6840_s11 + $0x30] sm:$0xf]  ;;  %v6936_v29 = vld [vmem:[%s6840_s11 + $0x34] sm:$0xf] }
  0x1b   : > { %v325_v49 = vsel %vm6888_vm4, %v320_v40, %v324_v23  ;;  %v335_v50 = vsel %vm6888_vm4, %v330_v41, %v334_v25  ;;  %v363_v56 = vrot.slane %v361_v46, 4  ;;  %v366_v57 = vrot.slane %v364_v47, 5  ;;  %v6947_v36 = vld [vmem:[%s6840_s11 + $0x38] sm:$0x1]  ;;  %s5146_s9 = sshll.u32 %s9129_s30, 2 }
  0x1c   : > { %v5148_v54 = vcombine.low %v325_v49, %v335_v50  ;;  %v344_v55 = vrot.slane %v343_v44, 4  ;;  %v354_v58 = vrot.slane %v353_v51, 4  ;;  %v372_v59 = vrot.slane %v370_v48, 5  ;;  %v7102_v39 = vld [vmem:[%s6840_s11 + $0x78] sm:$0xf] }
  0x1d   : > { %v376_v60 = vrot.slane %v374_v52, 4  ;;  %v380_v61 = vshll.u32 %v6894_v45, 16  ;;  %v367_v0 = vor.u32 %v366_v57, %v363_v56  ;;  %v6916_v1 = vcombine.low %v6881_v33, %v6884_v34  ;;  %v6967_v52 = vld [vmem:[%s6840_s11 + $0x40] sm:$0xf] }
  0x1e   : > { %6182 = vmatprep.mubr.msk.bf16.mxu0 %vm746_vm3, %v5148_v54  ;;  %v349_v63 = vsel %vm6888_vm4, %v344_v55, %v348_v38  ;;  %v385_v4 = vshrl.u32 %v6905_v53, 16  ;;  %v359_v11 = vsel %vm6888_vm4, %v354_v58, %v358_v43  ;;  %v388_v14 = vshll.u32 %v6905_v53, 16  ;;  %v6953_v43 = vld [vmem:[%s6840_s11 + $0x3c] sm:$0xf] }
  0x1f   : > { %v377_v12 = vor.u32 %v376_v60, %v372_v59  ;;  %v382_v13 = vrot.slane %v380_v61, 5  ;;  %v6928_v21 = vcombine.low %v349_v63, %v359_v11  ;;  %v368_v22 = vrot.slane %v367_v0, 4  ;;  %6220 = vmatprep.mubr.msk.bf16.mxu1 %vm746_vm3, %v6916_v1 }
  0x20   : > { %v387_v23 = vrot.slane %v385_v4, 4  ;;  %v394_v24 = vshll.u32 %v6909_v62, 16  ;;  %v390_v26 = vrot.slane %v388_v14, 5  ;;  %v398_v27 = vshrl.u32 %v6909_v62, 16 }
  0x21   : > { %8983 = vst [vmem:[#allocation2_spill] sm:$0xff] %v6928_v21  ;;  %v378_v25 = vrot.slane %v377_v12, 4  ;;  %v404_v28 = vshll.u32 %v6919_v2, 16  ;;  %6183 = vmatmul.mubr.msk.bf16.vlgmr.msra.gmra.mxu0 %vm746_vm3, %v6928_v21  ;;  %v373_v30 = vsel %vm6888_vm4, %v368_v22, %v372_v59  ;;  %v6944_v32 = vcombine.low %v6905_v53, %v6909_v62  ;;  %v6991_v22 = vld [vmem:[%s6840_s11 + $0x48] sm:$0xf] }
  0x22   : > { %v396_v31 = vrot.slane %v394_v24, 5  ;;  %v409_v37 = vshrl.u32 %v6926_v16, 16  ;;  %v391_v40 = vor.u32 %v390_v26, %v387_v23  ;;  %v400_v41 = vrot.slane %v398_v27, 4  ;;  %6215 = vmatpush3.bf16.msra.mxu0 %v6824_v3  ;;  %v6996_v27 = vld [vmem:[%s6840_s11 + $0x4c] sm:$0xf] }
  0x23   : > { %v383_v38 = vsel %vm6888_vm4, %v378_v25, %v382_v13  ;;  %v406_v42 = vrot.slane %v404_v28, 5  ;;  %6221 = vmatmul.mubr.msk.bf16.vlgmr.msra.gmra.mxu1 %vm746_vm3, %v6944_v32  ;;  %v412_v47 = vshll.u32 %v6926_v16, 16  ;;  %v418_v48 = vshll.u32 %v6936_v29, 16  ;;  %6599 = vmatprep.subr.msk.bf16.mxu0 %vm795_vm0, %v6834_v5  ;;  %v6977_v5 = vld [vmem:[%s6840_s11 + $0x44] sm:$0x1] }
  0x24   : > { %v6956_v44 = vcombine.low %v373_v30, %v383_v38  ;;  %v411_v46 = vrot.slane %v409_v37, 4  ;;  %v392_v49 = vrot.slane %v391_v40, 4  ;;  %v401_v50 = vor.u32 %v400_v41, %v396_v31  ;;  %6283 = vmatpush3.bf16.msra.mxu1 %v6847_v7  ;;  %v7007_v41 = vld [vmem:[%s6840_s11 + $0x50] sm:$0x1] }
  0x25   : > { %v422_v51 = vshrl.u32 %v6936_v29, 16  ;;  %v428_v3 = vshll.u32 %v6947_v36, 16  ;;  %v414_v54 = vrot.slane %v412_v47, 5  ;;  %v420_v55 = vrot.slane %v418_v48, 5 }
  0x26   : > { %8984 = vst [vmem:[#allocation3_spill] sm:$0xff] %v6956_v44  ;;  %6186 = vmatprep.mubr.msk.bf16.mxu0 %vm746_vm3, %v6956_v44  ;;  %v6974_v56 = vcombine.low %v6926_v16, %v6936_v29  ;;  %v433_v57 = vshrl.u32 %v6953_v43, 16  ;;  %v397_v58 = vsel %vm6888_vm4, %v392_v49, %v396_v31  ;;  %v402_v59 = vrot.slane %v401_v50, 4 }
  0x27   : > { %v424_v60 = vrot.slane %v422_v51, 4  ;;  %v430_v7 = vrot.slane %v428_v3, 5  ;;  %v415_v61 = vor.u32 %v414_v54, %v411_v46  ;;  %v436_v0 = vshll.u32 %v6953_v43, 16  ;;  %v7018_v51 = vld [vmem:[%s6840_s11 + $0x54] sm:$0xf] }
  0x28   : > { %6224 = vmatprep.mubr.msk.bf16.mxu1 %vm746_vm3, %v6974_v56  ;;  %v435_v63 = vrot.slane %v433_v57, 4  ;;  %v442_v4 = vshll.u32 %v6967_v52, 16  ;;  %v407_v11 = vsel %vm6888_vm4, %v402_v59, %v406_v42  ;;  %v446_v13 = vshrl.u32 %v6967_v52, 16 }
  0x29   : > { %v425_v12 = vor.u32 %v424_v60, %v420_v55  ;;  %v452_v14 = vshll.u32 %v6977_v5, 16  ;;  %v6993_v23 = vcombine.low %v397_v58, %v407_v11  ;;  %v416_v24 = vrot.slane %v415_v61, 4  ;;  %v7024_v61 = vld [vmem:[%s6840_s11 + $0x58] sm:$0xf]  ;;  %v7035_v11 = vld [vmem:[%s6840_s11 + $0x5c] sm:$0x1] }
  0x2a   : > { %v438_v25 = vrot.slane %v436_v0, 5  ;;  %v444_v26 = vrot.slane %v442_v4, 5  ;;  %v448_v30 = vrot.slane %v446_v13, 4  ;;  %v7000_v37 = vcombine.low %v6953_v43, %v6967_v52 }
  0x2b   : > { %8985 = vst [vmem:[#allocation4_spill] sm:$0xff] %v6993_v23  ;;  %v426_v28 = vrot.slane %v425_v12, 4  ;;  %v454_v31 = vrot.slane %v452_v14, 5  ;;  %6187 = vmatmul.mubr.msk.bf16.gmra.mxu0 %vm746_vm3, %v6993_v23  ;;  %v421_v38 = vsel %vm6888_vm4, %v416_v24, %v420_v55  ;;  %v457_v42 = vshrl.u32 %v6991_v22, 16 }
  0x2c   : > { %v439_v40 = vor.u32 %v438_v25, %v435_v63  ;;  %v460_v46 = vshll.u32 %v6991_v22, 16  ;;  %v449_v48 = vor.u32 %v448_v30, %v444_v26  ;;  %6225 = vmatmul.mubr.msk.bf16.gmra.mxu1 %vm746_vm3, %v7000_v37  ;;  %v466_v49 = vshll.u32 %v6996_v27, 16 }
  0x2d   : > { %v431_v47 = vsel %vm6888_vm4, %v426_v28, %v430_v7  ;;  %v470_v50 = vshrl.u32 %v6996_v27, 16  ;;  %v459_v55 = vrot.slane %v457_v42, 4  ;;  %v476_v7 = vshll.u32 %v7007_v41, 16  ;;  %v7042_v28 = vld [vmem:[%s6840_s11 + $0x60] sm:$0xf] }
  0x2e   : > { %v7020_v3 = vcombine.low %v421_v38, %v431_v47  ;;  %v440_v54 = vrot.slane %v439_v40, 4  ;;  %v462_v57 = vrot.slane %v460_v46, 5  ;;  %v450_v58 = vrot.slane %v449_v48, 4  ;;  %v7052_v48 = vld [vmem:[%s6840_s11 + $0x64] sm:$0xf] }
  0x2f   : > { %v468_v59 = vrot.slane %v466_v49, 5  ;;  %v472_v60 = vrot.slane %v470_v50, 4  ;;  %v7032_v4 = vcombine.low %v6991_v22, %v6996_v27  ;;  %v481_v12 = vshrl.u32 %v7018_v51, 16 }
  0x30   : > { %8986 = vst [vmem:[#allocation5_spill] sm:$0xff] %v7020_v3  ;;  %6190 = vmatprep.mubr.msk.bf16.mxu0 %vm746_vm3, %v7020_v3  ;;  %v445_v63 = vsel %vm6888_vm4, %v440_v54, %v444_v26  ;;  %v463_v0 = vor.u32 %v462_v57, %v459_v55  ;;  %v455_v13 = vsel %vm6888_vm4, %v450_v58, %v454_v31  ;;  %v478_v24 = vrot.slane %v476_v7, 5  ;;  %v7063_v55 = vld [vmem:[%s6840_s11 + $0x68] sm:$0x1]  ;;  %v7067_v58 = vld [vmem:[%s6840_s11 + $0x6c] sm:$0xf] }
  0x31   : > { %8987 = vst [vmem:[#allocation6_spill] sm:$0xff] %v7032_v4  ;;  %v473_v14 = vor.u32 %v472_v60, %v468_v59  ;;  %v484_v25 = vshll.u32 %v7018_v51, 16  ;;  %v7044_v26 = vcombine.low %v445_v63, %v455_v13  ;;  %6228 = vmatprep.mubr.msk.bf16.mxu1 %vm746_vm3, %v7032_v4  ;;  %v483_v38 = vrot.slane %v481_v12, 4  ;;  %v7072_v12 = vld [vmem:[%s6840_s11 + $0x70] sm:$0xf] }
  0x32   : > { %v464_v30 = vrot.slane %v463_v0, 4  ;;  %v490_v40 = vshll.u32 %v7024_v61, 16  ;;  %v494_v46 = vshrl.u32 %v7024_v61, 16  ;;  %v500_v47 = vshll.u32 %v7035_v11, 16  ;;  %v7118_v3 = vld [vmem:[%s6840_s11 + $0x80] sm:$0x1] }
  0x33   : > { %8988 = vst [vmem:[#allocation7_spill] sm:$0xff] %v7044_v26  ;;  %v474_v42 = vrot.slane %v473_v14, 4  ;;  %v486_v31 = vrot.slane %v484_v25, 5  ;;  %6191 = vmatmul.mubr.msk.bf16.gmra.mxu0 %vm746_vm3, %v7044_v26  ;;  %v7060_v54 = vcombine.low %v7018_v51, %v7024_v61  ;;  %v505_v57 = vshrl.u32 %v7042_v28, 16  ;;  %v7109_v26 = vld [vmem:[%s6840_s11 + $0x7c] sm:$0xf] }
  0x34   : > { %v469_v49 = vsel %vm6888_vm4, %v464_v30, %v468_v59  ;;  %v492_v50 = vrot.slane %v490_v40, 5  ;;  %v496_v63 = vrot.slane %v494_v46, 4  ;;  %v502_v0 = vrot.slane %v500_v47, 5  ;;  %v7077_v59 = vld [vmem:[%s8919_s2 + $0x14] sm:$0xf]  ;;  %8993 = vst [vmem:[#allocation12_spill] sm:$0xff] %v7109_v26 }
  0x35   : > { %8989 = vst [vmem:[#allocation8_spill] sm:$0xff] %v7060_v54  ;;  %v479_v60 = vsel %vm6888_vm4, %v474_v42, %v478_v24  ;;  %v487_v7 = vor.u32 %v486_v31, %v483_v38  ;;  %8990 = vst [vmem:[#allocation9_spill] sm:$0xff] %v7077_v59  ;;  %6229 = vmatmul.mubr.msk.bf16.gmra.mxu1 %vm746_vm3, %v7060_v54  ;;  %v507_v14 = vrot.slane %v505_v57, 4  ;;  %v508_v25 = vshll.u32 %v7042_v28, 16  ;;  %v7086_v30 = vld [vmem:[%s6840_s11 + $0x74] sm:$0x1] }
  0x36   : > { %v7079_v13 = vcombine.low %v469_v49, %v479_v60  ;;  %v514_v24 = vshll.u32 %v7052_v48, 16  ;;  %6602 = vmatprep.subr.msk.bf16.mxu1 %vm795_vm0, %v7077_v59  ;;  %v497_v40 = vor.u32 %v496_v63, %v492_v50  ;;  %v518_v42 = vshrl.u32 %v7052_v48, 16  ;;  %8995 = vst [vmem:[#allocation14_spill] sm:$0xff] %v7118_v3  ;;  %v7164_v59 = vld [vmem:[%s6840_s11 + $0x94] sm:$0xf] }
  0x37   : > { %v488_v38 = vrot.slane %v487_v7, 4  ;;  %v524_v31 = vshll.u32 %v7063_v55, 16  ;;  %v510_v46 = vrot.slane %v508_v25, 5  ;;  %v7096_v49 = vcombine.low %v7042_v28, %v7052_v48  ;;  %9003 = vst [vmem:[#allocation22_spill] sm:$0xff] %v7164_v59 }
  0x38   : > { %8991 = vst [vmem:[#allocation10_spill] sm:$0xff] %v7079_v13  ;;  %6194 = vmatprep.mubr.msk.bf16.mxu0 %vm746_vm3, %v7079_v13  ;;  %v516_v47 = vrot.slane %v514_v24, 5  ;;  %v529_v57 = vshrl.u32 %v7067_v58, 16  ;;  %v498_v7 = vrot.slane %v497_v40, 4  ;;  %v520_v63 = vrot.slane %v518_v42, 4 }
  0x39   : > { %8992 = vst [vmem:[#allocation11_spill] sm:$0xff] %v7096_v49  ;;  %v493_v60 = vsel %vm6888_vm4, %v488_v38, %v492_v50  ;;  %v526_v20 = vrot.slane %v524_v31, 5  ;;  %v511_v17 = vor.u32 %v510_v46, %v507_v14  ;;  %6232 = vmatprep.mubr.msk.bf16.mxu1 %vm746_vm3, %v7096_v49  ;;  %v532_v24 = vshll.u32 %v7067_v58, 16 }
  0x3a   : > { %v531_v25 = vrot.slane %v529_v57, 4  ;;  %v538_v13 = vshll.u32 %v7072_v12, 16  ;;  %v503_v50 = vsel %vm6888_vm4, %v498_v7, %v502_v0  ;;  %v521_v38 = vor.u32 %v520_v63, %v516_v47  ;;  %v7125_v0 = vld [vmem:[%s6840_s11 + $0x84] sm:$0xf] }
  0x3b   : > { %v542_v40 = vshrl.u32 %v7072_v12, 16  ;;  %v548_v42 = vshll.u32 %v7086_v30, 16  ;;  %v7115_v14 = vcombine.low %v493_v60, %v503_v50  ;;  %v512_v31 = vrot.slane %v511_v17, 4  ;;  %8997 = vst [vmem:[#allocation16_spill] sm:$0xff] %v7125_v0 }
  0x3c   : > { %v534_v46 = vrot.slane %v532_v24, 5  ;;  %v540_v57 = vrot.slane %v538_v13, 5  ;;  %v522_v23 = vrot.slane %v521_v38, 4  ;;  %v7122_v49 = vcombine.low %v7067_v58, %v7072_v12 }
  0x3d   : > { %8994 = vst [vmem:[#allocation13_spill] sm:$0xff] %v7115_v14  ;;  %v544_v44 = vrot.slane %v542_v40, 4  ;;  %v550_v21 = vrot.slane %v548_v42, 5  ;;  %6195 = vmatmul.mubr.msk.bf16.gmra.mxu0 %vm746_vm3, %v7115_v14  ;;  %v517_v17 = vsel %vm6888_vm4, %v512_v31, %v516_v47  ;;  %v553_v60 = vshrl.u32 %v7102_v39, 16  ;;  %v7140_v40 = vld [vmem:[%s6840_s11 + $0x88] sm:$0xf] }
  0x3e   : > { %8996 = vst [vmem:[#allocation15_spill] sm:$0xff] %v7122_v49  ;;  %v535_v13 = vor.u32 %v534_v46, %v531_v25  ;;  %v556_v7 = vshll.u32 %v7102_v39, 16  ;;  %v527_v63 = vsel %vm6888_vm4, %v522_v23, %v526_v20  ;;  %6233 = vmatmul.mubr.msk.bf16.gmra.mxu1 %vm746_vm3, %v7122_v49  ;;  %v562_v50 = vshll.u32 %v7109_v26, 16  ;;  %8998 = vst [vmem:[#allocation17_spill] sm:$0xff] %v7140_v40  ;;  %v7145_v46 = vld [vmem:[%s6840_s11 + $0x8c] sm:$0x1] }
  0x3f   : > { %v545_v24 = vor.u32 %v544_v44, %v540_v57  ;;  %v566_v38 = vshrl.u32 %v7109_v26, 16  ;;  %v7142_v47 = vcombine.low %v517_v17, %v527_v63  ;;  %v555_v42 = vrot.slane %v553_v60, 4  ;;  %9000 = vst [vmem:[#allocation19_spill] sm:$0xff] %v7145_v46  ;;  %v7149_v49 = vld [vmem:[%s6840_s11 + $0x90] sm:$0xf] }
  0x40   : > { %v536_v25 = vrot.slane %v535_v13, 4  ;;  %v558_v31 = vrot.slane %v556_v7, 5  ;;  %v564_v20 = vrot.slane %v562_v50, 5  ;;  %v572_v23 = vshll.u32 %v7118_v3, 16  ;;  %9001 = vst [vmem:[#allocation20_spill] sm:$0xff] %v7149_v49 }
  0x41   : > { %8999 = vst [vmem:[#allocation18_spill] sm:$0xff] %v7142_v47  ;;  %v546_v14 = vrot.slane %v545_v24, 4  ;;  %v568_v44 = vrot.slane %v566_v38, 4  ;;  %6198 = vmatprep.mubr.msk.bf16.mxu0 %vm746_vm3, %v7142_v47  ;;  %v7157_v60 = vcombine.low %v7102_v39, %v7109_v26  ;;  %v577_v7 = vshrl.u32 %v7125_v0, 16 }
  0x42   : > { %v541_v17 = vsel %vm6888_vm4, %v536_v25, %v540_v57  ;;  %v559_v13 = vor.u32 %v558_v31, %v555_v42  ;;  %v574_v50 = vrot.slane %v572_v23, 5  ;;  %v580_v38 = vshll.u32 %v7125_v0, 16  ;;  %v7172_v31 = vld [vmem:[%s6840_s11 + $0x98] sm:$0x1]  ;;  %v7177_v23 = vld [vmem:[%s6840_s11 + $0x9c] sm:$0xf] }
  0x43   : > { %9002 = vst [vmem:[#allocation21_spill] sm:$0xff] %v7157_v60  ;;  %v551_v63 = vsel %vm6888_vm4, %v546_v14, %v550_v21  ;;  %v569_v24 = vor.u32 %v568_v44, %v564_v20  ;;  %6236 = vmatprep.mubr.msk.bf16.mxu1 %vm746_vm3, %v7157_v60  ;;  %v579_v25 = vrot.slane %v577_v7, 4  ;;  %v586_v42 = vshll.u32 %v7140_v40, 16  ;;  %9005 = vst [vmem:[#allocation24_spill] sm:$0xff] %v7172_v31 }
  0x44   : > { %v7166_v47 = vcombine.low %v541_v17, %v551_v63  ;;  %v560_v57 = vrot.slane %v559_v13, 4  ;;  %v582_v21 = vrot.slane %v580_v38, 5  ;;  %v590_v14 = vshrl.u32 %v7140_v40, 16 }
  0x45   : > { %v570_v54 = vrot.slane %v569_v24, 4  ;;  %v596_v44 = vshll.u32 %v7145_v46, 16  ;;  %v588_v13 = vrot.slane %v586_v42, 5  ;;  %v7185_v7 = vcombine.low %v7125_v0, %v7140_v40  ;;  %v7191_v46 = vld [vmem:[%s6840_s11 + $0xa0] sm:$0xf] }
  0x46   : > { %9004 = vst [vmem:[#allocation23_spill] sm:$0xff] %v7166_v47  ;;  %6199 = vmatmul.mubr.msk.bf16.gmra.mxu0 %vm746_vm3, %v7166_v47  ;;  %v565_v17 = vsel %vm6888_vm4, %v560_v57, %v564_v20  ;;  %v601_v63 = vshrl.u32 %v7149_v49, 16  ;;  %v583_v38 = vor.u32 %v582_v21, %v579_v25  ;;  %v592_v60 = vrot.slane %v590_v14, 4  ;;  %9007 = vst [vmem:[#allocation26_spill] sm:$0xff] %v7191_v46  ;;  %v7200_v47 = vld [vmem:[%s6840_s11 + $0xa4] sm:$0x1] }
  0x47   : > { %9006 = vst [vmem:[#allocation25_spill] sm:$0xff] %v7185_v7  ;;  %v575_v24 = vsel %vm6888_vm4, %v570_v54, %v574_v50  ;;  %v598_v4 = vrot.slane %v596_v44, 5  ;;  %6237 = vmatmul.mubr.msk.bf16.gmra.mxu1 %vm746_vm3, %v7185_v7  ;;  %v604_v57 = vshll.u32 %v7149_v49, 16  ;;  %v610_v42 = vshll.u32 %v7164_v59, 16  ;;  %9009 = vst [vmem:[#allocation28_spill] sm:$0xff] %v7200_v47 }
  0x48   : > { %v7193_v3 = vcombine.low %v565_v17, %v575_v24  ;;  %v603_v20 = vrot.slane %v601_v63, 4  ;;  %v584_v40 = vrot.slane %v583_v38, 4  ;;  %v593_v54 = vor.u32 %v592_v60, %v588_v13  ;;  %v7214_v7 = vld [vmem:[%s6840_s11 + $0xa8] sm:$0xf] }
  0x49   : > { %v614_v50 = vshrl.u32 %v7164_v59, 16  ;;  %v620_v25 = vshll.u32 %v7172_v31, 16  ;;  %v606_v21 = vrot.slane %v604_v57, 5  ;;  %v612_v14 = vrot.slane %v610_v42, 5 }
  0x4a   : > { %9008 = vst [vmem:[#allocation27_spill] sm:$0xff] %v7193_v3  ;;  %6202 = vmatprep.mubr.msk.bf16.mxu0 %vm746_vm3, %v7193_v3  ;;  %v7208_v44 = vcombine.low %v7149_v49, %v7164_v59  ;;  %v625_v17 = vshrl.u32 %v7177_v23, 16  ;;  %v589_v63 = vsel %vm6888_vm4, %v584_v40, %v588_v13  ;;  %v594_v60 = vrot.slane %v593_v54, 4  ;;  %v7221_v59 = vld [vmem:[%s6840_s11 + $0xac] sm:$0xf] }
  0x4b   : > { %v616_v24 = vrot.slane %v614_v50, 4  ;;  %v622_v38 = vrot.slane %v620_v25, 5  ;;  %v607_v31 = vor.u32 %v606_v21, %v603_v20  ;;  %v628_v42 = vshll.u32 %v7177_v23, 16 }
  0x4c   : > { %9010 = vst [vmem:[#allocation29_spill] sm:$0xff] %v7208_v44  ;;  %6240 = vmatprep.mubr.msk.bf16.mxu1 %vm746_vm3, %v7208_v44  ;;  %v627_v57 = vrot.slane %v625_v17, 4  ;;  %v634_v3 = vshll.u32 %v7191_v46, 16  ;;  %v599_v40 = vsel %vm6888_vm4, %v594_v60, %v598_v4  ;;  %v638_v54 = vshrl.u32 %v7191_v46, 16  ;;  %v7230_v44 = vld [vmem:[%s6840_s11 + $0xb0] sm:$0x1] }
  0x4d   : > { %v617_v13 = vor.u32 %v616_v24, %v612_v14  ;;  %v644_v50 = vshll.u32 %v7200_v47, 16  ;;  %v7227_v20 = vcombine.low %v589_v63, %v599_v40  ;;  %v608_v25 = vrot.slane %v607_v31, 4  ;;  %9012 = vst [vmem:[#allocation31_spill] sm:$0xff] %v7230_v44  ;;  %v7237_v60 = vld [vmem:[%s6840_s11 + $0xb4] sm:$0xf] }
  0x4e   : > { %v630_v21 = vrot.slane %v628_v42, 5  ;;  %v636_v17 = vrot.slane %v634_v3, 5  ;;  %v640_v0 = vrot.slane %v638_v54, 4  ;;  %v7234_v4 = vcombine.low %v7177_v23, %v7191_v46 }
  0x4f   : > { %9011 = vst [vmem:[#allocation30_spill] sm:$0xff] %v7227_v20  ;;  %v618_v49 = vrot.slane %v617_v13, 4  ;;  %v646_v26 = vrot.slane %v644_v50, 5  ;;  %6203 = vmatmul.mubr.msk.bf16.gmra.mxu0 %vm746_vm3, %v7227_v20  ;;  %v613_v3 = vsel %vm6888_vm4, %v608_v25, %v612_v14  ;;  %v649_v63 = vshrl.u32 %v7214_v7, 16  ;;  %v7252_v50 = vld [vmem:[%s6840_s11 + $0xb8] sm:$0xf] }
  0x50   : > { %9013 = vst [vmem:[#allocation32_spill] sm:$0xff] %v7234_v4  ;;  %v631_v31 = vor.u32 %v630_v21, %v627_v57  ;;  %v652_v24 = vshll.u32 %v7214_v7, 16  ;;  %v641_v40 = vor.u32 %v640_v0, %v636_v17  ;;  %6241 = vmatmul.mubr.msk.bf16.gmra.mxu1 %vm746_vm3, %v7234_v4  ;;  %v658_v13 = vshll.u32 %v7221_v59, 16  ;;  %v7257_v21 = vld [vmem:[%s6840_s11 + $0xbc] sm:$0x1] }
  0x51   : > { %v623_v42 = vsel %vm6888_vm4, %v618_v49, %v622_v38  ;;  %v662_v54 = vshrl.u32 %v7221_v59, 16  ;;  %v651_v57 = vrot.slane %v649_v63, 4  ;;  %v668_v0 = vshll.u32 %v7230_v44, 16 }
  0x52   : > { %v7254_v20 = vcombine.low %v613_v3, %v623_v42  ;;  %v632_v14 = vrot.slane %v631_v31, 4  ;;  %v654_v25 = vrot.slane %v652_v24, 5  ;;  %v642_v47 = vrot.slane %v641_v40, 4 }
  0x53   : > { %v660_v46 = vrot.slane %v658_v13, 5  ;;  %v664_v49 = vrot.slane %v662_v54, 4  ;;  %v7266_v3 = vcombine.low %v7214_v7, %v7221_v59  ;;  %v673_v31 = vshrl.u32 %v7237_v60, 16 }
  0x54   : > { %9014 = vst [vmem:[#allocation33_spill] sm:$0xff] %v7254_v20  ;;  %6206 = vmatprep.mubr.msk.bf16.mxu0 %vm746_vm3, %v7254_v20  ;;  %v637_v38 = vsel %vm6888_vm4, %v632_v14, %v636_v17  ;;  %v655_v4 = vor.u32 %v654_v25, %v651_v57  ;;  %v647_v63 = vsel %vm6888_vm4, %v642_v47, %v646_v26  ;;  %v670_v42 = vrot.slane %v668_v0, 5 }
  0x55   : > { %v665_v24 = vor.u32 %v664_v49, %v660_v46  ;;  %v676_v40 = vshll.u32 %v7237_v60, 16  ;;  %v7272_v13 = vcombine.low %v637_v38, %v647_v63  ;;  %6244 = vmatprep.mubr.msk.bf16.mxu1 %vm746_vm3, %v7266_v3  ;;  %v675_v17 = vrot.slane %v673_v31, 4 }
  0x56   : > { %v656_v54 = vrot.slane %v655_v4, 4  ;;  %v682_v14 = vshll.u32 %v7252_v50, 16  ;;  %v686_v20 = vshrl.u32 %v7252_v50, 16  ;;  %v692_v44 = vshll.u32 %v7257_v21, 16 }
  0x57   : > { %v666_v57 = vrot.slane %v665_v24, 4  ;;  %v678_v25 = vrot.slane %v676_v40, 5  ;;  %6207 = vmatmul.mubr.msk.bf16.gmra.mxu0 %vm746_vm3, %v7272_v13  ;;  %v7285_v4 = vcombine.low %v7237_v60, %v7252_v50  ;;  %v7289_v49 = vcombine.low %v6863_v15, %v6868_v18 }
  0x58   : > { %v661_v26 = vsel %vm6888_vm4, %v656_v54, %v660_v46  ;;  %v684_v47 = vrot.slane %v682_v14, 5  ;;  %v688_v31 = vrot.slane %v686_v20, 4  ;;  %v694_v63 = vrot.slane %v692_v44, 5 }
  0x59   : > { %v671_v0 = vsel %vm6888_vm4, %v666_v57, %v670_v42  ;;  %v679_v38 = vor.u32 %v678_v25, %v675_v17  ;;  %v9015_v24 = vmov 0  ;;  %6245 = vmatmul.mubr.msk.bf16.gmra.mxu1 %vm746_vm3, %v7285_v4  ;;  %v5212_v40 = vrot.slane %v6850_v8, 9 }
  0x5a   : > { %v9016_v24 = vsel %vm7295_vm7, 4294967295, %v9015_v24  ;;  %v7299_v46 = vcombine.low %v661_v26, %v671_v0  ;;  %v1273_v54 = vrot.slane %v6853_v9, 5  ;;  %v5213_v42 = vrot.slane %v6863_v15, 9  ;;  %6284 = vmatprep.mubr.msk.bf16.mxu1 %vm746_vm3, %v7289_v49 }
  0x5b   : > { %9017 = vst [vmem:[#allocation34_spill] sm:$0xff] %v9016_v24  ;;  %v680_v17 = vrot.slane %v679_v38, 4  ;;  %v689_v20 = vor.u32 %v688_v31, %v684_v47  ;;  %v1280_v44 = vrot.slane %v6868_v18, 5  ;;  %v5214_v14 = vrot.slane %v6881_v33, 9 }
  0x5c   : > { %9018 = vst [vmem:[#allocation35_spill] sm:$0xff] %v7299_v46  ;;  %6210 = vmatprep.mubr.msk.bf16.mxu0 %vm746_vm3, %v7299_v46  ;;  %v7314_v57 = vsel %vm7295_vm7, %v5212_v40, %v1273_v54  ;;  %v1275_v25 = vrot.slane %v1273_v54, 4  ;;  %v1287_v26 = vrot.slane %v6884_v34, 5  ;;  %v1290_v15 = vrot.slane %v6894_v45, 5 }
  0x5d   : > { %v685_v18 = vsel %vm6888_vm4, %v680_v17, %v684_v47  ;;  %v690_v0 = vrot.slane %v689_v20, 4  ;;  %v1281_v38 = vsel %vm7295_vm7, %v5213_v42, %v1280_v44  ;;  %v1282_v33 = vrot.slane %v1280_v44, 4 }
  0x5e   : > { %v9019_v31 = vrot.slane %v6856_v10, 5  ;;  %v1288_v40 = vsel %vm7295_vm7, %v5214_v14, %v1287_v26  ;;  %v1289_v54 = vrot.slane %v1287_v26, 4  ;;  %v5215_v34 = vrot.slane %v6905_v53, 9 }
  0x5f   : > { %v695_v45 = vsel %vm6888_vm4, %v690_v0, %v694_v63  ;;  %v9020_v17 = vrot.slane %v6871_v19, 5  ;;  %v1294_v10 = vrot.slane %v6909_v62, 5  ;;  %v1297_v53 = vrot.slane %v6919_v2, 5 }
  0x60   : > { %v1277_v46 = vsel %vm7295_vm7, %v1275_v25, %v9019_v31  ;;  %v7337_v20 = vcombine.low %v685_v18, %v695_v45  ;;  %v1291_v14 = vsel %vm7295_vm7, %v1289_v54, %v1290_v15  ;;  %v1301_v62 = vrot.slane %v6936_v29, 5 }
  0x61   : > { %v5229_v47 = vcombine.low %v7314_v57, %v1277_v46  ;;  %v1284_v42 = vsel %vm7295_vm7, %v1282_v33, %v9020_v17  ;;  %v7344_v25 = vcombine.low %v1288_v40, %v1291_v14  ;;  %v1295_v63 = vsel %vm7295_vm7, %v5215_v34, %v1294_v10  ;;  %6285 = vmatmul.mubr.msk.bf16.vlgmr.msra.gmra.mxu1 %vm746_vm3, %v6916_v1 }
  0x62   : > { %v7339_v44 = vcombine.low %v1281_v38, %v1284_v42  ;;  %v1296_v19 = vrot.slane %v1294_v10, 4  ;;  %v5216_v46 = vrot.slane %v6926_v16, 9  ;;  %6211 = vmatmul.mubr.msk.bf16.gmra.mxu0 %vm746_vm3, %v7337_v20  ;;  %v1304_v57 = vrot.slane %v6947_v36, 5  ;;  %6288 = vmatprep.mubr.msk.bf16.mxu1 %vm746_vm3, %v6944_v32 }
  0x63   : > { %v5217_v2 = vrot.slane %v6953_v43, 9  ;;  %v1308_v26 = vrot.slane %v6967_v52, 5  ;;  %v9021_v15 = vcombine.low %v6850_v8, %v6853_v9  ;;  %v1311_v18 = vrot.slane %v6977_v5, 5 }
  0x64   : > { %v1298_v16 = vsel %vm7295_vm7, %v1296_v19, %v1297_v53  ;;  %v5218_v29 = vrot.slane %v6991_v22, 9  ;;  %v1315_v36 = vrot.slane %v6996_v27, 5  ;;  %v1302_v52 = vsel %vm7295_vm7, %v5216_v46, %v1301_v62 }
  0x65   : > { %6216 = vmatprep.mubr.msk.bf16.mxu0 %vm746_vm3, %v9021_v15  ;;  %v7368_v43 = vcombine.low %v1295_v63, %v1298_v16  ;;  %v1303_v8 = vrot.slane %v1301_v62, 4  ;;  %v1309_v9 = vsel %vm7295_vm7, %v5217_v2, %v1308_v26  ;;  %v1310_v0 = vrot.slane %v1308_v26, 4  ;;  %v9025_v15 = vld [vmem:[#allocation17_spill] sm:$0xff] }
  0x66   : > { %v1316_v38 = vsel %vm7295_vm7, %v5218_v29, %v1315_v36  ;;  %v1317_v33 = vrot.slane %v1315_v36, 4  ;;  %v1318_v5 = vrot.slane %v7007_v41, 5  ;;  %v5219_v27 = vrot.slane %v7018_v51, 9  ;;  %v5279_v41 = vld [vmem:[%s8919_s2 + $0x10] sm:$0xf] }
  0x67   : > { %v1305_v22 = vsel %vm7295_vm7, %v1303_v8, %v1304_v57  ;;  %v1322_v31 = vrot.slane %v7024_v61, 5  ;;  %v1325_v40 = vrot.slane %v7035_v11, 5  ;;  %v1312_v34 = vsel %vm7295_vm7, %v1310_v0, %v1311_v18  ;;  %v9026_v18 = vld [vmem:[#allocation19_spill] sm:$0xff]  ;;  %v9027_v36 = vld [vmem:[#allocation20_spill] sm:$0xff] }
  0x68   : > { %v7382_v54 = vcombine.low %v1302_v52, %v1305_v22  ;;  %v1319_v45 = vsel %vm7295_vm7, %v1317_v33, %v1318_v5  ;;  %v5220_v17 = vrot.slane %v7042_v28, 9  ;;  %v7392_v42 = vcombine.low %v1309_v9, %v1312_v34  ;;  %v9029_v34 = vld [vmem:[#allocation24_spill] sm:$0xff] }
  0x69   : > { %v7394_v51 = vcombine.low %v1316_v38, %v1319_v45  ;;  %v1323_v61 = vsel %vm7295_vm7, %v5219_v27, %v1322_v31  ;;  %v1324_v11 = vrot.slane %v1322_v31, 4  ;;  %v1329_v10 = vrot.slane %v7052_v48, 5  ;;  %6289 = vmatmul.mubr.msk.bf16.gmra.mxu1 %vm746_vm3, %v6974_v56  ;;  %v9028_v27 = vld [vmem:[#allocation22_spill] sm:$0xff] }
  0x6a   : > { %v1332_v14 = vrot.slane %v7063_v55, 5  ;;  %v5221_v53 = vrot.slane %v7067_v58, 9  ;;  %v1336_v28 = vrot.slane %v7072_v12, 5  ;;  %6217 = vmatmul.mubr.msk.bf16.vlgmr.msra.gmra.mxu0 %vm746_vm3, %v7289_v49  ;;  %v1339_v19 = vrot.slane %v7086_v30, 5  ;;  %6292 = vmatprep.mubr.msk.bf16.mxu1 %vm746_vm3, %v7000_v37 }
  0x6b   : > { %v1326_v63 = vsel %vm7295_vm7, %v1324_v11, %v1325_v40  ;;  %v1916_v46 = vsel %vm795_vm0, %v5279_v41, 0  ;;  %v5222_v48 = vrot.slane %v7102_v39, 9  ;;  %6249 = vmatpush3.bf16.msra.mxu0 %v6844_v6  ;;  %6250 = vmatprep.mubr.msk.bf16.mxu0 %vm746_vm3, %v5229_v47  ;;  %v1330_v58 = vsel %vm7295_vm7, %v5220_v17, %v1329_v10  ;;  %v9022_v39 = vld [vmem:[#allocation12_spill] sm:$0xff]  ;;  %v9023_v6 = vld [vmem:[#allocation14_spill] sm:$0xff] }
  0x6c   : > { %v7413_v55 = vcombine.low %v1323_v61, %v1326_v63  ;;  %v1331_v12 = vrot.slane %v1329_v10, 4  ;;  %v1337_v49 = vsel %vm7295_vm7, %v5221_v53, %v1336_v28  ;;  %v1338_v30 = vrot.slane %v1336_v28, 4  ;;  %6601 = vmatprep.subr.msk.bf16.mxu0 %vm795_vm0, %v5279_v41  ;;  %v9024_v47 = vld [vmem:[#allocation16_spill] sm:$0xff]  ;;  %v9030_v41 = vld [vmem:[#allocation26_spill] sm:$0xff] }
  0x6d   : > { %v1343_v62 = vrot.slane %v9022_v39, 5  ;;  %v1346_v57 = vrot.slane %v9023_v6, 5  ;;  %v5223_v2 = vrot.slane %v9024_v47, 9  ;;  %v1350_v16 = vrot.slane %v9025_v15, 5  ;;  %v9031_v28 = vld [vmem:[#allocation6_spill] sm:$0xff]  ;;  %v9034_v6 = vld [vmem:[#allocation31_spill] sm:$0xff] }
  0x6e   : > { %v1333_v26 = vsel %vm7295_vm7, %v1331_v12, %v1332_v14  ;;  %v1353_v29 = vrot.slane %v9026_v18, 5  ;;  %v5224_v52 = vrot.slane %v9027_v36, 9  ;;  %v1340_v9 = vsel %vm7295_vm7, %v1338_v30, %v1339_v19  ;;  %v7464_v12 = vld [vmem:[%s8919_s2 + $0x18] sm:$0xf]  ;;  %v7494_v36 = vld [vmem:[%s6840_s11 + $0xc4] sm:$0xf] }
  0x6f   : > { %v7430_v8 = vcombine.low %v1330_v58, %v1333_v26  ;;  %v1344_v0 = vsel %vm7295_vm7, %v5222_v48, %v1343_v62  ;;  %v1345_v38 = vrot.slane %v1343_v62, 4  ;;  %v7436_v33 = vcombine.low %v1337_v49, %v1340_v9  ;;  %v9032_v48 = vld [vmem:[#allocation28_spill] sm:$0xff] }
  0x70   : > { %v1351_v5 = vsel %vm7295_vm7, %v5223_v2, %v1350_v16  ;;  %v1352_v22 = vrot.slane %v1350_v16, 4  ;;  %v1357_v31 = vrot.slane %v9028_v27, 5  ;;  %v1360_v45 = vrot.slane %v9029_v34, 5  ;;  %v9033_v49 = vld [vmem:[#allocation8_spill] sm:$0xff] }
  0x71   : > { %v1347_v40 = vsel %vm7295_vm7, %v1345_v38, %v1346_v57  ;;  %v5225_v17 = vrot.slane %v7177_v23, 9  ;;  %v1364_v61 = vrot.slane %v9030_v41, 5  ;;  %6293 = vmatmul.mubr.msk.bf16.gmra.mxu1 %vm746_vm3, %v9031_v28  ;;  %v1367_v58 = vrot.slane %v9032_v48, 5  ;;  %v9035_v38 = vld [vmem:[#allocation9_spill] sm:$0xff] }
  0x72   : > { %v7446_v11 = vcombine.low %v1344_v0, %v1347_v40  ;;  %v1354_v10 = vsel %vm7295_vm7, %v1352_v22, %v1353_v29  ;;  %v1358_v14 = vsel %vm7295_vm7, %v5224_v52, %v1357_v31  ;;  %v1359_v53 = vrot.slane %v1357_v31, 4  ;;  %6251 = vmatmul.mubr.msk.bf16.vlgmr.msra.gmra.mxu0 %vm746_vm3, %v7339_v44  ;;  %6296 = vmatprep.mubr.msk.bf16.mxu1 %vm746_vm3, %v9033_v49  ;;  %v7487_v29 = vld [vmem:[%s6840_s11 + $0xc0] sm:$0xf]  ;;  %v5334_v52 = vld [vmem:[%s8919_s2 + $0x1c] sm:$0xf] }
  0x73   : > { %v7456_v63 = vcombine.low %v1351_v5, %v1354_v10  ;;  %v1365_v23 = vsel %vm7295_vm7, %v5225_v17, %v1364_v61  ;;  %v1366_v19 = vrot.slane %v1364_v61, 4  ;;  %6254 = vmatprep.mubr.msk.bf16.mxu0 %vm746_vm3, %v7344_v25  ;;  %v5226_v39 = vrot.slane %v7214_v7, 9  ;;  %6317 = vmatpush3.bf16.msra.mxu0 %v1916_v46  ;;  %v7507_v22 = vld [vmem:[%s6840_s11 + $0xc8] sm:$0x1] }
  0x74   : > { %v1361_v30 = vsel %vm7295_vm7, %v1359_v53, %v1360_v45  ;;  %v1371_v62 = vrot.slane %v7221_v59, 5  ;;  %v1374_v57 = vrot.slane %v9034_v6, 5  ;;  %v5227_v26 = vrot.slane %v7237_v60, 9  ;;  %6603 = vmatprep.subr.msk.bf16.mxu0 %vm795_vm0, %v7464_v12  ;;  %v9037_v61 = vld [vmem:[#allocation11_spill] sm:$0xff]  ;;  %v9039_v6 = vld [vmem:[#allocation21_spill] sm:$0xff] }
  0x75   : > { %v7475_v47 = vcombine.low %v1358_v14, %v1361_v30  ;;  %v1368_v2 = vsel %vm7295_vm7, %v1366_v19, %v1367_v58  ;;  %v1378_v15 = vrot.slane %v7252_v50, 5  ;;  %v1381_v59 = vrot.slane %v7257_v21, 5  ;;  %v9038_v14 = vld [vmem:[#allocation15_spill] sm:$0xff] }
  0x76   : > { %v7481_v16 = vcombine.low %v1365_v23, %v1368_v2  ;;  %v1372_v7 = vsel %vm7295_vm7, %v5226_v39, %v1371_v62  ;;  %v1373_v18 = vrot.slane %v1371_v62, 4  ;;  %v1884_v50 = vshrl.u32 %v7487_v29, 16  ;;  %v9040_v2 = vld [vmem:[#allocation25_spill] sm:$0xff] }
  0x77   : > { %v1379_v46 = vsel %vm7295_vm7, %v5227_v26, %v1378_v15  ;;  %v1380_v60 = vrot.slane %v1378_v15, 4  ;;  %v1887_v9 = vshll.u32 %v7487_v29, 16  ;;  %v1897_v0 = vshrl.u32 %v7494_v36, 16  ;;  %v9041_v26 = vld [vmem:[#allocation29_spill] sm:$0xff]  ;;  %v9042_v15 = vld [vmem:[#allocation32_spill] sm:$0xff] }
  0x78   : > { %v1375_v21 = vsel %vm7295_vm7, %v1373_v18, %v1374_v57  ;;  %v2128_v5 = vsel %vm795_vm0, %v9035_v38, 0  ;;  %v1886_v40 = vrot.slane %v1884_v50, 4  ;;  %v1893_v17 = vshll.u32 %v7494_v36, 16  ;;  %v9045_v50 = vld [vmem:[#allocation4_spill] sm:$0xff]  ;;  %v9051_v38 = vld [vmem:[#allocation23_spill] sm:$0xff] }
  0x79   : > { %v7509_v27 = vcombine.low %v1372_v7, %v1375_v21  ;;  %v1382_v31 = vsel %vm7295_vm7, %v1380_v60, %v1381_v59  ;;  %6351 = vmatpush3.bf16.msra.mxu1 %v2128_v5  ;;  %v1889_v45 = vrot.slane %v1887_v9, 5  ;;  %v1899_v41 = vrot.slane %v1897_v0, 4  ;;  %v5353_v60 = vld [vmem:[%s8919_s2 + $0x20] sm:$0xf]  ;;  %v9049_v9 = vld [vmem:[#allocation13_spill] sm:$0xff] }
  0x7a   : > { %v7513_v34 = vcombine.low %v1379_v46, %v1382_v31  ;;  %6604 = vmatprep.subr.msk.bf16.mxu1 %vm795_vm0, %v5334_v52  ;;  %6255 = vmatmul.mubr.msk.bf16.gmra.mxu0 %vm746_vm3, %v7368_v43  ;;  %v1903_v10 = vshll.u32 %v7507_v22, 16  ;;  %v1895_v23 = vrot.slane %v1893_v17, 5  ;;  %v7558_v7 = vcombine.low %v7487_v29, %v7494_v36  ;;  %v9044_v46 = vld [vmem:[#allocation3_spill] sm:$0xff]  ;;  %v9048_v21 = vld [vmem:[#allocation10_spill] sm:$0xff] }
  0x7b   : > { %6297 = vmatmul.mubr.msk.bf16.gmra.mxu1 %vm746_vm3, %v9037_v61  ;;  %6258 = vmatprep.mubr.msk.bf16.mxu0 %vm746_vm3, %v7382_v54  ;;  %v1890_v53 = vor.u32 %v1889_v45, %v1886_v40  ;;  %v2562_v18 = vsel %vm795_vm0, %v5334_v52, 0  ;;  %v2334_v59 = vsel %vm795_vm0, %v7464_v12, 0  ;;  %v9046_v12 = vld [vmem:[#allocation5_spill] sm:$0xff]  ;;  %v9047_v52 = vld [vmem:[#allocation7_spill] sm:$0xff]  ;;  %v9050_v0 = vld [vmem:[#allocation18_spill] sm:$0xff]  ;;  %v2114_v5 = vrot.slane %v7494_v36, 5 }
  0x7c   : > { %9036 = vst [vmem:[#allocation12_spill] sm:$0xff] %v7513_v34  ;;  %6300 = vmatprep.mubr.msk.bf16.mxu1 %vm746_vm3, %v9038_v14  ;;  %v1900_v48 = vor.u32 %v1899_v41, %v1895_v23  ;;  %v1905_v58 = vrot.slane %v1903_v10, 5  ;;  %v5297_v31 = vrot.slane %v7487_v29, 9  ;;  %v2117_v45 = vrot.slane %v7507_v22, 5  ;;  %v9052_v17 = vld [vmem:[#allocation27_spill] sm:$0xff]  ;;  %v9053_v41 = vld [vmem:[#allocation30_spill] sm:$0xff] }
  0x7d   : > { %v1891_v19 = vrot.slane %v1890_v53, 4  ;;  %v2116_v40 = vrot.slane %v2114_v5, 4  ;;  %v9055_v22 = vld [vmem:[#allocation33_spill] sm:$0xff]  ;;  %v9056_v53 = vld [vmem:[#allocation35_spill] sm:$0xff] }
  0x7e   : > { %v1901_v39 = vrot.slane %v1900_v48, 4  ;;  %v2115_v36 = vsel %vm7295_vm7, %v5297_v31, %v2114_v5 }
  0x7f   : > { %v1896_v30 = vsel %vm6888_vm4, %v1891_v19, %v1895_v23  ;;  %v2118_v29 = vsel %vm7295_vm7, %v2116_v40, %v2117_v45 }
  0x80   : > { %v1906_v62 = vsel %vm6888_vm4, %v1901_v39, %v1905_v58  ;;  %v7638_v10 = vcombine.low %v2115_v36, %v2118_v29 }
  0x81   : > { %v7534_v57 = vcombine.low %v1896_v30, %v1906_v62 }
  0x82   : > { %6259 = vmatmul.mubr.msk.bf16.gmra.mxu0 %vm746_vm3, %v7392_v42  ;;  %9054 = vst [vmem:[#allocation14_spill] sm:$0xff] %v7638_v10 }
  0x83   : > { %6301 = vmatmul.mubr.msk.bf16.gmra.mxu1 %vm746_vm3, %v9039_v6  ;;  %6262 = vmatprep.mubr.msk.bf16.mxu0 %vm746_vm3, %v7394_v51 }
  0x84   : > { %6304 = vmatprep.mubr.msk.bf16.mxu1 %vm746_vm3, %v9040_v2 }
  0x8a   : > { %6263 = vmatmul.mubr.msk.bf16.gmra.mxu0 %vm746_vm3, %v7413_v55 }
  0x8b   : > { %6305 = vmatmul.mubr.msk.bf16.gmra.mxu1 %vm746_vm3, %v9041_v26  ;;  %6266 = vmatprep.mubr.msk.bf16.mxu0 %vm746_vm3, %v7430_v8 }
  0x8c   : > { %6308 = vmatprep.mubr.msk.bf16.mxu1 %vm746_vm3, %v9042_v15 }
  0x92   : > { %6267 = vmatmul.mubr.msk.bf16.gmra.mxu0 %vm746_vm3, %v7436_v33 }
  0x93   : > { %6309 = vmatmul.mubr.msk.bf16.gmra.mxu1 %vm746_vm3, %v7266_v3  ;;  %6270 = vmatprep.mubr.msk.bf16.mxu0 %vm746_vm3, %v7446_v11 }
  0x94   : > { %6312 = vmatprep.mubr.msk.bf16.mxu1 %vm746_vm3, %v7285_v4 }
  0x9a   : > { %6271 = vmatmul.mubr.msk.bf16.gmra.mxu0 %vm746_vm3, %v7456_v63 }
  0x9b   : > { %6313 = vmatmul.mubr.msk.bf16.gmra.mxu1 %vm746_vm3, %v7558_v7  ;;  %6274 = vmatprep.mubr.msk.bf16.mxu0 %vm746_vm3, %v7475_v47 }
  0x9c   : > { %6352 = vmatprep.mubr.msk.bf16.mxu1 %vm746_vm3, %v7339_v44  ;;  %v9043_v44 = vld [vmem:[#allocation2_spill] sm:$0xff] }
  0xa2   : > { %6275 = vmatmul.mubr.msk.bf16.gmra.mxu0 %vm746_vm3, %v7481_v16 }
  0xa3   : > { %6353 = vmatmul.mubr.msk.bf16.vlgmr.msra.gmra.mxu1 %vm746_vm3, %v7344_v25  ;;  %6278 = vmatprep.mubr.msk.bf16.mxu0 %vm746_vm3, %v7509_v27 }
  0xa4   : > { %6356 = vmatprep.mubr.msk.bf16.mxu1 %vm746_vm3, %v7368_v43  ;;  %6419 = vmatpush3.bf16.msra.mxu1 %v2562_v18 }
  0xaa   : > { %6279 = vmatmul.mubr.msk.bf16.gmra.mxu0 %vm746_vm3, %v7513_v34 }
  0xab   : > { %6357 = vmatmul.mubr.msk.bf16.gmra.mxu1 %vm746_vm3, %v7382_v54  ;;  %6318 = vmatprep.mubr.msk.bf16.mxu0 %vm746_vm3, %v9043_v44 }
  0xac   : > { %6360 = vmatprep.mubr.msk.bf16.mxu1 %vm746_vm3, %v7392_v42 }
  0xb2   : > { %6319 = vmatmul.mubr.msk.bf16.vlgmr.msra.gmra.mxu0 %vm746_vm3, %v9044_v46 }
  0xb3   : > { %6361 = vmatmul.mubr.msk.bf16.gmra.mxu1 %vm746_vm3, %v7394_v51  ;;  %6322 = vmatprep.mubr.msk.bf16.mxu0 %vm746_vm3, %v9045_v50 }
  0xb4   : > { %6364 = vmatprep.mubr.msk.bf16.mxu1 %vm746_vm3, %v7413_v55  ;;  %6385 = vmatpush3.bf16.msra.mxu0 %v2334_v59 }
  0xb5   : > { %6605 = vmatprep.subr.msk.bf16.mxu0 %vm795_vm0, %v5353_v60 }
  0xba   : > { %6323 = vmatmul.mubr.msk.bf16.gmra.mxu0 %vm746_vm3, %v9046_v12 }
  0xbb   : > { %6365 = vmatmul.mubr.msk.bf16.gmra.mxu1 %vm746_vm3, %v7430_v8  ;;  %6326 = vmatprep.mubr.msk.bf16.mxu0 %vm746_vm3, %v9047_v52 }
  0xbc   : > { %6368 = vmatprep.mubr.msk.bf16.mxu1 %vm746_vm3, %v7436_v33 }
  0xc2   : > { %6327 = vmatmul.mubr.msk.bf16.gmra.mxu0 %vm746_vm3, %v9048_v21 }
  0xc3   : > { %6369 = vmatmul.mubr.msk.bf16.gmra.mxu1 %vm746_vm3, %v7446_v11  ;;  %6330 = vmatprep.mubr.msk.bf16.mxu0 %vm746_vm3, %v9049_v9 }
  0xc4   : > { %6372 = vmatprep.mubr.msk.bf16.mxu1 %vm746_vm3, %v7456_v63 }
  0xca   : > { %6331 = vmatmul.mubr.msk.bf16.gmra.mxu0 %vm746_vm3, %v9050_v0 }
  0xcb   : > { %6373 = vmatmul.mubr.msk.bf16.gmra.mxu1 %vm746_vm3, %v7475_v47  ;;  %6334 = vmatprep.mubr.msk.bf16.mxu0 %vm746_vm3, %v9051_v38 }
  0xcc   : > { %6376 = vmatprep.mubr.msk.bf16.mxu1 %vm746_vm3, %v7481_v16 }
  0xd2   : > { %6335 = vmatmul.mubr.msk.bf16.gmra.mxu0 %vm746_vm3, %v9052_v17 }
  0xd3   : > { %6377 = vmatmul.mubr.msk.bf16.gmra.mxu1 %vm746_vm3, %v7509_v27  ;;  %6338 = vmatprep.mubr.msk.bf16.mxu0 %vm746_vm3, %v9053_v41 }
  0xd4   : > { %6380 = vmatprep.mubr.msk.bf16.mxu1 %vm746_vm3, %v7513_v34 }
  0xda   : > { %6339 = vmatmul.mubr.msk.bf16.gmra.mxu0 %vm746_vm3, %v9055_v22 }
  0xdb   : > { %6381 = vmatmul.mubr.msk.bf16.gmra.mxu1 %vm746_vm3, %v7638_v10  ;;  %6342 = vmatprep.mubr.msk.bf16.mxu0 %vm746_vm3, %v7272_v13  ;;  %v7736_v10 = vld [vmem:[%s6840_s11 + $0xd4] sm:$0x1] }
  0xdc   : > { %6420 = vmatprep.mubr.msk.bf16.mxu1 %vm746_vm3, %v9044_v46 }
  0xe1   : > { %v7650_v23 = vpop.f32.mrf.mxu0 }
  0xe2   : > { %6343 = vmatmul.mubr.msk.bf16.gmra.mxu0 %vm746_vm3, %v9056_v53 }
  0xe3   : > { %6421 = vmatmul.mubr.msk.bf16.vlgmr.msra.gmra.mxu1 %vm746_vm3, %v9045_v50  ;;  %6346 = vmatprep.mubr.msk.bf16.mxu0 %vm746_vm3, %v7337_v20  ;;  %v7658_v19 = vpop.f32.mrf.mxu0  ;;  %v6222_v48 = vpop.f32.mrf.mxu1 }
  0xe4   : > { %6424 = vmatprep.mubr.msk.bf16.mxu1 %vm746_vm3, %v9046_v12 }
  0xe5   : > { %v7660_v58 = vpop.f32.mrf.mxu0  ;;  %v1141_v30 = vpop.f32.mrf.mxu1 }
  0xe7   : > { %v7662_v39 = vpop.f32.mrf.mxu0  ;;  %v6223_v62 = vpop.f32.mrf.mxu1 }
  0xe9   : > { %v1144_v18 = vpop.f32.mrf.mxu1 }
  0xea   : > { %6347 = vmatmul.mubr.msk.bf16.gmra.mxu0 %vm746_vm3, %v7534_v57 }
  0xeb   : > { %6425 = vmatmul.mubr.msk.bf16.gmra.mxu1 %vm746_vm3, %v9047_v52  ;;  %6386 = vmatprep.mubr.msk.bf16.mxu0 %vm746_vm3, %v6916_v1  ;;  %v6188_v44 = vpop.f32.mrf.mxu0  ;;  %v2774_v52 = vsel %vm795_vm0, %v5353_v60, 0 }
  0xec   : > { %6428 = vmatprep.mubr.msk.bf16.mxu1 %vm746_vm3, %v9048_v21  ;;  %v7672_v59 = vadd.f32 %v6222_v48, %v6188_v44  ;;  %v6226_v46 = vpop.f32.mrf.mxu1 }
  0xed   : > { %v849_v50 = vpop.f32.mrf.mxu0 }
  0xee   : > { %v7674_v12 = vadd.f32 %v1141_v30, %v849_v50  ;;  %v1157_v5 = vpop.f32.mrf.mxu1 }
  0xef   : > { %v6189_v31 = vpop.f32.mrf.mxu0 }
  0xf0   : > { %v7676_v40 = vadd.f32 %v6223_v62, %v6189_v31  ;;  %v6227_v45 = vpop.f32.mrf.mxu1 }
  0xf1   : > { %v852_v1 = vpop.f32.mrf.mxu0 }
  0xf2   : > { %6387 = vmatmul.mubr.msk.bf16.vlgmr.msra.gmra.mxu0 %vm746_vm3, %v6944_v32  ;;  %v7683_v21 = vadd.f32 %v1144_v18, %v852_v1  ;;  %v1160_v36 = vpop.f32.mrf.mxu1 }
  0xf3   : > { %6429 = vmatmul.mubr.msk.bf16.gmra.mxu1 %vm746_vm3, %v9049_v9  ;;  %6390 = vmatprep.mubr.msk.bf16.mxu0 %vm746_vm3, %v6974_v56  ;;  %v6192_v29 = vpop.f32.mrf.mxu0 }
  0xf4   : > { %6432 = vmatprep.mubr.msk.bf16.mxu1 %vm746_vm3, %v9050_v0  ;;  %6453 = vmatpush3.bf16.msra.mxu0 %v2774_v52  ;;  %v7689_v48 = vadd.f32 %v6226_v46, %v6192_v29  ;;  %v7711_v52 = vld [vmem:[%s6840_s11 + $0xd0] sm:$0xf] }
  0xf5   : > { %v865_v60 = vpop.f32.mrf.mxu0  ;;  %v6230_v30 = vpop.f32.mrf.mxu1 }
  0xf6   : > { %v7691_v32 = vadd.f32 %v1157_v5, %v865_v60 }
  0xf7   : > { %v6193_v62 = vpop.f32.mrf.mxu0  ;;  %v1173_v9 = vpop.f32.mrf.mxu1 }
  0xf8   : > { %v7693_v18 = vadd.f32 %v6227_v45, %v6193_v62  ;;  %v7708_v45 = vld [vmem:[%s6840_s11 + $0xcc] sm:$0xf]  ;;  %s8892_s11 = scalar_lea.vmem %s8923_s6, %s5146_s9 }
  0xf9   : > { %v868_v56 = vpop.f32.mrf.mxu0  ;;  %v6231_v44 = vpop.f32.mrf.mxu1  ;;  %v2533_v60 = vshll.u32 %v7708_v45, 16 }
  0xfa   : > { %6391 = vmatmul.mubr.msk.bf16.gmra.mxu0 %vm746_vm3, %v7000_v37  ;;  %v7699_v0 = vadd.f32 %v1160_v36, %v868_v56 }
  0xfb   : > { %6433 = vmatmul.mubr.msk.bf16.gmra.mxu1 %vm746_vm3, %v9051_v38  ;;  %6394 = vmatprep.mubr.msk.bf16.mxu0 %vm746_vm3, %v9031_v28  ;;  %v1176_v46 = vpop.f32.mrf.mxu1 }
  0xfc   : > { %6436 = vmatprep.mubr.msk.bf16.mxu1 %vm746_vm3, %v9052_v17  ;;  %v2530_v17 = vshrl.u32 %v7708_v45, 16 }
  0xfd   : > { %v6196_v50 = vpop.f32.mrf.mxu0 }
  0xfe   : > { %v7705_v5 = vadd.f32 %v6230_v30, %v6196_v50  ;;  %v6234_v31 = vpop.f32.mrf.mxu1  ;;  %v2539_v30 = vshll.u32 %v7711_v52, 16 }
  0xff   : > { %v881_v37 = vpop.f32.mrf.mxu0 }
 0x100   : > { %v7713_v1 = vadd.f32 %v1173_v9, %v881_v37  ;;  %v1189_v38 = vpop.f32.mrf.mxu1  ;;  %v2541_v37 = vrot.slane %v2539_v30, 5 }
 0x101   : > { %v6197_v28 = vpop.f32.mrf.mxu0 }
 0x102   : > { %6395 = vmatmul.mubr.msk.bf16.gmra.mxu0 %vm746_vm3, %v9033_v49  ;;  %v7720_v36 = vadd.f32 %v6231_v44, %v6197_v28  ;;  %v6235_v29 = vpop.f32.mrf.mxu1  ;;  %v2543_v49 = vshrl.u32 %v7711_v52, 16  ;;  %v2532_v44 = vrot.slane %v2530_v17, 4 }
 0x103   : > { %6437 = vmatmul.mubr.msk.bf16.gmra.mxu1 %vm746_vm3, %v9053_v41  ;;  %6398 = vmatprep.mubr.msk.bf16.mxu0 %vm746_vm3, %v9037_v61  ;;  %v884_v62 = vpop.f32.mrf.mxu0  ;;  %v2535_v61 = vrot.slane %v2533_v60, 5 }
 0x104   : > { %6440 = vmatprep.mubr.msk.bf16.mxu1 %vm746_vm3, %v9055_v22  ;;  %v7729_v41 = vadd.f32 %v1176_v46, %v884_v62  ;;  %v7731_v9 = vpop.f32.mrf.mxu1  ;;  %v2545_v28 = vrot.slane %v2543_v49, 4 }
 0x105   : > { %9057 = vst [vmem:[#allocation16_spill] sm:$0xff] %v7731_v9 }
 0x106   : > { %v6200_v56 = vpop.f32.mrf.mxu0  ;;  %v2546_v60 = vor.u32 %v2545_v28, %v2541_v37 }
 0x107   : > { %v7733_v50 = vadd.f32 %v6234_v31, %v6200_v56  ;;  %v6238_v22 = vpop.f32.mrf.mxu1  ;;  %v2536_v31 = vor.u32 %v2535_v61, %v2532_v44 }
 0x108   : > { %v897_v24 = vpop.f32.mrf.mxu0  ;;  %v2547_v56 = vrot.slane %v2546_v60, 4 }
 0x109   : > { %v7738_v34 = vadd.f32 %v1189_v38, %v897_v24  ;;  %v1205_v62 = vpop.f32.mrf.mxu1  ;;  %v2549_v24 = vshll.u32 %v7736_v10, 16  ;;  %v2537_v30 = vrot.slane %v2536_v31, 4 }
 0x10a   : > { %6399 = vmatmul.mubr.msk.bf16.gmra.mxu0 %vm746_vm3, %v9038_v14  ;;  %v6201_v46 = vpop.f32.mrf.mxu0 }
 0x10b   : > { %6441 = vmatmul.mubr.msk.bf16.gmra.mxu1 %vm746_vm3, %v7272_v13  ;;  %v7744_v17 = vadd.f32 %v6235_v29, %v6201_v46  ;;  %6402 = vmatprep.mubr.msk.bf16.mxu0 %vm746_vm3, %v9039_v6  ;;  %v6239_v14 = vpop.f32.mrf.mxu1  ;;  %v2551_v13 = vrot.slane %v2549_v24, 5  ;;  %v2542_v61 = vsel %vm6888_vm4, %v2537_v30, %v2541_v37 }
 0x10c   : > { %6444 = vmatprep.mubr.msk.bf16.mxu1 %vm746_vm3, %v9056_v53  ;;  %v7751_v38 = vpop.f32.mrf.mxu0 }
 0x10d   : > { %9058 = vst [vmem:[#allocation17_spill] sm:$0xff] %v7751_v38  ;;  %v7753_v49 = vpop.f32.mrf.mxu1  ;;  %v2552_v28 = vsel %vm6888_vm4, %v2547_v56, %v2551_v13 }
 0x10e   : > { %9059 = vst [vmem:[#allocation19_spill] sm:$0xff] %v7753_v49 }
 0x10f   : > { %v6204_v29 = vpop.f32.mrf.mxu0 }
 0x110   : > { %v7755_v46 = vadd.f32 %v6238_v22, %v6204_v29  ;;  %v6242_v9 = vpop.f32.mrf.mxu1 }
 0x111   : > { %v913_v6 = vpop.f32.mrf.mxu0 }
 0x112   : > { %6403 = vmatmul.mubr.msk.bf16.gmra.mxu0 %vm746_vm3, %v9040_v2  ;;  %v7761_v53 = vadd.f32 %v1205_v62, %v913_v6  ;;  %v1221_v44 = vpop.f32.mrf.mxu1  ;;  %v5335_v62 = vcombine.low %v2542_v61, %v2552_v28 }
 0x113   : > { %6445 = vmatmul.mubr.msk.bf16.gmra.mxu1 %vm746_vm3, %v7337_v20  ;;  %6406 = vmatprep.mubr.msk.bf16.mxu0 %vm746_vm3, %v9041_v26  ;;  %v6205_v2 = vpop.f32.mrf.mxu0 }
 0x114   : > { %6448 = vmatprep.mubr.msk.bf16.mxu1 %vm746_vm3, %v7534_v57  ;;  %v7771_v22 = vadd.f32 %v6239_v14, %v6205_v2  ;;  %v6243_v31 = vpop.f32.mrf.mxu1 }
 0x115   : > { %v7773_v20 = vpop.f32.mrf.mxu0 }
 0x116   : > { %9060 = vst [vmem:[#allocation20_spill] sm:$0xff] %v7773_v20  ;;  %v7775_v60 = vpop.f32.mrf.mxu1 }
 0x117   : > { %9061 = vst [vmem:[#allocation22_spill] sm:$0xff] %v7775_v60  ;;  %v6208_v26 = vpop.f32.mrf.mxu0 }
 0x118   : > { %v7777_v24 = vadd.f32 %v6242_v9, %v6208_v26 }
 0x119   : > { %v929_v57 = vpop.f32.mrf.mxu0  ;;  %v6246_v37 = vpop.f32.mrf.mxu1 }
 0x11a   : > { %6407 = vmatmul.mubr.msk.bf16.gmra.mxu0 %vm746_vm3, %v9042_v15  ;;  %v7782_v35 = vadd.f32 %v1221_v44, %v929_v57 }
 0x11b   : > { %6449 = vmatmul.mubr.msk.bf16.gmra.mxu1 %vm746_vm3, %v5335_v62  ;;  %6410 = vmatprep.mubr.msk.bf16.mxu0 %vm746_vm3, %v7266_v3  ;;  %v6209_v14 = vpop.f32.mrf.mxu0  ;;  %v1237_v30 = vpop.f32.mrf.mxu1 }
 0x11c   : > { %v7786_v56 = vadd.f32 %v6243_v31, %v6209_v14  ;;  %v5317_v31 = vcombine.low %v7708_v45, %v7711_v52 }
 0x11d   : > { %v7788_v13 = vpop.f32.mrf.mxu0  ;;  %v6247_v9 = vpop.f32.mrf.mxu1 }
 0x11e   : > { %9062 = vst [vmem:[#allocation24_spill] sm:$0xff] %v7788_v13 }
 0x11f   : > { %v7790_v29 = vpop.f32.mrf.mxu1 }
 0x120   : > { %9063 = vst [vmem:[#allocation26_spill] sm:$0xff] %v7790_v29 }
 0x121   : > { %v6286_v15 = vpop.f32.mrf.mxu1 }
 0x122   : > { %v6212_v6 = vpop.f32.mrf.mxu0  ;;  %6411 = vmatmul.mubr.msk.bf16.gmra.mxu0 %vm746_vm3, %v7285_v4 }
 0x123   : > { %v7794_v61 = vadd.f32 %v6246_v37, %v6212_v6  ;;  %6414 = vmatprep.mubr.msk.bf16.mxu0 %vm746_vm3, %v7558_v7  ;;  %v1724_v44 = vpop.f32.mrf.mxu1 }
 0x124   : > { %v945_v3 = vpop.f32.mrf.mxu0 }
 0x125   : > { %v7798_v28 = vadd.f32 %v1237_v30, %v945_v3  ;;  %v6287_v62 = vpop.f32.mrf.mxu1 }
 0x126   : > { %v6213_v2 = vpop.f32.mrf.mxu0 }
 0x127   : > { %9064 = vst [vmem:[#allocation6_spill] sm:$0xff] %v7798_v28  ;;  %v7802_v26 = vadd.f32 %v6247_v9, %v6213_v2  ;;  %v7806_v4 = vpop.f32.mrf.mxu1 }
 0x128   : > { %v7804_v57 = vpop.f32.mrf.mxu0  ;;  %9067 = vst [vmem:[#allocation31_spill] sm:$0xff] %v7806_v4 }
 0x129   : > { %9065 = vst [vmem:[#allocation28_spill] sm:$0xff] %v7802_v26  ;;  %9066 = vst [vmem:[#allocation8_spill] sm:$0xff] %v7804_v57  ;;  %v6290_v14 = vpop.f32.mrf.mxu1 }
 0x12a   : > { %v6218_v37 = vpop.f32.mrf.mxu0  ;;  %6415 = vmatmul.mubr.msk.bf16.gmra.mxu0 %vm746_vm3, %v5317_v31 }
 0x12b   : > { %6454 = vmatprep.mubr.msk.bf16.mxu0 %vm746_vm3, %v7344_v25  ;;  %v1740_v30 = vpop.f32.mrf.mxu1  ;;  %v1134_v9 = vadd.f32 %v6218_v37, %v7650_v23 }
 0x12c   : > { %v1125_v7 = vpop.f32.mrf.mxu0 }
 0x12d   : > { %v6291_v3 = vpop.f32.mrf.mxu1  ;;  %v1126_v31 = vadd.f32 %v1125_v7, %v7658_v19 }
 0x12e   : > { %v6219_v6 = vpop.f32.mrf.mxu0 }
 0x12f   : > { %v7811_v60 = vpop.f32.mrf.mxu1  ;;  %v1137_v20 = vadd.f32 %v6219_v6, %v7660_v58 }
 0x130   : > { %v1128_v29 = vpop.f32.mrf.mxu0  ;;  %9068 = vst [vmem:[#allocation9_spill] sm:$0xff] %v7811_v60 }
 0x131   : > { %v6294_v57 = vpop.f32.mrf.mxu1  ;;  %v1129_v37 = vadd.f32 %v1128_v29, %v7662_v39 }
 0x132   : > { %v6252_v2 = vpop.f32.mrf.mxu0  ;;  %6455 = vmatmul.mubr.msk.bf16.vlgmr.msra.gmra.mxu0 %vm746_vm3, %v7368_v43 }
 0x133   : > { %v1647_v13 = vadd.f32 %v6252_v2, %v1134_v9  ;;  %6458 = vmatprep.mubr.msk.bf16.mxu0 %vm746_vm3, %v7382_v54  ;;  %v1756_v49 = vpop.f32.mrf.mxu1 }
 0x134   : > { %v1518_v25 = vpop.f32.mrf.mxu0 }
 0x135   : > { %v1645_v38 = vadd.f32 %v1518_v25, %v1126_v31  ;;  %v7820_v4 = vadd.f32 %v6286_v15, %v1647_v13  ;;  %v6295_v23 = vpop.f32.mrf.mxu1 }
 0x136   : > { %v6253_v60 = vpop.f32.mrf.mxu0 }
 0x137   : > { %v1648_v26 = vadd.f32 %v6253_v60, %v1137_v20  ;;  %v7823_v43 = vadd.f32 %v1724_v44, %v1645_v38  ;;  %v7825_v19 = vpop.f32.mrf.mxu1 }
 0x138   : > { %v1521_v28 = vpop.f32.mrf.mxu0 }
 0x139   : > { %v7827_v7 = vadd.f32 %v1521_v28, %v1129_v37  ;;  %v7829_v54 = vadd.f32 %v6287_v62, %v1648_v26 }
 0x13a   : > { %v6256_v9 = vpop.f32.mrf.mxu0  ;;  %6459 = vmatmul.mubr.msk.bf16.gmra.mxu0 %vm746_vm3, %v7392_v42 }
 0x13b   : > { %v6298_v58 = vpop.f32.mrf.mxu1  ;;  %v1651_v13 = vadd.f32 %v6256_v9, %v7672_v59  ;;  %6462 = vmatprep.mubr.msk.bf16.mxu0 %vm746_vm3, %v7394_v51 }
 0x13c   : > { %v1534_v39 = vpop.f32.mrf.mxu0 }
 0x13d   : > { %v1772_v38 = vpop.f32.mrf.mxu1  ;;  %v1649_v20 = vadd.f32 %v1534_v39, %v7674_v12  ;;  %v7837_v60 = vadd.f32 %v6290_v14, %v1651_v13 }
 0x13e   : > { %v6257_v29 = vpop.f32.mrf.mxu0 }
 0x13f   : > { %v6299_v15 = vpop.f32.mrf.mxu1  ;;  %v1652_v44 = vadd.f32 %v6257_v29, %v7676_v40  ;;  %v7840_v28 = vadd.f32 %v1740_v30, %v1649_v20 }
 0x140   : > { %v1537_v62 = vpop.f32.mrf.mxu0 }
 0x141   : > { %v7842_v42 = vpop.f32.mrf.mxu1  ;;  %v7845_v59 = vadd.f32 %v1537_v62, %v7683_v21  ;;  %v7847_v26 = vadd.f32 %v6291_v3, %v1652_v44 }
 0x142   : > { %v6260_v51 = vpop.f32.mrf.mxu0  ;;  %6463 = vmatmul.mubr.msk.bf16.gmra.mxu0 %vm746_vm3, %v7413_v55 }
 0x143   : > { %v6302_v12 = vpop.f32.mrf.mxu1  ;;  %v1655_v14 = vadd.f32 %v6260_v51, %v7689_v48  ;;  %6466 = vmatprep.mubr.msk.bf16.mxu0 %vm746_vm3, %v7430_v8 }
 0x144   : > { %v1550_v40 = vpop.f32.mrf.mxu0 }
 0x145   : > { %v1788_v30 = vpop.f32.mrf.mxu1  ;;  %v1653_v6 = vadd.f32 %v1550_v40, %v7691_v32  ;;  %v7855_v2 = vadd.f32 %v6294_v57, %v1655_v14 }
 0x146   : > { %v6261_v21 = vpop.f32.mrf.mxu0 }
 0x147   : > { %v6303_v31 = vpop.f32.mrf.mxu1  ;;  %v1656_v3 = vadd.f32 %v6261_v21, %v7693_v18  ;;  %v7858_v25 = vadd.f32 %v1756_v49, %v1653_v6 }
 0x148   : > { %v1553_v37 = vpop.f32.mrf.mxu0 }
 0x149   : > { %v7860_v55 = vpop.f32.mrf.mxu1  ;;  %v7863_v48 = vadd.f32 %v1553_v37, %v7699_v0  ;;  %v7865_v9 = vadd.f32 %v6295_v23, %v1656_v3 }
 0x14a   : > { %v6264_v8 = vpop.f32.mrf.mxu0  ;;  %6467 = vmatmul.mubr.msk.bf16.gmra.mxu0 %vm746_vm3, %v7436_v33 }
 0x14b   : > { %v6306_v32 = vpop.f32.mrf.mxu1  ;;  %v1659_v57 = vadd.f32 %v6264_v8, %v7705_v5  ;;  %6470 = vmatprep.mubr.msk.bf16.mxu0 %vm746_vm3, %v7446_v11 }
 0x14c   : > { %v1566_v18 = vpop.f32.mrf.mxu0 }
 0x14d   : > { %v1804_v49 = vpop.f32.mrf.mxu1  ;;  %v1657_v13 = vadd.f32 %v1566_v18, %v7713_v1  ;;  %v7873_v39 = vadd.f32 %v6298_v58, %v1659_v57  ;;  %v5352_v57 = vrot.slane %v7708_v45, 9 }
 0x14e   : > { %v6265_v0 = vpop.f32.mrf.mxu0 }
 0x14f   : > { %v6307_v20 = vpop.f32.mrf.mxu1  ;;  %v1660_v23 = vadd.f32 %v6265_v0, %v7720_v36  ;;  %v7876_v29 = vadd.f32 %v1772_v38, %v1657_v13  ;;  %v2763_v0 = vrot.slane %v7736_v10, 5 }
 0x150   : > { %v1569_v44 = vpop.f32.mrf.mxu0 }
 0x151   : > { %v7878_v33 = vpop.f32.mrf.mxu1  ;;  %v7881_v5 = vadd.f32 %v1569_v44, %v7729_v41  ;;  %v7883_v62 = vadd.f32 %v6299_v15, %v1660_v23 }
 0x152   : > { %9069 = vst [vmem:[#allocation11_spill] sm:$0xff] %v7878_v33  ;;  %v6268_v11 = vpop.f32.mrf.mxu0  ;;  %6471 = vmatmul.mubr.msk.bf16.gmra.mxu0 %vm746_vm3, %v7456_v63 }
 0x153   : > { %v6310_v1 = vpop.f32.mrf.mxu1  ;;  %v1663_v58 = vadd.f32 %v6268_v11, %v7733_v50  ;;  %6474 = vmatprep.mubr.msk.bf16.mxu0 %vm746_vm3, %v7475_v47  ;;  %v9073_v11 = vld [vmem:[#allocation14_spill] sm:$0xff] }
 0x154   : > { %v1582_v36 = vpop.f32.mrf.mxu0 }
 0x155   : > { %v1820_v38 = vpop.f32.mrf.mxu1  ;;  %v1661_v51 = vadd.f32 %v1582_v36, %v7738_v34  ;;  %v7891_v14 = vadd.f32 %v6302_v12, %v1663_v58 }
 0x156   : > { %v6269_v41 = vpop.f32.mrf.mxu0 }
 0x157   : > { %v6311_v40 = vpop.f32.mrf.mxu1  ;;  %v1664_v15 = vadd.f32 %v6269_v41, %v7744_v17  ;;  %v7894_v6 = vadd.f32 %v1788_v30, %v1661_v51  ;;  %v2760_v17 = vrot.slane %v7711_v52, 5 }
 0x158   : > { %v7896_v21 = vpop.f32.mrf.mxu0 }
 0x159   : > { %v7898_v63 = vpop.f32.mrf.mxu1  ;;  %v7900_v50 = vadd.f32 %v6303_v31, %v1664_v15 }
 0x15a   : > { %9070 = vst [vmem:[#allocation15_spill] sm:$0xff] %v7898_v63  ;;  %v6272_v3 = vpop.f32.mrf.mxu0  ;;  %6475 = vmatmul.mubr.msk.bf16.gmra.mxu0 %vm746_vm3, %v7481_v16 }
 0x15b   : > { %v6314_v47 = vpop.f32.mrf.mxu1  ;;  %v1667_v34 = vadd.f32 %v6272_v3, %v7755_v46  ;;  %6478 = vmatprep.mubr.msk.bf16.mxu0 %vm746_vm3, %v7509_v27  ;;  %v2762_v46 = vrot.slane %v2760_v17, 4 }
 0x15c   : > { %v1598_v12 = vpop.f32.mrf.mxu0 }
 0x15d   : > { %v1836_v30 = vpop.f32.mrf.mxu1  ;;  %v1665_v37 = vadd.f32 %v1598_v12, %v7761_v53  ;;  %v7909_v8 = vadd.f32 %v6306_v32, %v1667_v34  ;;  %v9072_v32 = vld [vmem:[#allocation12_spill] sm:$0xff]  ;;  %v2764_v10 = vsel %vm7295_vm7, %v2762_v46, %v2763_v0  ;;  %v9076_v46 = vld [vmem:[#allocation6_spill] sm:$0xff] }
 0x15e   : > { %v6273_v31 = vpop.f32.mrf.mxu0 }
 0x15f   : > { %v6315_v18 = vpop.f32.mrf.mxu1  ;;  %v1668_v16 = vadd.f32 %v6273_v31, %v7771_v22  ;;  %v7913_v13 = vadd.f32 %v1804_v49, %v1665_v37  ;;  %v2761_v49 = vsel %vm7295_vm7, %v5352_v57, %v2760_v17 }
 0x160   : > { %v7916_v27 = vpop.f32.mrf.mxu0  ;;  %v5354_v15 = vcombine.low %v2761_v49, %v2764_v10 }
 0x161   : > { %v7918_v52 = vpop.f32.mrf.mxu1  ;;  %v7920_v23 = vadd.f32 %v6307_v20, %v1668_v16 }
 0x162   : > { %9071 = vst [vmem:[#allocation21_spill] sm:$0xff] %v7918_v52  ;;  %v6276_v53 = vpop.f32.mrf.mxu0  ;;  %6479 = vmatmul.mubr.msk.bf16.gmra.mxu0 %vm746_vm3, %v9072_v32  ;;  %v9077_v32 = vld [vmem:[#allocation28_spill] sm:$0xff] }
 0x163   : > { %v6354_v44 = vpop.f32.mrf.mxu1  ;;  %v1671_v45 = vadd.f32 %v6276_v53, %v7777_v24  ;;  %6482 = vmatprep.mubr.msk.bf16.mxu0 %vm746_vm3, %v9073_v11 }
 0x164   : > { %v1614_v58 = vpop.f32.mrf.mxu0 }
 0x165   : > { %v2164_v36 = vpop.f32.mrf.mxu1  ;;  %v1669_v20 = vadd.f32 %v1614_v58, %v7782_v35  ;;  %v7932_v51 = vadd.f32 %v6310_v1, %v1671_v45 }
 0x166   : > { %v6277_v41 = vpop.f32.mrf.mxu0 }
 0x167   : > { %v6355_v3 = vpop.f32.mrf.mxu1  ;;  %v1672_v24 = vadd.f32 %v6277_v41, %v7786_v56  ;;  %v7935_v34 = vadd.f32 %v1820_v38, %v1669_v20 }
 0x168   : > { %v7937_v12 = vpop.f32.mrf.mxu0 }
 0x169   : > { %9075 = vst [vmem:[#allocation25_spill] sm:$0xff] %v7937_v12  ;;  %v7939_v37 = vpop.f32.mrf.mxu1  ;;  %v7941_v17 = vadd.f32 %v6311_v40, %v1672_v24 }
 0x16a   : > { %v6280_v31 = vpop.f32.mrf.mxu0  ;;  %6483 = vmatmul.mubr.msk.bf16.gmra.mxu0 %vm746_vm3, %v5354_v15 }
 0x16b   : > { %v6358_v57 = vpop.f32.mrf.mxu1  ;;  %v1675_v35 = vadd.f32 %v6280_v31, %v7794_v61 }
 0x16c   : > { %v1630_v1 = vpop.f32.mrf.mxu0 }
 0x16d   : > { %v2180_v16 = vpop.f32.mrf.mxu1  ;;  %v1673_v0 = vadd.f32 %v1630_v1, %v9076_v46  ;;  %v7946_v53 = vadd.f32 %v6314_v47, %v1675_v35 }
 0x16e   : > { %v6281_v56 = vpop.f32.mrf.mxu0 }
 0x16f   : > { %v6359_v38 = vpop.f32.mrf.mxu1  ;;  %v1676_v45 = vadd.f32 %v6281_v56, %v9077_v32  ;;  %v7949_v11 = vadd.f32 %v1836_v30, %v1673_v0 }
 0x170   : > { %v7951_v40 = vpop.f32.mrf.mxu0 }
 0x171   : > { %9078 = vst [vmem:[#allocation29_spill] sm:$0xff] %v7951_v40  ;;  %v7953_v22 = vpop.f32.mrf.mxu1  ;;  %v7955_v49 = vadd.f32 %v6315_v18, %v1676_v45 }
 0x172   : > { %v6320_v10 = vpop.f32.mrf.mxu0 }
 0x173   : > { %v6362_v61 = vpop.f32.mrf.mxu1  ;;  %v2081_v58 = vadd.f32 %v6320_v10, %v7820_v4 }
 0x174   : > { %v1952_v20 = vpop.f32.mrf.mxu0 }
 0x175   : > { %v2196_v41 = vpop.f32.mrf.mxu1  ;;  %v2079_v47 = vadd.f32 %v1952_v20, %v7823_v43  ;;  %v7959_v15 = vadd.f32 %v6354_v44, %v2081_v58 }
 0x176   : > { %v6321_v24 = vpop.f32.mrf.mxu0 }
 0x177   : > { %v6363_v31 = vpop.f32.mrf.mxu1  ;;  %v2082_v30 = vadd.f32 %v6321_v24, %v7829_v54  ;;  %v7962_v35 = vadd.f32 %v2164_v36, %v2079_v47 }
 0x178   : > { %v7964_v1 = vpop.f32.mrf.mxu0 }
 0x179   : > { %v7966_v18 = vpop.f32.mrf.mxu1  ;;  %v7968_v46 = vadd.f32 %v6355_v3, %v2082_v30 }
 0x17a   : > { %v6324_v0 = vpop.f32.mrf.mxu0 }
 0x17b   : > { %v6366_v4 = vpop.f32.mrf.mxu1  ;;  %v2085_v56 = vadd.f32 %v6324_v0, %v7837_v60 }
 0x17c   : > { %v1968_v32 = vpop.f32.mrf.mxu0 }
 0x17d   : > { %v2212_v43 = vpop.f32.mrf.mxu1  ;;  %v2083_v44 = vadd.f32 %v1968_v32, %v7840_v28  ;;  %v7972_v45 = vadd.f32 %v6358_v57, %v2085_v56 }
 0x17e   : > { %v6325_v10 = vpop.f32.mrf.mxu0 }
 0x17f   : > { %v6367_v54 = vpop.f32.mrf.mxu1  ;;  %v2086_v36 = vadd.f32 %v6325_v10, %v7847_v26  ;;  %v7975_v58 = vadd.f32 %v2180_v16, %v2083_v44 }
 0x180   : > { %v7977_v20 = vpop.f32.mrf.mxu0 }
 0x181   : > { %v7979_v3 = vpop.f32.mrf.mxu1  ;;  %v7981_v47 = vadd.f32 %v6359_v38, %v2086_v36 }
 0x182   : > { %v6328_v24 = vpop.f32.mrf.mxu0 }
 0x183   : > { %v6370_v60 = vpop.f32.mrf.mxu1  ;;  %v2089_v30 = vadd.f32 %v6328_v24, %v7855_v2 }
 0x184   : > { %v1984_v0 = vpop.f32.mrf.mxu0 }
 0x185   : > { %v2228_v28 = vpop.f32.mrf.mxu1  ;;  %v2087_v57 = vadd.f32 %v1984_v0, %v7858_v25  ;;  %v7985_v56 = vadd.f32 %v6362_v61, %v2089_v30 }
 0x186   : > { %v6329_v32 = vpop.f32.mrf.mxu0 }
 0x187   : > { %v6371_v26 = vpop.f32.mrf.mxu1  ;;  %v2090_v16 = vadd.f32 %v6329_v32, %v7865_v9  ;;  %v7988_v44 = vadd.f32 %v2196_v41, %v2087_v57 }
 0x188   : > { %v7990_v10 = vpop.f32.mrf.mxu0 }
 0x189   : > { %v7992_v38 = vpop.f32.mrf.mxu1  ;;  %v7994_v36 = vadd.f32 %v6363_v31, %v2090_v16 }
 0x18a   : > { %v6332_v52 = vpop.f32.mrf.mxu0 }
 0x18b   : > { %v6374_v2 = vpop.f32.mrf.mxu1  ;;  %v2093_v24 = vadd.f32 %v6332_v52, %v7873_v39 }
 0x18c   : > { %v2000_v40 = vpop.f32.mrf.mxu0 }
 0x18d   : > { %v2244_v25 = vpop.f32.mrf.mxu1  ;;  %v2091_v61 = vadd.f32 %v2000_v40, %v7876_v29  ;;  %v7998_v30 = vadd.f32 %v6366_v4, %v2093_v24 }
 0x18e   : > { %v6333_v0 = vpop.f32.mrf.mxu0 }
 0x18f   : > { %v6375_v9 = vpop.f32.mrf.mxu1  ;;  %v2094_v41 = vadd.f32 %v6333_v0, %v7883_v62  ;;  %v8001_v57 = vadd.f32 %v2212_v43, %v2091_v61 }
 0x190   : > { %v8003_v32 = vpop.f32.mrf.mxu0 }
 0x191   : > { %v8005_v31 = vpop.f32.mrf.mxu1  ;;  %v8007_v16 = vadd.f32 %v6367_v54, %v2094_v41 }
 0x192   : > { %9079 = vst [vmem:[#allocation32_spill] sm:$0xff] %v8005_v31  ;;  %v6336_v63 = vpop.f32.mrf.mxu0 }
 0x193   : > { %v6378_v39 = vpop.f32.mrf.mxu1  ;;  %v2097_v52 = vadd.f32 %v6336_v63, %v7891_v14 }
 0x194   : > { %v2016_v12 = vpop.f32.mrf.mxu0 }
 0x195   : > { %v2260_v29 = vpop.f32.mrf.mxu1  ;;  %v2095_v40 = vadd.f32 %v2016_v12, %v7894_v6  ;;  %v8011_v4 = vadd.f32 %v6370_v60, %v2097_v52 }
 0x196   : > { %v6337_v24 = vpop.f32.mrf.mxu0 }
 0x197   : > { %v6379_v62 = vpop.f32.mrf.mxu1  ;;  %v2098_v43 = vadd.f32 %v6337_v24, %v7900_v50  ;;  %v8014_v61 = vadd.f32 %v2228_v28, %v2095_v40 }
 0x198   : > { %v8016_v0 = vpop.f32.mrf.mxu0 }
 0x199   : > { %v8018_v54 = vpop.f32.mrf.mxu1  ;;  %v8020_v41 = vadd.f32 %v6371_v26, %v2098_v43 }
 0x19a   : > { %9080 = vst [vmem:[#allocation2_spill] sm:$0xff] %v8018_v54  ;;  %v6340_v31 = vpop.f32.mrf.mxu0 }
 0x19b   : > { %v6382_v14 = vpop.f32.mrf.mxu1  ;;  %v2101_v63 = vadd.f32 %v6340_v31, %v7909_v8 }
 0x19c   : > { %v2032_v33 = vpop.f32.mrf.mxu0 }
 0x19d   : > { %v2276_v6 = vpop.f32.mrf.mxu1  ;;  %v2099_v12 = vadd.f32 %v2032_v33, %v7913_v13  ;;  %v8024_v60 = vadd.f32 %v6374_v2, %v2101_v63 }
 0x19e   : > { %v6341_v52 = vpop.f32.mrf.mxu0 }
 0x19f   : > { %v8026_v50 = vpop.f32.mrf.mxu1  ;;  %v2102_v28 = vadd.f32 %v6341_v52, %v7920_v23  ;;  %v8029_v40 = vadd.f32 %v2244_v25, %v2099_v12 }
 0x1a0   : > { %9081 = vst [vmem:[#allocation3_spill] sm:$0xff] %v8026_v50  ;;  %v8031_v24 = vpop.f32.mrf.mxu0 }
 0x1a1   : > { %v8033_v26 = vadd.f32 %v6375_v9, %v2102_v28  ;;  %v8035_v54 = vpop.f32.mrf.mxu1 }
 0x1a2   : > { %v6344_v43 = vpop.f32.mrf.mxu0  ;;  %9082 = vst [vmem:[#allocation4_spill] sm:$0xff] %v8035_v54 }
 0x1a3   : > { %v2105_v8 = vadd.f32 %v6344_v43, %v7932_v51  ;;  %v6422_v63 = vpop.f32.mrf.mxu1 }
 0x1a4   : > { %v2048_v31 = vpop.f32.mrf.mxu0 }
 0x1a5   : > { %v2103_v33 = vadd.f32 %v2048_v31, %v7935_v34  ;;  %v8039_v13 = vadd.f32 %v6378_v39, %v2105_v8  ;;  %v2598_v28 = vpop.f32.mrf.mxu1 }
 0x1a6   : > { %v6345_v2 = vpop.f32.mrf.mxu0 }
 0x1a7   : > { %v2106_v23 = vadd.f32 %v6345_v2, %v7941_v17  ;;  %v8042_v25 = vadd.f32 %v2260_v29, %v2103_v33  ;;  %v6423_v8 = vpop.f32.mrf.mxu1  ;;  %v6633_v29 = vld [vmem:[%s8921_s4 + $0x18] sm:$0xff]  }
 0x1a8   : > { %v8044_v12 = vpop.f32.mrf.mxu0  ;;  %6486 = vmatprep.subr.bf16.mxu0 %v6633_v29 }
 0x1a9   : > { %9083 = vst [vmem:[#allocation5_spill] sm:$0xff] %v8044_v12  ;;  %v8046_v9 = vadd.f32 %v6379_v62, %v2106_v23  ;;  %v8062_v33 = vpop.f32.mrf.mxu1  ;;  %6487 = vmatpush3.bf16.msra.mxu0 %v6633_v29 }
 0x1aa   : > { %v6348_v52 = vpop.f32.mrf.mxu0 }
 0x1ab   : > { %v2109_v54 = vadd.f32 %v6348_v52, %v7946_v53  ;;  %v6426_v23 = vpop.f32.mrf.mxu1 }
 0x1ac   : > { %v2064_v51 = vpop.f32.mrf.mxu0 }
 0x1ad   : > { %v2107_v43 = vadd.f32 %v2064_v51, %v7949_v11  ;;  %v8050_v34 = vadd.f32 %v6382_v14, %v2109_v54  ;;  %v2614_v29 = vpop.f32.mrf.mxu1 }
 0x1ae   : > { %v6349_v39 = vpop.f32.mrf.mxu0 }
 0x1af   : > { %v8053_v31 = vadd.f32 %v6349_v39, %v7955_v49  ;;  %v8055_v17 = vadd.f32 %v2276_v6, %v2107_v43  ;;  %v6634_v49 = vld [vmem:[%s8921_s4 + $0x10] sm:$0xff]  }
 0x1b0   : > { %v8060_v62 = vpop.f32.mrf.mxu0  ;;  %6488 = vmatprep.subr.bf16.mxu0 %v6634_v49 }
 0x1b1   : > { %9084 = vst [vmem:[#allocation7_spill] sm:$0xff] %v8053_v31  ;;  %9085 = vst [vmem:[#allocation10_spill] sm:$0xff] %v8060_v62  ;;  %6489 = vmatpush3.bf16.msra.mxu0 %v6634_v49 }
 0x1b2   : > { %v6388_v53 = vpop.f32.mrf.mxu0 }
 0x1b3   : > { %v2499_v11 = vadd.f32 %v6388_v53, %v7959_v15 }
 0x1b4   : > { %v2370_v54 = vpop.f32.mrf.mxu0 }
 0x1b5   : > { %v2497_v14 = vadd.f32 %v2370_v54, %v7962_v35  ;;  %v8069_v6 = vadd.f32 %v6422_v63, %v2499_v11  ;;  %v6427_v54 = vpop.f32.mrf.mxu1 }
 0x1b6   : > { %v6389_v2 = vpop.f32.mrf.mxu0 }
 0x1b7   : > { %v2500_v52 = vadd.f32 %v6389_v2, %v7968_v46  ;;  %v8072_v51 = vadd.f32 %v2598_v28, %v2497_v14 }
 0x1b8   : > { %v8074_v43 = vpop.f32.mrf.mxu0 }
 0x1b9   : > { %v8076_v15 = vadd.f32 %v6423_v8, %v2500_v52 }
 0x1ba   : > { %v6392_v39 = vpop.f32.mrf.mxu0 }
 0x1bb   : > { %v2503_v53 = vadd.f32 %v6392_v39, %v7972_v45 }
 0x1bc   : > { %v2386_v50 = vpop.f32.mrf.mxu0 }
 0x1bd   : > { %v2501_v35 = vadd.f32 %v2386_v50, %v7975_v58  ;;  %v8080_v63 = vadd.f32 %v6426_v23, %v2503_v53 }
 0x1be   : > { %v6393_v11 = vpop.f32.mrf.mxu0 }
 0x1bf   : > { %v2504_v49 = vadd.f32 %v6393_v11, %v7981_v47  ;;  %v8083_v46 = vadd.f32 %v2614_v29, %v2501_v35  ;;  %v8103_v29 = vpop.f32.mrf.mxu1 }
 0x1c0   : > { %v8085_v28 = vpop.f32.mrf.mxu0 }
 0x1c1   : > { %v8087_v14 = vadd.f32 %v6427_v54, %v2504_v49  ;;  %v8111_v11 = vpop.f32.mrf.mxu1 }
 0x1c2   : > { %v6396_v8 = vpop.f32.mrf.mxu0 }
 0x1c3   : > { %v8090_v2 = vadd.f32 %v6396_v8, %v7985_v56 }
 0x1c4   : > { %v2402_v45 = vpop.f32.mrf.mxu0 }
 0x1c5   : > { %v8093_v52 = vadd.f32 %v2402_v45, %v7988_v44 }
 0x1c6   : > { %v6397_v58 = vpop.f32.mrf.mxu0 }
 0x1c7   : > { %v8096_v50 = vadd.f32 %v6397_v58, %v7994_v36 }
 0x1c8   : > { %v8098_v23 = vpop.f32.mrf.mxu0 }
 0x1ca   : > { %v6400_v47 = vpop.f32.mrf.mxu0 }
 0x1cb   : > { %v8101_v39 = vadd.f32 %v6400_v47, %v7998_v30  ;;  %v8118_v30 = vpop.f32.mrf.mxu1 }
 0x1cc   : > { %v2418_v53 = vpop.f32.mrf.mxu0 }
 0x1cd   : > { %v8106_v56 = vadd.f32 %v2418_v53, %v8001_v57  ;;  %v6637_v57 = vld [vmem:[%s8918_s1 + $0x4] ss:$8 sps:$4 sm:$0xff]   ;;  %v8129_v47 = vpop.f32.mrf.mxu1 }
 0x1ce   : > { %v6401_v35 = vpop.f32.mrf.mxu0  ;;  %3136 = vmatprep.mubr.bf16.mxu1 %v6637_v57 }
 0x1cf   : > { %v8109_v44 = vadd.f32 %v6401_v35, %v8007_v16 }
 0x1d0   : > { %v8113_v36 = vpop.f32.mrf.mxu0 }
 0x1d2   : > { %v6404_v54 = vpop.f32.mrf.mxu0 }
 0x1d3   : > { %v8116_v49 = vadd.f32 %v6404_v54, %v8011_v4  ;;  %v8136_v54 = vpop.f32.mrf.mxu1 }
 0x1d4   : > { %v2434_v8 = vpop.f32.mrf.mxu0 }
 0x1d5   : > { %v8124_v45 = vadd.f32 %v2434_v8, %v8014_v61 }
 0x1d6   : > { %v6405_v16 = vpop.f32.mrf.mxu0 }
 0x1d7   : > { %v8127_v58 = vadd.f32 %v6405_v16, %v8020_v41  ;;  %v8144_v41 = vpop.f32.mrf.mxu1 }
 0x1d8   : > { %v8131_v53 = vpop.f32.mrf.mxu0 }
 0x1da   : > { %v6408_v4 = vpop.f32.mrf.mxu0 }
 0x1db   : > { %v8134_v35 = vadd.f32 %v6408_v4, %v8024_v60  ;;  %v8151_v60 = vpop.f32.mrf.mxu1 }
 0x1dc   : > { %v2450_v31 = vpop.f32.mrf.mxu0 }
 0x1dd   : > { %9086 = vst [vmem:[#allocation13_spill] sm:$0xff] %v8134_v35  ;;  %v8139_v62 = vadd.f32 %v2450_v31, %v8029_v40 }
 0x1de   : > { %v6409_v61 = vpop.f32.mrf.mxu0 }
 0x1df   : > { %9087 = vst [vmem:[#allocation18_spill] sm:$0xff] %v8139_v62  ;;  %v8142_v8 = vadd.f32 %v6409_v61, %v8033_v26  ;;  %v8159_v26 = vpop.f32.mrf.mxu1 }
 0x1e0   : > { %v8146_v57 = vpop.f32.mrf.mxu0 }
 0x1e1   : > { %9088 = vst [vmem:[#allocation23_spill] sm:$0xff] %v8142_v8  ;;  %9089 = vst [vmem:[#allocation27_spill] sm:$0xff] %v8146_v57  ;;  %v9093_v57 = vld [vmem:[#allocation31_spill] sm:$0xff] }
 0x1e2   : > { %v6412_v16 = vpop.f32.mrf.mxu0  ;;  %v1852_v62 = vadd.f32 %v9093_v57, %v7827_v7  ;;  %v9097_v7 = vld [vmem:[#allocation9_spill] sm:$0xff] }
 0x1e3   : > { %v8149_v12 = vadd.f32 %v6412_v16, %v8039_v13  ;;  %v8168_v16 = vpop.f32.mrf.mxu1 }
 0x1e4   : > { %v2466_v4 = vpop.f32.mrf.mxu0 }
 0x1e5   : > { %9090 = vst [vmem:[#allocation30_spill] sm:$0xff] %v8149_v12  ;;  %v8154_v35 = vadd.f32 %v2466_v4, %v8042_v25  ;;  %v2080_v25 = vadd.f32 %v7964_v1, %v1852_v62 }
 0x1e6   : > { %v6413_v40 = vpop.f32.mrf.mxu0 }
 0x1e7   : > { %v8157_v31 = vadd.f32 %v6413_v40, %v8046_v9  ;;  %v8176_v40 = vpop.f32.mrf.mxu1 }
 0x1e8   : > { %v8161_v61 = vpop.f32.mrf.mxu0 }
 0x1e9   : > { %9091 = vst [vmem:[#allocation33_spill] sm:$0xff] %v8157_v31  ;;  %9092 = vst [vmem:[#allocation35_spill] sm:$0xff] %v8161_v61  ;;  %v2292_v61 = vadd.f32 %v7939_v37, %v2080_v25 }
 0x1ea   : > { %v6416_v8 = vpop.f32.mrf.mxu0 }
 0x1eb   : > { %v8166_v13 = vadd.f32 %v6416_v8, %v8050_v34  ;;  %v1856_v34 = vadd.f32 %v9097_v7, %v7845_v59  ;;  %v2498_v57 = vadd.f32 %v8074_v43, %v2292_v61 }
 0x1ec   : > { %v2482_v12 = vpop.f32.mrf.mxu0 }
 0x1ed   : > { %9094 = vst [vmem:[#allocation12_spill] sm:$0xff] %v8166_v13  ;;  %v8172_v4 = vadd.f32 %v2482_v12, %v8055_v17  ;;  %v2084_v1 = vadd.f32 %v7977_v20, %v1856_v34  ;;  %v8186_v12 = vpop.f32.mrf.mxu1  ;;  %v8191_v17 = vld [vmem:[%s8920_s3] ss:$0 sm:$0xff]  ;;  %v2726_v59 = vadd.f32 %v8062_v33, %v2498_v57 }
 0x1ee   : > { %v8174_v9 = vpop.f32.mrf.mxu0 }
 0x1ef   : > { %9095 = vst [vmem:[#allocation14_spill] sm:$0xff] %v8172_v4  ;;  %v8198_v20 = vpop.f32.mrf.mxu1 }
 0x1f0   : > { %v8178_v31 = vpop.f32.mrf.mxu0 }
 0x1f1   : > { %9096 = vst [vmem:[#allocation34_spill] sm:$0xff] %v8178_v31 }
 0x1f2   : > { %v6456_v8 = vpop.f32.mrf.mxu0 }
 0x1f3   : > { %v2939_v13 = vadd.f32 %v6456_v8, %v8069_v6  ;;  %v2296_v6 = vadd.f32 %v7953_v22, %v2084_v1 }
 0x1f4   : > { %v2810_v62 = vpop.f32.mrf.mxu0 }
 0x1f5   : > { %v2937_v37 = vadd.f32 %v2810_v62, %v8072_v51  ;;  %v2978_v7 = vadd.f32 %v8191_v17, %v2939_v13  ;;  %v1860_v51 = vadd.f32 %v7825_v19, %v7863_v48  ;;  %v2502_v62 = vadd.f32 %v8085_v28, %v2296_v6 }
 0x1f6   : > { %v6457_v25 = vpop.f32.mrf.mxu0 }
 0x1f7   : > { %v2940_v43 = vadd.f32 %v6457_v25, %v8076_v15  ;;  %v2976_v34 = vadd.f32 %v8191_v17, %v2937_v37  ;;  %v3010_v57 = vmax.f32 %v2978_v7, 0.0  ;;  %v2088_v1 = vadd.f32 %v7990_v10, %v1860_v51  ;;  %v8208_v25 = vpop.f32.mrf.mxu1 }
 0x1f8   : > { %v2813_v61 = vpop.f32.mrf.mxu0  ;;  %v2730_v28 = vadd.f32 %v8103_v29, %v2502_v62  ;;  %v1864_v29 = vadd.f32 %v7842_v42, %v7881_v5 }
 0x1f9   : > { %v2979_v8 = vadd.f32 %v8191_v17, %v2940_v43  ;;  %v2938_v31 = vadd.f32 %v2813_v61, %v2726_v59  ;;  %v3008_v4 = vmax.f32 %v2976_v34, 0.0  ;;  %v2300_v10 = vadd.f32 %v7966_v18, %v2088_v1  ;;  %v8219_v6 = vpop.f32.mrf.mxu1 }
 0x1fa   : > { %v6460_v33 = vpop.f32.mrf.mxu0  ;;  %v2735_v34 = vadd.f32 %v8111_v11, %v8090_v2  ;;  %v9098_v2 = vld [vmem:[#allocation17_spill] sm:$0xff]  ;;  %v9099_v11 = vld [vmem:[#allocation16_spill] sm:$0xff]  ;;  %v2736_v1 = vadd.f32 %v8129_v47, %v8096_v50 }
 0x1fb   : > { %v3011_v13 = vmax.f32 %v2979_v8, 0.0  ;;  %v2977_v15 = vadd.f32 %v8191_v17, %v2938_v31  ;;  %v2943_v22 = vadd.f32 %v6460_v33, %v8080_v63  ;;  %v8236_v42 = vpop.f32.mrf.mxu1 }
 0x1fc   : > { %v2826_v37 = vpop.f32.mrf.mxu0 }
 0x1fd   : > { %v8210_v43 = vpack.c.bf16 %v3011_v13, %v3010_v57  ;;  %v3009_v59 = vmax.f32 %v2977_v15, 0.0  ;;  %v2941_v19 = vadd.f32 %v2826_v37, %v8083_v46  ;;  %v2982_v31 = vadd.f32 %v8191_v17, %v2943_v22  ;;  %v8246_v47 = vpop.f32.mrf.mxu1 }
 0x1fe   : > { %v6461_v48 = vpop.f32.mrf.mxu0  ;;  %v1193_v15 = vadd.f32 %v9099_v11, %v9098_v2  ;;  %v2092_v22 = vadd.f32 %v8003_v32, %v1864_v29 }
 0x1ff   : > { %v8214_v7 = vpack.c.bf16 %v3009_v59, %v3008_v4  ;;  %v2944_v63 = vadd.f32 %v6461_v48, %v8087_v14  ;;  %v2980_v8 = vadd.f32 %v8191_v17, %v2941_v19  ;;  %v2733_v4 = vadd.f32 %v8118_v30, %v8093_v52 }
 0x200   : > { %v2829_v61 = vpop.f32.mrf.mxu0  ;;  %v2506_v14 = vadd.f32 %v8098_v23, %v2300_v10  ;;  %v3014_v62 = vmax.f32 %v2982_v31, 0.0  ;;  %v1662_v59 = vadd.f32 %v7896_v21, %v1193_v15  ;;  %v2304_v50 = vadd.f32 %v7979_v3, %v2092_v22 }
 0x201   : > { %v2983_v46 = vadd.f32 %v8191_v17, %v2944_v63  ;;  %v2942_v51 = vadd.f32 %v2829_v61, %v2730_v28  ;;  %v3012_v52 = vmax.f32 %v2980_v8, 0.0  ;;  %v2739_v10 = vadd.f32 %v8144_v41, %v8101_v39  ;;  %v9101_v39 = vld [vmem:[#allocation19_spill] sm:$0xff] }
 0x202   : > { %v6464_v18 = vpop.f32.mrf.mxu0  ;;  %v2734_v48 = vadd.f32 %v8136_v54, %v2506_v14  ;;  %v1868_v54 = vadd.f32 %v7860_v55, %v1662_v59  ;;  %v2737_v8 = vadd.f32 %v8151_v60, %v8106_v56  ;;  %v8262_v55 = vpop.f32.mrf.mxu1  ;;  %v9102_v59 = vld [vmem:[#allocation11_spill] sm:$0xff] }
 0x203   : > { %v3015_v33 = vmax.f32 %v2983_v46, 0.0  ;;  %v2981_v57 = vadd.f32 %v8191_v17, %v2942_v51  ;;  %v2947_v13 = vadd.f32 %v6464_v18, %v2735_v34  ;;  %v2510_v46 = vadd.f32 %v8113_v36, %v2304_v50  ;;  %v9100_v18 = vld [vmem:[#allocation20_spill] sm:$0xff] }
 0x204   : > { %v2842_v5 = vpop.f32.mrf.mxu0  ;;  %v1209_v41 = vadd.f32 %v9101_v39, %v9100_v18  ;;  %v9106_v18 = vld [vmem:[#allocation32_spill] sm:$0xff] }
 0x205   : > { %v8238_v30 = vpack.c.bf16 %v3015_v33, %v3014_v62  ;;  %v3013_v23 = vmax.f32 %v2981_v57, 0.0  ;;  %v2945_v37 = vadd.f32 %v2842_v5, %v2733_v4  ;;  %v2986_v32 = vadd.f32 %v8191_v17, %v2947_v13 }
 0x206   : > { %v6465_v19 = vpop.f32.mrf.mxu0  ;;  %v2096_v62 = vadd.f32 %v8016_v0, %v1868_v54  ;;  %v2740_v33 = vadd.f32 %v8159_v26, %v8109_v44  ;;  %v1666_v2 = vadd.f32 %v7916_v27, %v1209_v41  ;;  %v2738_v15 = vadd.f32 %v8168_v16, %v2510_v46  ;;  %v6446_v26 = vpop.f32.mrf.mxu1  ;;  %v9105_v46 = vld [vmem:[#allocation25_spill] sm:$0xff] }
 0x207   : > { %v8242_v28 = vpack.c.bf16 %v3013_v23, %v3012_v52  ;;  %v2948_v31 = vadd.f32 %v6465_v19, %v2736_v1  ;;  %v2984_v61 = vadd.f32 %v8191_v17, %v2945_v37  ;;  %v3018_v3 = vmax.f32 %v2986_v32, 0.0  ;;  %v9107_v41 = vld [vmem:[#allocation13_spill] sm:$0xff] }
 0x208   : > { %v2845_v63 = vpop.f32.mrf.mxu0  ;;  %v2308_v44 = vadd.f32 %v7992_v38, %v2096_v62  ;;  %v2743_v52 = vadd.f32 %v8176_v40, %v8116_v49  ;;  %v1872_v19 = vadd.f32 %v9102_v59, %v1666_v2  ;;  %v2741_v16 = vadd.f32 %v8186_v12, %v8124_v45  ;;  %v9104_v49 = vld [vmem:[#allocation22_spill] sm:$0xff] }
 0x209   : > { %v2987_v21 = vadd.f32 %v8191_v17, %v2948_v31  ;;  %v2946_v34 = vadd.f32 %v2845_v63, %v2734_v48  ;;  %v3016_v56 = vmax.f32 %v2984_v61, 0.0  ;;  %v2747_v62 = vadd.f32 %v8219_v6, %v9107_v41  ;;  %v9112_v6 = vld [vmem:[#allocation26_spill] sm:$0xff] }
 0x20a   : > { %v6468_v51 = vpop.f32.mrf.mxu0  ;;  %v2514_v48 = vadd.f32 %v8131_v53, %v2308_v44  ;;  %v2100_v61 = vadd.f32 %v8031_v24, %v1872_v19  ;;  %v9114_v19 = vld [vmem:[#allocation23_spill] sm:$0xff] }
 0x20b   : > { %v3019_v29 = vmax.f32 %v2987_v21, 0.0  ;;  %v2985_v4 = vadd.f32 %v8191_v17, %v2946_v34  ;;  %v2951_v14 = vadd.f32 %v6468_v51, %v2739_v10  ;;  %v9103_v10 = vld [vmem:[#allocation24_spill] sm:$0xff]  ;;  %v2744_v21 = vadd.f32 %v8198_v20, %v8127_v58  ;;  %v2694_v34 = vpop.f32.mrf.mxu1 }
 0x20c   : > { %v2858_v57 = vpop.f32.mrf.mxu0  ;;  %v1225_v40 = vadd.f32 %v9104_v49, %v9103_v10  ;;  %v2312_v39 = vadd.f32 %v9106_v18, %v2100_v61 }
 0x20d   : > { %v8264_v60 = vpack.c.bf16 %v3019_v29, %v3018_v3  ;;  %v3017_v36 = vmax.f32 %v2985_v4, 0.0  ;;  %v2949_v13 = vadd.f32 %v2858_v57, %v2737_v8  ;;  %v2990_v0 = vadd.f32 %v8191_v17, %v2951_v14  ;;  %v6447_v58 = vpop.f32.mrf.mxu1 }
 0x20e   : > { %v6469_v11 = vpop.f32.mrf.mxu0  ;;  %v1670_v51 = vadd.f32 %v9105_v46, %v1225_v40  ;;  %v2742_v29 = vadd.f32 %v8208_v25, %v2514_v48  ;;  %v9109_v25 = vld [vmem:[#allocation18_spill] sm:$0xff] }
 0x20f   : > { %v8268_v22 = vpack.c.bf16 %v3017_v36, %v3016_v56  ;;  %v2952_v1 = vadd.f32 %v6469_v11, %v2740_v33  ;;  %v2988_v23 = vadd.f32 %v8191_v17, %v2949_v13  ;;  %v3022_v31 = vmax.f32 %v2990_v0, 0.0  ;;  %v9108_v36 = vld [vmem:[#allocation15_spill] sm:$0xff]  ;;  %v2697_v48 = vpop.f32.mrf.mxu1  ;;  %v9117_v46 = vld [vmem:[#allocation30_spill] sm:$0xff] }
 0x210   : > { %v2861_v5 = vpop.f32.mrf.mxu0  ;;  %v1876_v13 = vadd.f32 %v9108_v36, %v1670_v51  ;;  %v2745_v2 = vadd.f32 %v8236_v42, %v9109_v25  ;;  %v9110_v11 = vld [vmem:[#allocation27_spill] sm:$0xff]  ;;  %v2751_v51 = vadd.f32 %v6446_v26, %v9117_v46  ;;  %v9120_v36 = vld [vmem:[#allocation10_spill] sm:$0xff]  ;;  %v9121_v26 = vld [vmem:[#allocation33_spill] sm:$0xff] }
 0x211   : > { %v2991_v37 = vadd.f32 %v8191_v17, %v2952_v1  ;;  %v2950_v27 = vadd.f32 %v2861_v5, %v2738_v15  ;;  %v3020_v8 = vmax.f32 %v2988_v23, 0.0  ;;  %v2518_v15 = vadd.f32 %v9110_v11, %v2312_v39  ;;  %v9111_v23 = vld [vmem:[#allocation8_spill] sm:$0xff]  ;;  %v9119_v39 = vld [vmem:[#allocation35_spill] sm:$0xff] }
 0x212   : > { %v6472_v32 = vpop.f32.mrf.mxu0  ;;  %v2752_v25 = vadd.f32 %v6447_v58, %v9121_v26 }
 0x213   : > { %v3023_v38 = vmax.f32 %v2991_v37, 0.0  ;;  %v2989_v50 = vadd.f32 %v8191_v17, %v2950_v27  ;;  %v2955_v63 = vadd.f32 %v6472_v32, %v2743_v52  ;;  %v1241_v37 = vadd.f32 %v9112_v6, %v9111_v23  ;;  %v9113_v27 = vld [vmem:[#allocation5_spill] sm:$0xff] }
 0x214   : > { %v2874_v54 = vpop.f32.mrf.mxu0  ;;  %v2104_v59 = vadd.f32 %v9113_v27, %v1876_v13  ;;  %v2746_v40 = vadd.f32 %v8262_v55, %v2518_v15  ;;  %v2749_v55 = vadd.f32 %v2694_v34, %v8154_v35  ;;  %v9122_v35 = vld [vmem:[#allocation7_spill] sm:$0xff] }
 0x215   : > { %v8286_v45 = vpack.c.bf16 %v3023_v38, %v3022_v31  ;;  %v3021_v53 = vmax.f32 %v2989_v50, 0.0  ;;  %v2953_v12 = vadd.f32 %v2874_v54, %v2741_v16  ;;  %v2994_v14 = vadd.f32 %v8191_v17, %v2955_v63  ;;  %v9115_v63 = vld [vmem:[#allocation29_spill] sm:$0xff]  ;;  %v9123_v34 = vld [vmem:[#allocation3_spill] sm:$0xff] }
 0x216   : > { %v6473_v3 = vpop.f32.mrf.mxu0  ;;  %v2748_v16 = vadd.f32 %v8246_v47, %v9114_v19  ;;  %v1674_v10 = vadd.f32 %v9115_v63, %v1241_v37  ;;  %v6450_v47 = vpop.f32.mrf.mxu1 }
 0x217   : > { %v8290_v4 = vpack.c.bf16 %v3021_v53, %v3020_v8  ;;  %v2956_v24 = vadd.f32 %v6473_v3, %v2744_v21  ;;  %v2992_v33 = vadd.f32 %v8191_v17, %v2953_v12  ;;  %v3026_v1 = vmax.f32 %v2994_v14, 0.0  ;;  %v9116_v8 = vld [vmem:[#allocation2_spill] sm:$0xff] }
 0x218   : > { %v2877_v20 = vpop.f32.mrf.mxu0  ;;  %v2316_v53 = vadd.f32 %v9116_v8, %v2104_v59  ;;  %v9124_v59 = vld [vmem:[#allocation4_spill] sm:$0xff] }
 0x219   : > { %v2995_v57 = vadd.f32 %v8191_v17, %v2956_v24  ;;  %v2954_v56 = vadd.f32 %v2877_v20, %v2742_v29  ;;  %v3024_v31 = vmax.f32 %v2992_v33, 0.0  ;;  %v9118_v24 = vld [vmem:[#allocation21_spill] sm:$0xff] }
 0x21a   : > { %v6476_v0 = vpop.f32.mrf.mxu0  ;;  %v1880_v18 = vadd.f32 %v9118_v24, %v1674_v10  ;;  %v2522_v20 = vadd.f32 %v9119_v39, %v2316_v53 }
 0x21b   : > { %v3027_v44 = vmax.f32 %v2995_v57, 0.0  ;;  %v2993_v5 = vadd.f32 %v8191_v17, %v2954_v56  ;;  %v2959_v52 = vadd.f32 %v6476_v0, %v2747_v62 }
 0x21c   : > { %v2890_v32 = vpop.f32.mrf.mxu0  ;;  %v2108_v13 = vadd.f32 %v9120_v36, %v1880_v18  ;;  %v2750_v23 = vadd.f32 %v2697_v48, %v2522_v20 }
 0x21d   : > { %v8308_v42 = vpack.c.bf16 %v3027_v44, %v3026_v1  ;;  %v3025_v38 = vmax.f32 %v2993_v5, 0.0  ;;  %v2957_v50 = vadd.f32 %v2890_v32, %v2745_v2  ;;  %v2998_v21 = vadd.f32 %v8191_v17, %v2959_v52  ;;  %v2710_v2 = vpop.f32.mrf.mxu1 }
 0x21e   : > { %v6477_v49 = vpop.f32.mrf.mxu0  ;;  %v2322_v5 = vadd.f32 %v9123_v34, %v9122_v35  ;;  %v2320_v19 = vadd.f32 %v9124_v59, %v2108_v13  ;;  %v6643_v35 = vld [vmem:[%s8918_s1 + $0x24] ss:$8 sps:$4 sm:$0xff]   ;;  %v6641_v34 = vld [vmem:[%s8918_s1 + $0x20] ss:$8 sps:$4 sm:$0xff]   ;;  %v6650_v59 = vld [vmem:[%s8918_s1 + $0x50] ss:$8 sps:$4 sm:$0xff]  }
 0x21f   : > { %v8312_v61 = vpack.c.bf16 %v3025_v38, %v3024_v31  ;;  %v2960_v54 = vadd.f32 %v6477_v49, %v2748_v16  ;;  %v2996_v3 = vadd.f32 %v8191_v17, %v2957_v50  ;;  %v3030_v62 = vmax.f32 %v2998_v21, 0.0  ;;  %v6451_v16 = vpop.f32.mrf.mxu1  ;;  %v9125_v31 = vld [vmem:[#allocation12_spill] sm:$0xff]  ;;  %v9126_v49 = vld [vmem:[#allocation14_spill] sm:$0xff] }
 0x220   : > { %v2893_v12 = vpop.f32.mrf.mxu0  ;;  %v2528_v58 = vadd.f32 %v8174_v9, %v2322_v5  ;;  %v2755_v38 = vadd.f32 %v6450_v47, %v9125_v31  ;;  %v2753_v48 = vadd.f32 %v2710_v2, %v9126_v49  ;;  %v6646_v5 = vld [vmem:[%s8918_s1 + $0x34] ss:$8 sps:$4 sm:$0xff]   ;;  %v6659_v31 = vld [vmem:[%s8921_s4 + $0x8] sm:$0xff]  }
 0x221   : > { %v2999_v29 = vadd.f32 %v8191_v17, %v2960_v54  ;;  %v2958_v14 = vadd.f32 %v2893_v12, %v2746_v40  ;;  %v3028_v15 = vmax.f32 %v2996_v3, 0.0  ;;  %v9127_v40 = vld [vmem:[#allocation34_spill] sm:$0xff] }
 0x222   : > { %v6480_v41 = vpop.f32.mrf.mxu0  ;;  %v2526_v21 = vadd.f32 %v9127_v40, %v2320_v19  ;;  %v2756_v9 = vadd.f32 %v6451_v16, %v2528_v58  ;;  %v6655_v19 = vld [vmem:[%s8918_s1 + $0x64] ss:$8 sps:$4 sm:$0xff]   ;;  %v6653_v58 = vld [vmem:[%s8918_s1 + $0x60] ss:$8 sps:$4 sm:$0xff]   ;;  %v6658_v16 = vld [vmem:[%s8918_s1 + $0x74] ss:$8 sps:$4 sm:$0xff]  }
 0x223   : > { %v3031_v33 = vmax.f32 %v2999_v29, 0.0  ;;  %v2997_v57 = vadd.f32 %v8191_v17, %v2958_v14  ;;  %v2963_v56 = vadd.f32 %v6480_v41, %v2751_v51  ;;  %v2713_v51 = vpop.f32.mrf.mxu1 }
 0x224   : > { %v2906_v11 = vpop.f32.mrf.mxu0 }
 0x225   : > { %v8325_v0 = vpack.c.bf16 %v3031_v33, %v3030_v62  ;;  %v3029_v1 = vmax.f32 %v2997_v57, 0.0  ;;  %v2961_v44 = vadd.f32 %v2906_v11, %v2749_v55  ;;  %v3002_v37 = vadd.f32 %v8191_v17, %v2963_v56 }
 0x226   : > { %v6481_v52 = vpop.f32.mrf.mxu0  ;;  %v2754_v55 = vadd.f32 %v2713_v51, %v2526_v21 }
 0x227   : > { %v8329_v6 = vpack.c.bf16 %v3029_v1, %v3028_v15  ;;  %v2964_v27 = vadd.f32 %v6481_v52, %v2752_v25  ;;  %v3000_v50 = vadd.f32 %v8191_v17, %v2961_v44  ;;  %v3034_v8 = vmax.f32 %v3002_v37, 0.0  ;;  %v6640_v1 = vld [vmem:[%s8918_s1 + $0x14] ss:$8 sps:$4 sm:$0xff]   ;;  %v6638_v44 = vld [vmem:[%s8918_s1 + $0x10] ss:$8 sps:$4 sm:$0xff]  }
 0x228   : > { %v2909_v32 = vpop.f32.mrf.mxu0  ;;  %v6644_v52 = vld [vmem:[%s8918_s1 + $0x30] ss:$8 sps:$4 sm:$0xff]   ;;  %v6647_v37 = vld [vmem:[%s8918_s1 + $0x40] ss:$8 sps:$4 sm:$0xff]  }
 0x229   : > { %v3003_v63 = vadd.f32 %v8191_v17, %v2964_v27  ;;  %v2962_v10 = vadd.f32 %v2909_v32, %v2750_v23  ;;  %v3032_v29 = vmax.f32 %v3000_v50, 0.0  ;;  %v6649_v23 = vld [vmem:[%s8918_s1 + $0x44] ss:$8 sps:$4 sm:$0xff]   ;;  %v6652_v27 = vld [vmem:[%s8918_s1 + $0x54] ss:$8 sps:$4 sm:$0xff]  }
 0x22a   : > { %v6484_v54 = vpop.f32.mrf.mxu0  ;;  %v6656_v32 = vld [vmem:[%s8918_s1 + $0x70] ss:$8 sps:$4 sm:$0xff]   ;;  %v6661_v50 = vld [vmem:[%s8921_s4 + $0x28] sm:$0xff]  }
 0x22b   : > { %v3035_v53 = vmax.f32 %v3003_v63, 0.0  ;;  %v3001_v12 = vadd.f32 %v8191_v17, %v2962_v10  ;;  %v2967_v46 = vadd.f32 %v6484_v54, %v2755_v38  ;;  %v6660_v38 = vld [vmem:[%s8921_s4] sm:$0xff]  }
 0x22c   : > { %v2922_v3 = vpop.f32.mrf.mxu0 }
 0x22d   : > { %v8340_v47 = vpack.c.bf16 %v3035_v53, %v3034_v8  ;;  %v3033_v14 = vmax.f32 %v3001_v12, 0.0  ;;  %v2965_v24 = vadd.f32 %v2922_v3, %v2753_v48  ;;  %v3006_v20 = vadd.f32 %v8191_v17, %v2967_v46 }
 0x22e   : > { %v6485_v18 = vpop.f32.mrf.mxu0 }
 0x22f   : > { %v8342_v39 = vpack.c.bf16 %v3033_v14, %v3032_v29  ;;  %v2968_v41 = vadd.f32 %v6485_v18, %v2756_v9  ;;  %v3004_v33 = vadd.f32 %v8191_v17, %v2965_v24  ;;  %v3038_v36 = vmax.f32 %v3006_v20, 0.0  ;;  %v6662_v14 = vld [vmem:[%s8921_s4 + $0x20] sm:$0xff]  }
 0x230   : > { %v2925_v62 = vpop.f32.mrf.mxu0 }
 0x231   : > { %v3007_v57 = vadd.f32 %v8191_v17, %v2968_v41  ;;  %v2966_v56 = vadd.f32 %v2925_v62, %v2754_v55  ;;  %v3036_v25 = vmax.f32 %v3004_v33, 0.0 }
 0x233   : > { %v3039_v13 = vmax.f32 %v3007_v57, 0.0  ;;  %v3005_v26 = vadd.f32 %v8191_v17, %v2966_v56  ;;  %v6635_v17 = vld [vmem:[%s8918_s1] ss:$8 sps:$4 sm:$0xff]  }
 0x235   : > { %v8348_v2 = vpack.c.bf16 %v3039_v13, %v3038_v36  ;;  %v3037_v11 = vmax.f32 %v3005_v26, 0.0 }
 0x237   : > { %v8350_v15 = vpack.c.bf16 %v3037_v11, %v3036_v25  ;;  %5766 = vmatprep.subr.bf16.mxu1 %v8348_v2  ;;  %5858 = vmatprep.subr.bf16.mxu0 %v8348_v2 }
 0x238   : > { %5767 = vmatpush3.bf16.msra.mxu1 %v8286_v45 }
 0x239   : > { %5768 = vmatprep.subr.bf16.mxu1 %v8350_v15 }
 0x23c   : > { %5769 = vmatpush3.bf16.msra.mxu1 %v8290_v4 }
 0x23d   : > { %5770 = vmatprep.subr.bf16.mxu1 %v8340_v47 }
 0x240   : > { %5771 = vmatpush3.bf16.msra.mxu1 %v8264_v60 }
 0x241   : > { %5772 = vmatprep.subr.bf16.mxu1 %v8342_v39 }
 0x244   : > { %5773 = vmatpush3.bf16.msra.mxu1 %v8268_v22 }
 0x245   : > { %5774 = vmatprep.subr.bf16.mxu1 %v8325_v0 }
 0x248   : > { %5775 = vmatpush3.bf16.msra.mxu1 %v8238_v30 }
 0x249   : > { %5776 = vmatprep.subr.bf16.mxu1 %v8329_v6 }
 0x24c   : > { %5777 = vmatpush3.bf16.msra.mxu1 %v8242_v28 }
 0x24d   : > { %5778 = vmatprep.subr.bf16.mxu1 %v8308_v42 }
 0x250   : > { %5779 = vmatpush3.bf16.msra.mxu1 %v8210_v43 }
 0x251   : > { %5780 = vmatprep.subr.bf16.mxu1 %v8312_v61 }
 0x254   : > { %5781 = vmatpush3.bf16.msra.mxu1 %v8214_v7 }
 0x255   : > { %5806 = vmatprep.subr.bf16.mxu1 %v8348_v2 }
 0x257   : > { %3137 = vmatmul.mubr.bf16.vlgmr.msra.gmra.mxu1 %v6635_v17 }
 0x258   : > { %5807 = vmatpush3.bf16.msra.mxu1 %v8286_v45  ;;  %3144 = vmatprep.mubr.bf16.mxu1 %v6640_v1 }
 0x259   : > { %5808 = vmatprep.subr.bf16.mxu1 %v8350_v15 }
 0x25c   : > { %5809 = vmatpush3.bf16.msra.mxu1 %v8290_v4 }
 0x25d   : > { %5810 = vmatprep.subr.bf16.mxu1 %v8340_v47 }
 0x25f   : > { %3145 = vmatmul.mubr.bf16.gmra.mxu1 %v6638_v44 }
 0x260   : > { %5811 = vmatpush3.bf16.msra.mxu1 %v8264_v60  ;;  %3152 = vmatprep.mubr.bf16.mxu1 %v6643_v35 }
 0x261   : > { %5812 = vmatprep.subr.bf16.mxu1 %v8342_v39 }
 0x264   : > { %5813 = vmatpush3.bf16.msra.mxu1 %v8268_v22 }
 0x265   : > { %5814 = vmatprep.subr.bf16.mxu1 %v8325_v0 }
 0x267   : > { %3153 = vmatmul.mubr.bf16.gmra.mxu1 %v6641_v34 }
 0x268   : > { %5815 = vmatpush3.bf16.msra.mxu1 %v8238_v30  ;;  %3160 = vmatprep.mubr.bf16.mxu1 %v6646_v5 }
 0x269   : > { %5816 = vmatprep.subr.bf16.mxu1 %v8329_v6 }
 0x26c   : > { %5817 = vmatpush3.bf16.msra.mxu1 %v8242_v28 }
 0x26d   : > { %5818 = vmatprep.subr.bf16.mxu1 %v8308_v42 }
 0x26f   : > { %3161 = vmatmul.mubr.bf16.gmra.mxu1 %v6644_v52 }
 0x270   : > { %5819 = vmatpush3.bf16.msra.mxu1 %v8210_v43  ;;  %3258 = vmatprep.mubr.bf16.mxu1 %v6649_v23 }
 0x271   : > { %5820 = vmatprep.subr.bf16.mxu1 %v8312_v61 }
 0x274   : > { %5821 = vmatpush3.bf16.msra.mxu1 %v8214_v7 }
 0x275   : > { %6498 = vmatprep.subr.bf16.mxu1 %v6659_v31 }
 0x277   : > { %3259 = vmatmul.mubr.bf16.vlgmr.msra.gmra.mxu1 %v6647_v37 }
 0x278   : > { %3266 = vmatprep.mubr.bf16.mxu1 %v6652_v27  ;;  %6499 = vmatpush3.bf16.msra.mxu1 %v6659_v31 }
 0x279   : > { %6500 = vmatprep.subr.bf16.mxu1 %v6660_v38 }
 0x27c   : > { %6501 = vmatpush3.bf16.msra.mxu1 %v6660_v38 }
 0x27d   : > { %6510 = vmatprep.subr.bf16.mxu1 %v6661_v50 }
 0x27f   : > { %3267 = vmatmul.mubr.bf16.gmra.mxu1 %v6650_v59 }
 0x280   : > { %3274 = vmatprep.mubr.bf16.mxu1 %v6655_v19 }
 0x287   : > { %3275 = vmatmul.mubr.bf16.gmra.mxu1 %v6653_v58 }
 0x288   : > { %3282 = vmatprep.mubr.bf16.mxu1 %v6658_v16 }
 0x28f   : > { %3283 = vmatmul.mubr.bf16.gmra.mxu1 %v6656_v32 }
 0x317   : > { %v5782_v63 = vpop.f32.mrf.mxu1 }
 0x319   : > { %v5783_v10 = vpop.f32.mrf.mxu1 }
 0x31a   : > { %v5784_v40 = vadd.f32 %v5783_v10, %v5782_v63 }
 0x31b   : > { %v5785_v49 = vpop.f32.mrf.mxu1 }
 0x31d   : > { %v5786_v48 = vpop.f32.mrf.mxu1 }
 0x31e   : > { %v5787_v21 = vadd.f32 %v5786_v48, %v5785_v49 }
 0x31f   : > { %v5788_v54 = vpop.f32.mrf.mxu1 }
 0x320   : > { %v3169_v8 = vpack.c.bf16 %v5787_v21, %v5784_v40 }
 0x321   : > { %v5789_v53 = vpop.f32.mrf.mxu1 }
 0x322   : > { %6502 = vmatprep.mubr.msk.bf16.mxu1 %vm3312_vm8, %v3169_v8  ;;  %v5790_v9 = vadd.f32 %v5789_v53, %v5788_v54  ;;  %v6665_v53 = vld [vmem:[%s8918_s1 + $0x84] ss:$8 sps:$4 sm:$0xff]  }
 0x323   : > { %v5791_v12 = vpop.f32.mrf.mxu1 }
 0x325   : > { %v5792_v46 = vpop.f32.mrf.mxu1 }
 0x326   : > { %v5793_v51 = vadd.f32 %v5792_v46, %v5791_v12  ;;  %v6663_v46 = vld [vmem:[%s8918_s1 + $0x80] ss:$8 sps:$4 sm:$0xff]  }
 0x327   : > { %v5794_v3 = vpop.f32.mrf.mxu1 }
 0x328   : > { %v3170_v29 = vpack.c.bf16 %v5793_v51, %v5790_v9  ;;  %v6668_v9 = vld [vmem:[%s8918_s1 + $0x94] ss:$8 sps:$4 sm:$0xff]   ;;  %v6666_v51 = vld [vmem:[%s8918_s1 + $0x90] ss:$8 sps:$4 sm:$0xff]  }
 0x329   : > { %v5795_v24 = vpop.f32.mrf.mxu1 }
 0x32a   : > { %6503 = vmatmul.mubr.msk.bf16.vlgmr.msra.gmra.mxu1 %vm3312_vm8, %v3170_v29  ;;  %v5796_v20 = vadd.f32 %v5795_v24, %v5794_v3  ;;  %v6671_v3 = vld [vmem:[%s8918_s1 + $0xa4] ss:$8 sps:$4 sm:$0xff]   ;;  %v6669_v29 = vld [vmem:[%s8918_s1 + $0xa0] ss:$8 sps:$4 sm:$0xff]   ;;  %v6672_v24 = vld [vmem:[%s8918_s1 + $0xb0] ss:$8 sps:$4 sm:$0xff]  }
 0x32b   : > { %6511 = vmatpush3.bf16.msra.mxu1 %v6661_v50  ;;  %v5797_v18 = vpop.f32.mrf.mxu1 }
 0x32c   : > { %6512 = vmatprep.subr.bf16.mxu1 %v6662_v14 }
 0x32d   : > { %v5798_v55 = vpop.f32.mrf.mxu1 }
 0x32e   : > { %v5799_v41 = vadd.f32 %v5798_v55, %v5797_v18 }
 0x32f   : > { %6513 = vmatpush3.bf16.msra.mxu1 %v6662_v14  ;;  %v5800_v62 = vpop.f32.mrf.mxu1  ;;  %v6674_v14 = vld [vmem:[%s8918_s1 + $0xb4] ss:$8 sps:$4 sm:$0xff]  }
 0x330   : > { %v3171_v33 = vpack.c.bf16 %v5799_v41, %v5796_v20  ;;  %5904 = vmatprep.subr.bf16.mxu1 %v8348_v2 }
 0x331   : > { %v5801_v57 = vpop.f32.mrf.mxu1 }
 0x332   : > { %6506 = vmatprep.mubr.msk.bf16.mxu1 %vm3312_vm8, %v3171_v33  ;;  %v5802_v13 = vadd.f32 %v5801_v57, %v5800_v62 }
 0x333   : > { %v5803_v56 = vpop.f32.mrf.mxu1 }
 0x335   : > { %v5804_v36 = vpop.f32.mrf.mxu1 }
 0x336   : > { %v5805_v26 = vadd.f32 %v5804_v36, %v5803_v56 }
 0x337   : > { %v5822_v25 = vpop.f32.mrf.mxu1 }
 0x338   : > { %v3172_v11 = vpack.c.bf16 %v5805_v26, %v5802_v13 }
 0x339   : > { %v5823_v17 = vpop.f32.mrf.mxu1 }
 0x33a   : > { %6507 = vmatmul.mubr.msk.bf16.gmra.mxu1 %vm3312_vm8, %v3172_v11  ;;  %v5824_v35 = vadd.f32 %v5823_v17, %v5822_v25 }
 0x33b   : > { %v5825_v1 = vpop.f32.mrf.mxu1 }
 0x33d   : > { %v5826_v44 = vpop.f32.mrf.mxu1 }
 0x33e   : > { %v5827_v34 = vadd.f32 %v5826_v44, %v5825_v1 }
 0x33f   : > { %v5828_v5 = vpop.f32.mrf.mxu1 }
 0x340   : > { %v3291_v52 = vpack.c.bf16 %v5827_v34, %v5824_v35 }
 0x341   : > { %v5829_v23 = vpop.f32.mrf.mxu1 }
 0x342   : > { %6490 = vmatprep.mubr.msk.bf16.mxu0 %vm3312_vm8, %v3291_v52  ;;  %v5830_v59 = vadd.f32 %v5829_v23, %v5828_v5 }
 0x343   : > { %v5831_v37 = vpop.f32.mrf.mxu1 }
 0x345   : > { %v5832_v27 = vpop.f32.mrf.mxu1 }
 0x346   : > { %v5833_v19 = vadd.f32 %v5832_v27, %v5831_v37 }
 0x347   : > { %v5834_v58 = vpop.f32.mrf.mxu1 }
 0x348   : > { %v3292_v16 = vpack.c.bf16 %v5833_v19, %v5830_v59 }
 0x349   : > { %v5835_v32 = vpop.f32.mrf.mxu1 }
 0x34a   : > { %6491 = vmatmul.mubr.msk.bf16.vlgmr.msra.gmra.mxu0 %vm3312_vm8, %v3292_v16  ;;  %v5836_v38 = vadd.f32 %v5835_v32, %v5834_v58 }
 0x34b   : > { %5859 = vmatpush3.bf16.msra.mxu0 %v8286_v45  ;;  %v5837_v31 = vpop.f32.mrf.mxu1 }
 0x34c   : > { %5860 = vmatprep.subr.bf16.mxu0 %v8350_v15 }
 0x34d   : > { %v5838_v50 = vpop.f32.mrf.mxu1 }
 0x34e   : > { %v5839_v63 = vadd.f32 %v5838_v50, %v5837_v31 }
 0x34f   : > { %5861 = vmatpush3.bf16.msra.mxu0 %v8290_v4  ;;  %v5840_v10 = vpop.f32.mrf.mxu1 }
 0x350   : > { %v3293_v49 = vpack.c.bf16 %v5839_v63, %v5836_v38  ;;  %5862 = vmatprep.subr.bf16.mxu0 %v8340_v47 }
 0x351   : > { %v5841_v48 = vpop.f32.mrf.mxu1 }
 0x352   : > { %6494 = vmatprep.mubr.msk.bf16.mxu0 %vm3312_vm8, %v3293_v49  ;;  %v5842_v21 = vadd.f32 %v5841_v48, %v5840_v10 }
 0x353   : > { %5863 = vmatpush3.bf16.msra.mxu0 %v8264_v60  ;;  %v5843_v40 = vpop.f32.mrf.mxu1 }
 0x354   : > { %5864 = vmatprep.subr.bf16.mxu0 %v8342_v39 }
 0x355   : > { %v5844_v54 = vpop.f32.mrf.mxu1 }
 0x356   : > { %v5845_v8 = vadd.f32 %v5844_v54, %v5843_v40 }
 0x357   : > { %5865 = vmatpush3.bf16.msra.mxu0 %v8268_v22 }
 0x358   : > { %v3294_v12 = vpack.c.bf16 %v5845_v8, %v5842_v21  ;;  %5866 = vmatprep.subr.bf16.mxu0 %v8325_v0 }
 0x35a   : > { %6495 = vmatmul.mubr.msk.bf16.gmra.mxu0 %vm3312_vm8, %v3294_v12 }
 0x35b   : > { %5867 = vmatpush3.bf16.msra.mxu0 %v8238_v30  ;;  %3560 = vmatprep.mubr.bf16.mxu0 %v6665_v53 }
 0x35c   : > { %5868 = vmatprep.subr.bf16.mxu0 %v8329_v6 }
 0x35f   : > { %5869 = vmatpush3.bf16.msra.mxu0 %v8242_v28 }
 0x360   : > { %5870 = vmatprep.subr.bf16.mxu0 %v8308_v42 }
 0x363   : > { %5871 = vmatpush3.bf16.msra.mxu0 %v8210_v43 }
 0x364   : > { %5872 = vmatprep.subr.bf16.mxu0 %v8312_v61 }
 0x367   : > { %5873 = vmatpush3.bf16.msra.mxu0 %v8214_v7 }
 0x36a   : > { %3561 = vmatmul.mubr.bf16.vlgmr.msra.gmra.mxu0 %v6663_v46 }
 0x36b   : > { %3568 = vmatprep.mubr.bf16.mxu0 %v6668_v9 }
 0x372   : > { %3569 = vmatmul.mubr.bf16.gmra.mxu0 %v6666_v51 }
 0x373   : > { %3576 = vmatprep.mubr.bf16.mxu0 %v6671_v3 }
 0x37a   : > { %3577 = vmatmul.mubr.bf16.gmra.mxu0 %v6669_v29 }
 0x37b   : > { %3584 = vmatprep.mubr.bf16.mxu0 %v6674_v14 }
 0x382   : > { %3585 = vmatmul.mubr.bf16.gmra.mxu0 %v6672_v24 }
 0x3ea   : > { %v6504_v18 = vpop.f32.mrf.mxu1 }
 0x3ec   : > { %v3448_v55 = vpop.f32.mrf.mxu1 }
 0x3ee   : > { %v6505_v62 = vpop.f32.mrf.mxu1 }
 0x3f0   : > { %v3451_v13 = vpop.f32.mrf.mxu1 }
 0x3fa   : > { %v6508_v11 = vpop.f32.mrf.mxu1 }
 0x3fc   : > { %v3464_v17 = vpop.f32.mrf.mxu1 }
 0x3fe   : > { %v6509_v5 = vpop.f32.mrf.mxu1 }
 0x40a   : > { %v6492_v20 = vpop.f32.mrf.mxu0 }
 0x40b   : > { %v8490_v41 = vadd.f32 %v6504_v18, %v6492_v20 }
 0x40c   : > { %v3359_v33 = vpop.f32.mrf.mxu0 }
 0x40d   : > { %v8492_v57 = vadd.f32 %v3448_v55, %v3359_v33  ;;  %v6677_v55 = vld [vmem:[%s8918_s1 + $0xc4] ss:$8 sps:$4 sm:$0xff]   ;;  %v6680_v33 = vld [vmem:[%s8918_s1 + $0xd4] ss:$8 sps:$4 sm:$0xff]  }
 0x40e   : > { %v6493_v56 = vpop.f32.mrf.mxu0 }
 0x40f   : > { %v8494_v36 = vadd.f32 %v6505_v62, %v6493_v56  ;;  %v6675_v62 = vld [vmem:[%s8918_s1 + $0xc0] ss:$8 sps:$4 sm:$0xff]   ;;  %v6678_v56 = vld [vmem:[%s8918_s1 + $0xd0] ss:$8 sps:$4 sm:$0xff]  }
 0x410   : > { %v3362_v26 = vpop.f32.mrf.mxu0 }
 0x411   : > { %v8496_v25 = vadd.f32 %v3451_v13, %v3362_v26  ;;  %v6683_v13 = vld [vmem:[%s8918_s1 + $0xe4] ss:$8 sps:$4 sm:$0xff]   ;;  %v6681_v26 = vld [vmem:[%s8918_s1 + $0xe0] ss:$8 sps:$4 sm:$0xff]  }
 0x41a   : > { %v6496_v1 = vpop.f32.mrf.mxu0 }
 0x41b   : > { %v8498_v44 = vadd.f32 %v6508_v11, %v6496_v1  ;;  %v6686_v11 = vld [vmem:[%s8918_s1 + $0xf4] ss:$8 sps:$4 sm:$0xff]   ;;  %v6689_v1 = vld [vmem:[%s8918_s1 + $0x104] ss:$8 sps:$4 sm:$0xff]  }
 0x41c   : > { %v3375_v35 = vpop.f32.mrf.mxu0 }
 0x41d   : > { %v8500_v34 = vadd.f32 %v3464_v17, %v3375_v35  ;;  %v6684_v17 = vld [vmem:[%s8918_s1 + $0xf0] ss:$8 sps:$4 sm:$0xff]   ;;  %v6687_v35 = vld [vmem:[%s8918_s1 + $0x100] ss:$8 sps:$4 sm:$0xff]  }
 0x41e   : > { %v6497_v52 = vpop.f32.mrf.mxu0 }
 0x41f   : > { %v8502_v23 = vadd.f32 %v6509_v5, %v6497_v52  ;;  %v6692_v5 = vld [vmem:[%s8918_s1 + $0x114] ss:$8 sps:$4 sm:$0xff]   ;;  %v6690_v52 = vld [vmem:[%s8918_s1 + $0x110] ss:$8 sps:$4 sm:$0xff]  }
 0x420   : > { %v8504_v37 = vpop.f32.mrf.mxu0 }
 0x42a   : > { %v5874_v27 = vpop.f32.mrf.mxu0 }
 0x42c   : > { %v5875_v59 = vpop.f32.mrf.mxu0 }
 0x42d   : > { %v5876_v16 = vadd.f32 %v5875_v59, %v5874_v27  ;;  %v6695_v27 = vld [vmem:[%s8918_s1 + $0x124] ss:$8 sps:$4 sm:$0xff]   ;;  %v6693_v59 = vld [vmem:[%s8918_s1 + $0x120] ss:$8 sps:$4 sm:$0xff]  }
 0x42e   : > { %v5877_v19 = vpop.f32.mrf.mxu0 }
 0x430   : > { %v5878_v58 = vpop.f32.mrf.mxu0 }
 0x431   : > { %v5879_v32 = vadd.f32 %v5878_v58, %v5877_v19  ;;  %v6698_v19 = vld [vmem:[%s8918_s1 + $0x134] ss:$8 sps:$4 sm:$0xff]   ;;  %v6696_v58 = vld [vmem:[%s8918_s1 + $0x130] ss:$8 sps:$4 sm:$0xff]  }
 0x432   : > { %v5880_v31 = vpop.f32.mrf.mxu0 }
 0x433   : > { %v3593_v38 = vpack.c.bf16 %v5879_v32, %v5876_v16  ;;  %v6699_v16 = vld [vmem:[%s8921_s4 + $0x38] sm:$0xff]   ;;  %v6700_v32 = vld [vmem:[%s8921_s4 + $0x30] sm:$0xff]  }
 0x434   : > { %v5881_v50 = vpop.f32.mrf.mxu0  ;;  %6522 = vmatprep.subr.bf16.mxu0 %v6699_v16 }
 0x435   : > { %6514 = vmatprep.mubr.msk.bf16.mxu1 %vm3312_vm8, %v3593_v38  ;;  %v5882_v49 = vadd.f32 %v5881_v50, %v5880_v31  ;;  %6523 = vmatpush3.bf16.msra.mxu0 %v6699_v16  ;;  %v6701_v31 = vld [vmem:[%s8921_s4 + $0x48] sm:$0xff]   ;;  %v3467_v38 = vpop.f32.mrf.mxu1 }
 0x436   : > { %v5883_v63 = vpop.f32.mrf.mxu0  ;;  %6524 = vmatprep.subr.bf16.mxu0 %v6700_v32 }
 0x438   : > { %v5884_v10 = vpop.f32.mrf.mxu0 }
 0x439   : > { %v5885_v48 = vadd.f32 %v5884_v10, %v5883_v63  ;;  %6525 = vmatpush3.bf16.msra.mxu0 %v6700_v32 }
 0x43a   : > { %v5886_v40 = vpop.f32.mrf.mxu0  ;;  %6534 = vmatprep.subr.bf16.mxu0 %v6701_v31 }
 0x43b   : > { %v3594_v21 = vpack.c.bf16 %v5885_v48, %v5882_v49 }
 0x43c   : > { %v5887_v54 = vpop.f32.mrf.mxu0 }
 0x43d   : > { %6515 = vmatmul.mubr.msk.bf16.vlgmr.msra.gmra.mxu1 %vm3312_vm8, %v3594_v21  ;;  %v5888_v53 = vadd.f32 %v5887_v54, %v5886_v40 }
 0x43e   : > { %5905 = vmatpush3.bf16.msra.mxu1 %v8286_v45  ;;  %v5889_v8 = vpop.f32.mrf.mxu0 }
 0x43f   : > { %5906 = vmatprep.subr.bf16.mxu1 %v8350_v15 }
 0x440   : > { %v5890_v12 = vpop.f32.mrf.mxu0 }
 0x441   : > { %v5891_v46 = vadd.f32 %v5890_v12, %v5889_v8 }
 0x442   : > { %5907 = vmatpush3.bf16.msra.mxu1 %v8290_v4  ;;  %v5892_v9 = vpop.f32.mrf.mxu0 }
 0x443   : > { %v3595_v51 = vpack.c.bf16 %v5891_v46, %v5888_v53  ;;  %5908 = vmatprep.subr.bf16.mxu1 %v8340_v47 }
 0x444   : > { %v5893_v3 = vpop.f32.mrf.mxu0 }
 0x445   : > { %6518 = vmatprep.mubr.msk.bf16.mxu1 %vm3312_vm8, %v3595_v51  ;;  %v5894_v14 = vadd.f32 %v5893_v3, %v5892_v9 }
 0x446   : > { %5909 = vmatpush3.bf16.msra.mxu1 %v8264_v60  ;;  %v5895_v29 = vpop.f32.mrf.mxu0 }
 0x447   : > { %5910 = vmatprep.subr.bf16.mxu1 %v8342_v39 }
 0x448   : > { %v5896_v24 = vpop.f32.mrf.mxu0 }
 0x449   : > { %v5897_v18 = vadd.f32 %v5896_v24, %v5895_v29 }
 0x44a   : > { %5911 = vmatpush3.bf16.msra.mxu1 %v8268_v22 }
 0x44b   : > { %v3596_v20 = vpack.c.bf16 %v5897_v18, %v5894_v14  ;;  %5912 = vmatprep.subr.bf16.mxu1 %v8325_v0 }
 0x44d   : > { %6519 = vmatmul.mubr.msk.bf16.gmra.mxu1 %vm3312_vm8, %v3596_v20 }
 0x44e   : > { %5913 = vmatpush3.bf16.msra.mxu1 %v8238_v30  ;;  %3780 = vmatprep.mubr.bf16.mxu1 %v6677_v55 }
 0x44f   : > { %5914 = vmatprep.subr.bf16.mxu1 %v8329_v6 }
 0x452   : > { %5915 = vmatpush3.bf16.msra.mxu1 %v8242_v28 }
 0x453   : > { %5916 = vmatprep.subr.bf16.mxu1 %v8308_v42 }
 0x456   : > { %5917 = vmatpush3.bf16.msra.mxu1 %v8210_v43 }
 0x457   : > { %5918 = vmatprep.subr.bf16.mxu1 %v8312_v61 }
 0x45a   : > { %5919 = vmatpush3.bf16.msra.mxu1 %v8214_v7 }
 0x45b   : > { %5950 = vmatprep.subr.bf16.mxu1 %v8348_v2 }
 0x45d   : > { %3781 = vmatmul.mubr.bf16.vlgmr.msra.gmra.mxu1 %v6675_v62 }
 0x45e   : > { %5951 = vmatpush3.bf16.msra.mxu1 %v8286_v45  ;;  %3788 = vmatprep.mubr.bf16.mxu1 %v6680_v33 }
 0x45f   : > { %5952 = vmatprep.subr.bf16.mxu1 %v8350_v15 }
 0x462   : > { %5953 = vmatpush3.bf16.msra.mxu1 %v8290_v4 }
 0x463   : > { %5954 = vmatprep.subr.bf16.mxu1 %v8340_v47 }
 0x465   : > { %3789 = vmatmul.mubr.bf16.gmra.mxu1 %v6678_v56 }
 0x466   : > { %5955 = vmatpush3.bf16.msra.mxu1 %v8264_v60  ;;  %3796 = vmatprep.mubr.bf16.mxu1 %v6683_v13  ;;  %v6702_v13 = vld [vmem:[%s8921_s4 + $0x40] sm:$0xff]  }
 0x467   : > { %5956 = vmatprep.subr.bf16.mxu1 %v8342_v39 }
 0x46a   : > { %5957 = vmatpush3.bf16.msra.mxu1 %v8268_v22 }
 0x46b   : > { %5958 = vmatprep.subr.bf16.mxu1 %v8325_v0 }
 0x46d   : > { %3797 = vmatmul.mubr.bf16.gmra.mxu1 %v6681_v26 }
 0x46e   : > { %5959 = vmatpush3.bf16.msra.mxu1 %v8238_v30  ;;  %3804 = vmatprep.mubr.bf16.mxu1 %v6686_v11 }
 0x46f   : > { %5960 = vmatprep.subr.bf16.mxu1 %v8329_v6 }
 0x472   : > { %5961 = vmatpush3.bf16.msra.mxu1 %v8242_v28 }
 0x473   : > { %5962 = vmatprep.subr.bf16.mxu1 %v8308_v42 }
 0x475   : > { %3805 = vmatmul.mubr.bf16.gmra.mxu1 %v6684_v17 }
 0x476   : > { %5963 = vmatpush3.bf16.msra.mxu1 %v8210_v43  ;;  %4000 = vmatprep.mubr.bf16.mxu1 %v6689_v1 }
 0x477   : > { %5964 = vmatprep.subr.bf16.mxu1 %v8312_v61 }
 0x47a   : > { %5965 = vmatpush3.bf16.msra.mxu1 %v8214_v7 }
 0x47d   : > { %4001 = vmatmul.mubr.bf16.vlgmr.msra.gmra.mxu1 %v6687_v35 }
 0x47e   : > { %4008 = vmatprep.mubr.bf16.mxu1 %v6692_v5 }
 0x485   : > { %4009 = vmatmul.mubr.bf16.gmra.mxu1 %v6690_v52 }
 0x486   : > { %4016 = vmatprep.mubr.bf16.mxu1 %v6695_v27 }
 0x48d   : > { %4017 = vmatmul.mubr.bf16.gmra.mxu1 %v6693_v59 }
 0x48e   : > { %4024 = vmatprep.mubr.bf16.mxu1 %v6698_v19 }
 0x495   : > { %4025 = vmatmul.mubr.bf16.gmra.mxu1 %v6696_v58 }
 0x4fd   : > { %v6516_v50 = vpop.f32.mrf.mxu1 }
 0x4fe   : > { %v8599_v63 = vadd.f32 %v6516_v50, %v8490_v41 }
 0x4ff   : > { %v3660_v10 = vpop.f32.mrf.mxu1 }
 0x500   : > { %v8602_v49 = vadd.f32 %v3660_v10, %v8492_v57  ;;  %v3468_v57 = vadd.f32 %v3467_v38, %v8504_v37 }
 0x501   : > { %v6517_v48 = vpop.f32.mrf.mxu1 }
 0x502   : > { %v8605_v40 = vadd.f32 %v6517_v48, %v8494_v36 }
 0x503   : > { %v3663_v21 = vpop.f32.mrf.mxu1 }
 0x504   : > { %v8608_v54 = vadd.f32 %v3663_v21, %v8496_v25 }
 0x50d   : > { %v6520_v8 = vpop.f32.mrf.mxu1 }
 0x50e   : > { %v8611_v53 = vadd.f32 %v6520_v8, %v8498_v44 }
 0x50f   : > { %v3676_v12 = vpop.f32.mrf.mxu1 }
 0x510   : > { %v8614_v41 = vadd.f32 %v3676_v12, %v8500_v34 }
 0x511   : > { %v6521_v46 = vpop.f32.mrf.mxu1 }
 0x512   : > { %v8618_v9 = vadd.f32 %v6521_v46, %v8502_v23 }
 0x513   : > { %v3679_v36 = vpop.f32.mrf.mxu1 }
 0x514   : > { %v8620_v51 = vadd.f32 %v3679_v36, %v3468_v57 }
 0x51d   : > { %v5920_v3 = vpop.f32.mrf.mxu1 }
 0x51f   : > { %v5921_v25 = vpop.f32.mrf.mxu1 }
 0x520   : > { %v5922_v24 = vadd.f32 %v5921_v25, %v5920_v3 }
 0x521   : > { %v5923_v29 = vpop.f32.mrf.mxu1 }
 0x523   : > { %v5924_v14 = vpop.f32.mrf.mxu1 }
 0x524   : > { %v5925_v44 = vadd.f32 %v5924_v14, %v5923_v29 }
 0x525   : > { %v5926_v18 = vpop.f32.mrf.mxu1 }
 0x526   : > { %v3813_v55 = vpack.c.bf16 %v5925_v44, %v5922_v24 }
 0x527   : > { %v5927_v20 = vpop.f32.mrf.mxu1 }
 0x528   : > { %6526 = vmatprep.mubr.msk.bf16.mxu0 %vm3312_vm8, %v3813_v55  ;;  %v5928_v37 = vadd.f32 %v5927_v20, %v5926_v18 }
 0x529   : > { %v5929_v34 = vpop.f32.mrf.mxu1 }
 0x52b   : > { %v5930_v62 = vpop.f32.mrf.mxu1 }
 0x52c   : > { %v5931_v33 = vadd.f32 %v5930_v62, %v5929_v34 }
 0x52d   : > { %v5932_v23 = vpop.f32.mrf.mxu1 }
 0x52e   : > { %v3814_v56 = vpack.c.bf16 %v5931_v33, %v5928_v37 }
 0x52f   : > { %v5933_v26 = vpop.f32.mrf.mxu1 }
 0x530   : > { %6527 = vmatmul.mubr.msk.bf16.vlgmr.msra.gmra.mxu0 %vm3312_vm8, %v3814_v56  ;;  %v5934_v1 = vadd.f32 %v5933_v26, %v5932_v23  ;;  %v6705_v26 = vld [vmem:[%s8918_s1 + $0x144] ss:$8 sps:$4 sm:$0xff]  }
 0x531   : > { %6535 = vmatpush3.bf16.msra.mxu0 %v6701_v31  ;;  %v5935_v11 = vpop.f32.mrf.mxu1 }
 0x532   : > { %6536 = vmatprep.subr.bf16.mxu0 %v6702_v13 }
 0x533   : > { %v5936_v17 = vpop.f32.mrf.mxu1 }
 0x534   : > { %v5937_v35 = vadd.f32 %v5936_v17, %v5935_v11  ;;  %v6703_v17 = vld [vmem:[%s8918_s1 + $0x140] ss:$8 sps:$4 sm:$0xff]  }
 0x535   : > { %6537 = vmatpush3.bf16.msra.mxu0 %v6702_v13  ;;  %v5938_v5 = vpop.f32.mrf.mxu1 }
 0x536   : > { %v3815_v52 = vpack.c.bf16 %v5937_v35, %v5934_v1  ;;  %5996 = vmatprep.subr.bf16.mxu0 %v8348_v2  ;;  %v6708_v1 = vld [vmem:[%s8918_s1 + $0x154] ss:$8 sps:$4 sm:$0xff]   ;;  %v6706_v35 = vld [vmem:[%s8918_s1 + $0x150] ss:$8 sps:$4 sm:$0xff]  }
 0x537   : > { %v5939_v27 = vpop.f32.mrf.mxu1 }
 0x538   : > { %6530 = vmatprep.mubr.msk.bf16.mxu0 %vm3312_vm8, %v3815_v52  ;;  %v5940_v58 = vadd.f32 %v5939_v27, %v5938_v5  ;;  %v6711_v5 = vld [vmem:[%s8918_s1 + $0x164] ss:$8 sps:$4 sm:$0xff]   ;;  %v6709_v52 = vld [vmem:[%s8918_s1 + $0x160] ss:$8 sps:$4 sm:$0xff]   ;;  %v6714_v27 = vld [vmem:[%s8918_s1 + $0x174] ss:$8 sps:$4 sm:$0xff]  }
 0x539   : > { %v5941_v59 = vpop.f32.mrf.mxu1 }
 0x53b   : > { %v5942_v19 = vpop.f32.mrf.mxu1 }
 0x53c   : > { %v5943_v16 = vadd.f32 %v5942_v19, %v5941_v59  ;;  %v6712_v59 = vld [vmem:[%s8918_s1 + $0x170] ss:$8 sps:$4 sm:$0xff]   ;;  %v6717_v19 = vld [vmem:[%s8918_s1 + $0x184] ss:$8 sps:$4 sm:$0xff]  }
 0x53d   : > { %v5966_v32 = vpop.f32.mrf.mxu1 }
 0x53e   : > { %v3816_v38 = vpack.c.bf16 %v5943_v16, %v5940_v58  ;;  %v6715_v58 = vld [vmem:[%s8918_s1 + $0x180] ss:$8 sps:$4 sm:$0xff]   ;;  %v6720_v16 = vld [vmem:[%s8918_s1 + $0x194] ss:$8 sps:$4 sm:$0xff]  }
 0x53f   : > { %v5967_v31 = vpop.f32.mrf.mxu1 }
 0x540   : > { %6531 = vmatmul.mubr.msk.bf16.gmra.mxu0 %vm3312_vm8, %v3816_v38  ;;  %v5968_v48 = vadd.f32 %v5967_v31, %v5966_v32  ;;  %v6718_v32 = vld [vmem:[%s8918_s1 + $0x190] ss:$8 sps:$4 sm:$0xff]   ;;  %v6723_v38 = vld [vmem:[%s8918_s1 + $0x1a4] ss:$8 sps:$4 sm:$0xff]   ;;  %v6721_v31 = vld [vmem:[%s8918_s1 + $0x1a0] ss:$8 sps:$4 sm:$0xff]  }
 0x541   : > { %v5969_v50 = vpop.f32.mrf.mxu1 }
 0x543   : > { %v5970_v10 = vpop.f32.mrf.mxu1 }
 0x544   : > { %v5971_v21 = vadd.f32 %v5970_v10, %v5969_v50  ;;  %v6726_v50 = vld [vmem:[%s8918_s1 + $0x1b4] ss:$8 sps:$4 sm:$0xff]   ;;  %v6724_v10 = vld [vmem:[%s8918_s1 + $0x1b0] ss:$8 sps:$4 sm:$0xff]  }
 0x545   : > { %v5972_v8 = vpop.f32.mrf.mxu1 }
 0x546   : > { %v4033_v12 = vpack.c.bf16 %v5971_v21, %v5968_v48  ;;  %v6727_v48 = vld [vmem:[%s8921_s4 + $0x58] sm:$0xff]   ;;  %v6728_v21 = vld [vmem:[%s8921_s4 + $0x50] sm:$0xff]  }
 0x547   : > { %v5973_v46 = vpop.f32.mrf.mxu1  ;;  %6546 = vmatprep.subr.bf16.mxu1 %v6727_v48 }
 0x548   : > { %6538 = vmatprep.mubr.msk.bf16.mxu0 %vm3312_vm8, %v4033_v12  ;;  %v5974_v3 = vadd.f32 %v5973_v46, %v5972_v8  ;;  %6547 = vmatpush3.bf16.msra.mxu1 %v6727_v48  ;;  %v6729_v8 = vld [vmem:[%s8921_s4 + $0x68] sm:$0xff]  }
 0x549   : > { %v5975_v57 = vpop.f32.mrf.mxu1  ;;  %6548 = vmatprep.subr.bf16.mxu1 %v6728_v21 }
 0x54b   : > { %v5976_v36 = vpop.f32.mrf.mxu1 }
 0x54c   : > { %v5977_v25 = vadd.f32 %v5976_v36, %v5975_v57  ;;  %6549 = vmatpush3.bf16.msra.mxu1 %v6728_v21 }
 0x54d   : > { %v5978_v29 = vpop.f32.mrf.mxu1  ;;  %6558 = vmatprep.subr.bf16.mxu1 %v6729_v8 }
 0x54e   : > { %v4034_v14 = vpack.c.bf16 %v5977_v25, %v5974_v3 }
 0x54f   : > { %v5979_v24 = vpop.f32.mrf.mxu1 }
 0x550   : > { %6539 = vmatmul.mubr.msk.bf16.vlgmr.msra.gmra.mxu0 %vm3312_vm8, %v4034_v14  ;;  %v5980_v18 = vadd.f32 %v5979_v24, %v5978_v29 }
 0x551   : > { %5997 = vmatpush3.bf16.msra.mxu0 %v8286_v45  ;;  %v5981_v44 = vpop.f32.mrf.mxu1 }
 0x552   : > { %5998 = vmatprep.subr.bf16.mxu0 %v8350_v15 }
 0x553   : > { %v5982_v55 = vpop.f32.mrf.mxu1 }
 0x554   : > { %v5983_v20 = vadd.f32 %v5982_v55, %v5981_v44 }
 0x555   : > { %5999 = vmatpush3.bf16.msra.mxu0 %v8290_v4  ;;  %v5984_v34 = vpop.f32.mrf.mxu1 }
 0x556   : > { %v4035_v62 = vpack.c.bf16 %v5983_v20, %v5980_v18  ;;  %6000 = vmatprep.subr.bf16.mxu0 %v8340_v47 }
 0x557   : > { %v5985_v37 = vpop.f32.mrf.mxu1 }
 0x558   : > { %6542 = vmatprep.mubr.msk.bf16.mxu0 %vm3312_vm8, %v4035_v62  ;;  %v5986_v23 = vadd.f32 %v5985_v37, %v5984_v34 }
 0x559   : > { %6001 = vmatpush3.bf16.msra.mxu0 %v8264_v60  ;;  %v5987_v33 = vpop.f32.mrf.mxu1 }
 0x55a   : > { %6002 = vmatprep.subr.bf16.mxu0 %v8342_v39 }
 0x55b   : > { %v5988_v56 = vpop.f32.mrf.mxu1 }
 0x55c   : > { %v5989_v13 = vadd.f32 %v5988_v56, %v5987_v33 }
 0x55d   : > { %6003 = vmatpush3.bf16.msra.mxu0 %v8268_v22 }
 0x55e   : > { %v4036_v11 = vpack.c.bf16 %v5989_v13, %v5986_v23  ;;  %6004 = vmatprep.subr.bf16.mxu0 %v8325_v0 }
 0x560   : > { %6543 = vmatmul.mubr.msk.bf16.gmra.mxu0 %vm3312_vm8, %v4036_v11 }
 0x561   : > { %6005 = vmatpush3.bf16.msra.mxu0 %v8238_v30  ;;  %4220 = vmatprep.mubr.bf16.mxu0 %v6705_v26 }
 0x562   : > { %6006 = vmatprep.subr.bf16.mxu0 %v8329_v6 }
 0x565   : > { %6007 = vmatpush3.bf16.msra.mxu0 %v8242_v28 }
 0x566   : > { %6008 = vmatprep.subr.bf16.mxu0 %v8308_v42 }
 0x569   : > { %6009 = vmatpush3.bf16.msra.mxu0 %v8210_v43 }
 0x56a   : > { %6010 = vmatprep.subr.bf16.mxu0 %v8312_v61 }
 0x56d   : > { %6011 = vmatpush3.bf16.msra.mxu0 %v8214_v7 }
 0x56e   : > { %6042 = vmatprep.subr.bf16.mxu0 %v8348_v2 }
 0x570   : > { %4221 = vmatmul.mubr.bf16.vlgmr.msra.gmra.mxu0 %v6703_v17 }
 0x571   : > { %6043 = vmatpush3.bf16.msra.mxu0 %v8286_v45  ;;  %4228 = vmatprep.mubr.bf16.mxu0 %v6708_v1 }
 0x572   : > { %6044 = vmatprep.subr.bf16.mxu0 %v8350_v15 }
 0x575   : > { %6045 = vmatpush3.bf16.msra.mxu0 %v8290_v4 }
 0x576   : > { %6046 = vmatprep.subr.bf16.mxu0 %v8340_v47 }
 0x578   : > { %4229 = vmatmul.mubr.bf16.gmra.mxu0 %v6706_v35 }
 0x579   : > { %6047 = vmatpush3.bf16.msra.mxu0 %v8264_v60  ;;  %4236 = vmatprep.mubr.bf16.mxu0 %v6711_v5 }
 0x57a   : > { %6048 = vmatprep.subr.bf16.mxu0 %v8342_v39 }
 0x57d   : > { %6049 = vmatpush3.bf16.msra.mxu0 %v8268_v22 }
 0x57e   : > { %6050 = vmatprep.subr.bf16.mxu0 %v8325_v0 }
 0x580   : > { %4237 = vmatmul.mubr.bf16.gmra.mxu0 %v6709_v52 }
 0x581   : > { %6051 = vmatpush3.bf16.msra.mxu0 %v8238_v30  ;;  %4244 = vmatprep.mubr.bf16.mxu0 %v6714_v27 }
 0x582   : > { %6052 = vmatprep.subr.bf16.mxu0 %v8329_v6 }
 0x585   : > { %6053 = vmatpush3.bf16.msra.mxu0 %v8242_v28 }
 0x586   : > { %6054 = vmatprep.subr.bf16.mxu0 %v8308_v42 }
 0x588   : > { %4245 = vmatmul.mubr.bf16.gmra.mxu0 %v6712_v59 }
 0x589   : > { %6055 = vmatpush3.bf16.msra.mxu0 %v8210_v43  ;;  %4440 = vmatprep.mubr.bf16.mxu0 %v6717_v19 }
 0x58a   : > { %6056 = vmatprep.subr.bf16.mxu0 %v8312_v61 }
 0x58d   : > { %6057 = vmatpush3.bf16.msra.mxu0 %v8214_v7 }
 0x590   : > { %4441 = vmatmul.mubr.bf16.vlgmr.msra.gmra.mxu0 %v6715_v58 }
 0x591   : > { %4448 = vmatprep.mubr.bf16.mxu0 %v6720_v16 }
 0x598   : > { %4449 = vmatmul.mubr.bf16.gmra.mxu0 %v6718_v32 }
 0x599   : > { %4456 = vmatprep.mubr.bf16.mxu0 %v6723_v38 }
 0x5a0   : > { %4457 = vmatmul.mubr.bf16.gmra.mxu0 %v6721_v31 }
 0x5a1   : > { %4464 = vmatprep.mubr.bf16.mxu0 %v6726_v50 }
 0x5a8   : > { %4465 = vmatmul.mubr.bf16.gmra.mxu0 %v6724_v10 }
 0x5f0   : > { %v6528_v12 = vpop.f32.mrf.mxu0 }
 0x5f1   : > { %v3913_v46 = vadd.f32 %v6528_v12, %v8599_v63  ;;  %v6730_v12 = vld [vmem:[%s8921_s4 + $0x60] sm:$0xff]  }
 0x5f2   : > { %v3880_v57 = vpop.f32.mrf.mxu0 }
 0x5f3   : > { %v3911_v36 = vadd.f32 %v3880_v57, %v8602_v49 }
 0x5f4   : > { %v6529_v3 = vpop.f32.mrf.mxu0 }
 0x5f5   : > { %v3914_v25 = vadd.f32 %v6529_v3, %v8605_v40 }
 0x5f6   : > { %v3883_v29 = vpop.f32.mrf.mxu0 }
 0x5f7   : > { %v3912_v14 = vadd.f32 %v3883_v29, %v8608_v54 }
 0x600   : > { %v6532_v24 = vpop.f32.mrf.mxu0 }
 0x601   : > { %v3917_v44 = vadd.f32 %v6532_v24, %v8611_v53 }
 0x602   : > { %v3896_v18 = vpop.f32.mrf.mxu0 }
 0x603   : > { %v3915_v55 = vadd.f32 %v3896_v18, %v8614_v41 }
 0x604   : > { %v6533_v20 = vpop.f32.mrf.mxu0 }
 0x605   : > { %v3918_v34 = vadd.f32 %v6533_v20, %v8618_v9 }
 0x606   : > { %v3899_v62 = vpop.f32.mrf.mxu0 }
 0x607   : > { %v3916_v63 = vadd.f32 %v3899_v62, %v8620_v51 }
 0x610   : > { %v6540_v37 = vpop.f32.mrf.mxu0 }
 0x611   : > { %v8730_v49 = vadd.f32 %v6540_v37, %v3913_v46 }
 0x612   : > { %v4100_v33 = vpop.f32.mrf.mxu0 }
 0x613   : > { %v8732_v40 = vadd.f32 %v4100_v33, %v3911_v36 }
 0x614   : > { %v6541_v23 = vpop.f32.mrf.mxu0 }
 0x615   : > { %v8734_v54 = vadd.f32 %v6541_v23, %v3914_v25 }
 0x616   : > { %v4103_v56 = vpop.f32.mrf.mxu0 }
 0x617   : > { %v8736_v53 = vadd.f32 %v4103_v56, %v3912_v14 }
 0x620   : > { %v6544_v13 = vpop.f32.mrf.mxu0 }
 0x621   : > { %v8738_v41 = vadd.f32 %v6544_v13, %v3917_v44 }
 0x622   : > { %v4116_v26 = vpop.f32.mrf.mxu0 }
 0x623   : > { %v8740_v9 = vadd.f32 %v4116_v26, %v3915_v55 }
 0x624   : > { %v6545_v11 = vpop.f32.mrf.mxu0 }
 0x625   : > { %v8742_v51 = vadd.f32 %v6545_v11, %v3918_v34 }
 0x626   : > { %v4119_v17 = vpop.f32.mrf.mxu0 }
 0x627   : > { %v8744_v1 = vadd.f32 %v4119_v17, %v3916_v63 }
 0x630   : > { %v6012_v35 = vpop.f32.mrf.mxu0 }
 0x632   : > { %v6013_v5 = vpop.f32.mrf.mxu0 }
 0x633   : > { %v6014_v59 = vadd.f32 %v6013_v5, %v6012_v35 }
 0x634   : > { %v6015_v52 = vpop.f32.mrf.mxu0 }
 0x636   : > { %v6016_v27 = vpop.f32.mrf.mxu0 }
 0x637   : > { %v6017_v19 = vadd.f32 %v6016_v27, %v6015_v52 }
 0x638   : > { %v6018_v58 = vpop.f32.mrf.mxu0 }
 0x639   : > { %v4253_v16 = vpack.c.bf16 %v6017_v19, %v6014_v59 }
 0x63a   : > { %v6019_v32 = vpop.f32.mrf.mxu0 }
 0x63b   : > { %6550 = vmatprep.mubr.msk.bf16.mxu1 %vm3312_vm8, %v4253_v16  ;;  %v6020_v50 = vadd.f32 %v6019_v32, %v6018_v58 }
 0x63c   : > { %v6021_v38 = vpop.f32.mrf.mxu0 }
 0x63e   : > { %v6022_v31 = vpop.f32.mrf.mxu0 }
 0x63f   : > { %v6023_v10 = vadd.f32 %v6022_v31, %v6021_v38 }
 0x640   : > { %v6024_v48 = vpop.f32.mrf.mxu0 }
 0x641   : > { %v4254_v21 = vpack.c.bf16 %v6023_v10, %v6020_v50 }
 0x642   : > { %v6025_v46 = vpop.f32.mrf.mxu0 }
 0x643   : > { %6551 = vmatmul.mubr.msk.bf16.vlgmr.msra.gmra.mxu1 %vm3312_vm8, %v4254_v21  ;;  %v6026_v3 = vadd.f32 %v6025_v46, %v6024_v48  ;;  %v6733_v46 = vld [vmem:[%s8918_s1 + $0x1c4] ss:$8 sps:$4 sm:$0xff]  }
 0x644   : > { %6559 = vmatpush3.bf16.msra.mxu1 %v6729_v8  ;;  %v6027_v57 = vpop.f32.mrf.mxu0 }
 0x645   : > { %6560 = vmatprep.subr.bf16.mxu1 %v6730_v12 }
 0x646   : > { %v6028_v36 = vpop.f32.mrf.mxu0 }
 0x647   : > { %v6029_v25 = vadd.f32 %v6028_v36, %v6027_v57  ;;  %v6731_v36 = vld [vmem:[%s8918_s1 + $0x1c0] ss:$8 sps:$4 sm:$0xff]  }
 0x648   : > { %6561 = vmatpush3.bf16.msra.mxu1 %v6730_v12  ;;  %v6030_v29 = vpop.f32.mrf.mxu0 }
 0x649   : > { %v4255_v14 = vpack.c.bf16 %v6029_v25, %v6026_v3  ;;  %6088 = vmatprep.subr.bf16.mxu1 %v8348_v2  ;;  %v6736_v3 = vld [vmem:[%s8918_s1 + $0x1d4] ss:$8 sps:$4 sm:$0xff]   ;;  %v6734_v25 = vld [vmem:[%s8918_s1 + $0x1d0] ss:$8 sps:$4 sm:$0xff]  }
 0x64a   : > { %v6031_v24 = vpop.f32.mrf.mxu0 }
 0x64b   : > { %6554 = vmatprep.mubr.msk.bf16.mxu1 %vm3312_vm8, %v4255_v14  ;;  %v6032_v55 = vadd.f32 %v6031_v24, %v6030_v29  ;;  %v6739_v29 = vld [vmem:[%s8918_s1 + $0x1e4] ss:$8 sps:$4 sm:$0xff]  }
 0x64c   : > { %v6033_v44 = vpop.f32.mrf.mxu0 }
 0x64e   : > { %v6034_v18 = vpop.f32.mrf.mxu0 }
 0x64f   : > { %v6035_v20 = vadd.f32 %v6034_v18, %v6033_v44 }
 0x650   : > { %v6058_v34 = vpop.f32.mrf.mxu0 }
 0x651   : > { %v4256_v62 = vpack.c.bf16 %v6035_v20, %v6032_v55 }
 0x652   : > { %v6059_v8 = vpop.f32.mrf.mxu0 }
 0x653   : > { %6555 = vmatmul.mubr.msk.bf16.gmra.mxu1 %vm3312_vm8, %v4256_v62  ;;  %v6060_v33 = vadd.f32 %v6059_v8, %v6058_v34 }
 0x654   : > { %v6061_v63 = vpop.f32.mrf.mxu0 }
 0x656   : > { %v6062_v37 = vpop.f32.mrf.mxu0 }
 0x657   : > { %v6063_v23 = vadd.f32 %v6062_v37, %v6061_v63 }
 0x658   : > { %v6064_v56 = vpop.f32.mrf.mxu0 }
 0x659   : > { %v4473_v13 = vpack.c.bf16 %v6063_v23, %v6060_v33 }
 0x65a   : > { %v6065_v26 = vpop.f32.mrf.mxu0 }
 0x65b   : > { %6562 = vmatprep.mubr.msk.bf16.mxu1 %vm3312_vm8, %v4473_v13  ;;  %v6066_v35 = vadd.f32 %v6065_v26, %v6064_v56 }
 0x65c   : > { %v6067_v11 = vpop.f32.mrf.mxu0 }
 0x65e   : > { %v6068_v17 = vpop.f32.mrf.mxu0 }
 0x65f   : > { %v6069_v5 = vadd.f32 %v6068_v17, %v6067_v11 }
 0x660   : > { %v6070_v52 = vpop.f32.mrf.mxu0 }
 0x661   : > { %v4474_v27 = vpack.c.bf16 %v6069_v5, %v6066_v35 }
 0x662   : > { %v6071_v59 = vpop.f32.mrf.mxu0 }
 0x663   : > { %6563 = vmatmul.mubr.msk.bf16.vlgmr.msra.gmra.mxu1 %vm3312_vm8, %v4474_v27  ;;  %v6072_v58 = vadd.f32 %v6071_v59, %v6070_v52 }
 0x664   : > { %6089 = vmatpush3.bf16.msra.mxu1 %v8286_v45  ;;  %v6073_v19 = vpop.f32.mrf.mxu0 }
 0x665   : > { %6090 = vmatprep.subr.bf16.mxu1 %v8350_v15 }
 0x666   : > { %v6074_v16 = vpop.f32.mrf.mxu0 }
 0x667   : > { %v6075_v32 = vadd.f32 %v6074_v16, %v6073_v19 }
 0x668   : > { %6091 = vmatpush3.bf16.msra.mxu1 %v8290_v4  ;;  %v6076_v38 = vpop.f32.mrf.mxu0 }
 0x669   : > { %v4475_v31 = vpack.c.bf16 %v6075_v32, %v6072_v58  ;;  %6092 = vmatprep.subr.bf16.mxu1 %v8340_v47 }
 0x66a   : > { %v6077_v50 = vpop.f32.mrf.mxu0 }
 0x66b   : > { %6566 = vmatprep.mubr.msk.bf16.mxu1 %vm3312_vm8, %v4475_v31  ;;  %v6078_v48 = vadd.f32 %v6077_v50, %v6076_v38 }
 0x66c   : > { %6093 = vmatpush3.bf16.msra.mxu1 %v8264_v60  ;;  %v6079_v10 = vpop.f32.mrf.mxu0 }
 0x66d   : > { %6094 = vmatprep.subr.bf16.mxu1 %v8342_v39 }
 0x66e   : > { %v6080_v21 = vpop.f32.mrf.mxu0 }
 0x66f   : > { %v6081_v12 = vadd.f32 %v6080_v21, %v6079_v10 }
 0x670   : > { %6095 = vmatpush3.bf16.msra.mxu1 %v8268_v22 }
 0x671   : > { %v4476_v57 = vpack.c.bf16 %v6081_v12, %v6078_v48  ;;  %6096 = vmatprep.subr.bf16.mxu1 %v8325_v0 }
 0x673   : > { %6567 = vmatmul.mubr.msk.bf16.gmra.mxu1 %vm3312_vm8, %v4476_v57 }
 0x674   : > { %6097 = vmatpush3.bf16.msra.mxu1 %v8238_v30  ;;  %4660 = vmatprep.mubr.bf16.mxu1 %v6733_v46 }
 0x675   : > { %6098 = vmatprep.subr.bf16.mxu1 %v8329_v6 }
 0x678   : > { %6099 = vmatpush3.bf16.msra.mxu1 %v8242_v28 }
 0x679   : > { %6100 = vmatprep.subr.bf16.mxu1 %v8308_v42 }
 0x67c   : > { %6101 = vmatpush3.bf16.msra.mxu1 %v8210_v43 }
 0x67d   : > { %6102 = vmatprep.subr.bf16.mxu1 %v8312_v61 }
 0x680   : > { %6103 = vmatpush3.bf16.msra.mxu1 %v8214_v7 }
 0x681   : > { %6134 = vmatprep.subr.bf16.mxu1 %v8348_v2 }
 0x683   : > { %4661 = vmatmul.mubr.bf16.vlgmr.msra.gmra.mxu1 %v6731_v36 }
 0x684   : > { %6135 = vmatpush3.bf16.msra.mxu1 %v8286_v45  ;;  %4668 = vmatprep.mubr.bf16.mxu1 %v6736_v3  ;;  %v6737_v45 = vld [vmem:[%s8918_s1 + $0x1e0] ss:$8 sps:$4 sm:$0xff]  }
 0x685   : > { %6136 = vmatprep.subr.bf16.mxu1 %v8350_v15  ;;  %v6758_v3 = vld [vmem:[%s8921_s4 + $0x80] sm:$0xff]  }
 0x688   : > { %6137 = vmatpush3.bf16.msra.mxu1 %v8290_v4  ;;  %v6742_v4 = vld [vmem:[%s8918_s1 + $0x1f4] ss:$8 sps:$4 sm:$0xff]  }
 0x689   : > { %6138 = vmatprep.subr.bf16.mxu1 %v8340_v47  ;;  %v6756_v47 = vld [vmem:[%s8921_s4 + $0x70] sm:$0xff]  }
 0x68b   : > { %4669 = vmatmul.mubr.bf16.gmra.mxu1 %v6734_v25 }
 0x68c   : > { %6139 = vmatpush3.bf16.msra.mxu1 %v8264_v60  ;;  %4676 = vmatprep.mubr.bf16.mxu1 %v6739_v29  ;;  %v6740_v60 = vld [vmem:[%s8918_s1 + $0x1f0] ss:$8 sps:$4 sm:$0xff]  }
 0x68d   : > { %6140 = vmatprep.subr.bf16.mxu1 %v8342_v39  ;;  %v6757_v39 = vld [vmem:[%s8921_s4 + $0x88] sm:$0xff]  }
 0x690   : > { %6141 = vmatpush3.bf16.msra.mxu1 %v8268_v22  ;;  %v6745_v22 = vld [vmem:[%s8918_s1 + $0x204] ss:$8 sps:$4 sm:$0xff]  }
 0x691   : > { %6142 = vmatprep.subr.bf16.mxu1 %v8325_v0  ;;  %v6752_v0 = vld [vmem:[%s8918_s1 + $0x230] ss:$8 sps:$4 sm:$0xff]  }
 0x693   : > { %4677 = vmatmul.mubr.bf16.gmra.mxu1 %v6737_v45 }
 0x694   : > { %6143 = vmatpush3.bf16.msra.mxu1 %v8238_v30  ;;  %4684 = vmatprep.mubr.bf16.mxu1 %v6742_v4  ;;  %v6743_v30 = vld [vmem:[%s8918_s1 + $0x200] ss:$8 sps:$4 sm:$0xff]  }
 0x695   : > { %6144 = vmatprep.subr.bf16.mxu1 %v8329_v6  ;;  %v6755_v6 = vld [vmem:[%s8921_s4 + $0x78] sm:$0xff]  }
 0x696   : > { %6570 = vmatprep.subr.bf16.mxu0 %v6755_v6 }
 0x697   : > { %6571 = vmatpush3.bf16.msra.mxu0 %v6755_v6 }
 0x698   : > { %6145 = vmatpush3.bf16.msra.mxu1 %v8242_v28  ;;  %v6748_v28 = vld [vmem:[%s8918_s1 + $0x214] ss:$8 sps:$4 sm:$0xff]   ;;  %6572 = vmatprep.subr.bf16.mxu0 %v6756_v47 }
 0x699   : > { %6146 = vmatprep.subr.bf16.mxu1 %v8308_v42  ;;  %v6746_v42 = vld [vmem:[%s8918_s1 + $0x210] ss:$8 sps:$4 sm:$0xff]  }
 0x69b   : > { %4685 = vmatmul.mubr.bf16.gmra.mxu1 %v6740_v60  ;;  %6573 = vmatpush3.bf16.msra.mxu0 %v6756_v47 }
 0x69c   : > { %6147 = vmatpush3.bf16.msra.mxu1 %v8210_v43  ;;  %4880 = vmatprep.mubr.bf16.mxu1 %v6745_v22  ;;  %v6751_v43 = vld [vmem:[%s8918_s1 + $0x224] ss:$8 sps:$4 sm:$0xff]  }
 0x69d   : > { %6148 = vmatprep.subr.bf16.mxu1 %v8312_v61  ;;  %v6754_v61 = vld [vmem:[%s8918_s1 + $0x234] ss:$8 sps:$4 sm:$0xff]   ;;  %6582 = vmatprep.subr.bf16.mxu0 %v6757_v39 }
 0x6a0   : > { %6149 = vmatpush3.bf16.msra.mxu1 %v8214_v7  ;;  %v6749_v7 = vld [vmem:[%s8918_s1 + $0x220] ss:$8 sps:$4 sm:$0xff]  }
 0x6a3   : > { %4881 = vmatmul.mubr.bf16.vlgmr.msra.gmra.mxu1 %v6743_v30 }
 0x6a4   : > { %4888 = vmatprep.mubr.bf16.mxu1 %v6748_v28 }
 0x6ab   : > { %4889 = vmatmul.mubr.bf16.gmra.mxu1 %v6746_v42 }
 0x6ac   : > { %4896 = vmatprep.mubr.bf16.mxu1 %v6751_v43 }
 0x6b3   : > { %4897 = vmatmul.mubr.bf16.gmra.mxu1 %v6749_v7 }
 0x6b4   : > { %4904 = vmatprep.mubr.bf16.mxu1 %v6754_v61 }
 0x6bb   : > { %4905 = vmatmul.mubr.bf16.gmra.mxu1 %v6752_v0 }
 0x703   : > { %v6552_v2 = vpop.f32.mrf.mxu1 }
 0x704   : > { %v4353_v15 = vadd.f32 %v6552_v2, %v8730_v49 }
 0x705   : > { %v4320_v14 = vpop.f32.mrf.mxu1 }
 0x706   : > { %v4351_v24 = vadd.f32 %v4320_v14, %v8732_v40 }
 0x707   : > { %v6553_v44 = vpop.f32.mrf.mxu1 }
 0x708   : > { %v4354_v18 = vadd.f32 %v6553_v44, %v8734_v54 }
 0x709   : > { %v4323_v55 = vpop.f32.mrf.mxu1 }
 0x70a   : > { %v4352_v20 = vadd.f32 %v4323_v55, %v8736_v53 }
 0x713   : > { %v6556_v34 = vpop.f32.mrf.mxu1 }
 0x714   : > { %v4357_v62 = vadd.f32 %v6556_v34, %v8738_v41 }
 0x715   : > { %v4336_v8 = vpop.f32.mrf.mxu1 }
 0x716   : > { %v4355_v63 = vadd.f32 %v4336_v8, %v8740_v9 }
 0x717   : > { %v6557_v37 = vpop.f32.mrf.mxu1 }
 0x718   : > { %v4358_v33 = vadd.f32 %v6557_v37, %v8742_v51 }
 0x719   : > { %v4339_v23 = vpop.f32.mrf.mxu1 }
 0x71a   : > { %v4356_v49 = vadd.f32 %v4339_v23, %v8744_v1 }
 0x723   : > { %v6564_v56 = vpop.f32.mrf.mxu1 }
 0x724   : > { %v8854_v40 = vadd.f32 %v6564_v56, %v4353_v15 }
 0x725   : > { %v4540_v13 = vpop.f32.mrf.mxu1 }
 0x726   : > { %v8856_v54 = vadd.f32 %v4540_v13, %v4351_v24 }
 0x727   : > { %v6565_v26 = vpop.f32.mrf.mxu1 }
 0x728   : > { %v8858_v53 = vadd.f32 %v6565_v26, %v4354_v18 }
 0x729   : > { %v4543_v11 = vpop.f32.mrf.mxu1 }
 0x72a   : > { %v8860_v41 = vadd.f32 %v4543_v11, %v4352_v20 }
 0x733   : > { %v6568_v17 = vpop.f32.mrf.mxu1 }
 0x734   : > { %v8862_v9 = vadd.f32 %v6568_v17, %v4357_v62 }
 0x735   : > { %v4556_v35 = vpop.f32.mrf.mxu1 }
 0x736   : > { %v8864_v51 = vadd.f32 %v4556_v35, %v4355_v63 }
 0x737   : > { %v6569_v5 = vpop.f32.mrf.mxu1 }
 0x738   : > { %v8866_v1 = vadd.f32 %v6569_v5, %v4358_v33 }
 0x739   : > { %v4559_v52 = vpop.f32.mrf.mxu1 }
 0x73a   : > { %v8868_v27 = vadd.f32 %v4559_v52, %v4356_v49 }
 0x743   : > { %v6104_v59 = vpop.f32.mrf.mxu1 }
 0x745   : > { %v6105_v19 = vpop.f32.mrf.mxu1 }
 0x746   : > { %v6106_v32 = vadd.f32 %v6105_v19, %v6104_v59 }
 0x747   : > { %v6107_v58 = vpop.f32.mrf.mxu1 }
 0x749   : > { %v6108_v16 = vpop.f32.mrf.mxu1 }
 0x74a   : > { %v6109_v38 = vadd.f32 %v6108_v16, %v6107_v58 }
 0x74b   : > { %v6110_v31 = vpop.f32.mrf.mxu1 }
 0x74c   : > { %v4693_v50 = vpack.c.bf16 %v6109_v38, %v6106_v32 }
 0x74d   : > { %v6111_v10 = vpop.f32.mrf.mxu1 }
 0x74e   : > { %6574 = vmatprep.mubr.msk.bf16.mxu0 %vm3312_vm8, %v4693_v50  ;;  %v6112_v12 = vadd.f32 %v6111_v10, %v6110_v31 }
 0x74f   : > { %v6113_v48 = vpop.f32.mrf.mxu1 }
 0x751   : > { %v6114_v21 = vpop.f32.mrf.mxu1 }
 0x752   : > { %v6115_v46 = vadd.f32 %v6114_v21, %v6113_v48 }
 0x753   : > { %v6116_v57 = vpop.f32.mrf.mxu1 }
 0x754   : > { %v4694_v36 = vpack.c.bf16 %v6115_v46, %v6112_v12  ;;  %v5594_v12 = vld [vmem:[%s8922_s5] ss:$0 sm:$0xff] }
 0x755   : > { %v6117_v25 = vpop.f32.mrf.mxu1 }
 0x756   : > { %6575 = vmatmul.mubr.msk.bf16.vlgmr.msra.gmra.mxu0 %vm3312_vm8, %v4694_v36  ;;  %v6118_v4 = vadd.f32 %v6117_v25, %v6116_v57 }
 0x757   : > { %v6119_v29 = vpop.f32.mrf.mxu1  ;;  %6583 = vmatpush3.bf16.msra.mxu0 %v6757_v39 }
 0x758   : > { %6584 = vmatprep.subr.bf16.mxu0 %v6758_v3 }
 0x759   : > { %v6120_v45 = vpop.f32.mrf.mxu1 }
 0x75a   : > { %v6121_v60 = vadd.f32 %v6120_v45, %v6119_v29 }
 0x75b   : > { %v6122_v22 = vpop.f32.mrf.mxu1  ;;  %6585 = vmatpush3.bf16.msra.mxu0 %v6758_v3 }
 0x75c   : > { %v4695_v30 = vpack.c.bf16 %v6121_v60, %v6118_v4 }
 0x75d   : > { %v6123_v28 = vpop.f32.mrf.mxu1 }
 0x75e   : > { %6578 = vmatprep.mubr.msk.bf16.mxu0 %vm3312_vm8, %v4695_v30  ;;  %v6124_v7 = vadd.f32 %v6123_v28, %v6122_v22 }
 0x75f   : > { %v6125_v42 = vpop.f32.mrf.mxu1 }
 0x761   : > { %v6126_v43 = vpop.f32.mrf.mxu1 }
 0x762   : > { %v6127_v61 = vadd.f32 %v6126_v43, %v6125_v42 }
 0x763   : > { %v6150_v0 = vpop.f32.mrf.mxu1 }
 0x764   : > { %v4696_v6 = vpack.c.bf16 %v6127_v61, %v6124_v7 }
 0x765   : > { %v6151_v47 = vpop.f32.mrf.mxu1 }
 0x766   : > { %6579 = vmatmul.mubr.msk.bf16.gmra.mxu0 %vm3312_vm8, %v4696_v6  ;;  %v6152_v15 = vadd.f32 %v6151_v47, %v6150_v0 }
 0x767   : > { %v6153_v39 = vpop.f32.mrf.mxu1 }
 0x769   : > { %v6154_v2 = vpop.f32.mrf.mxu1 }
 0x76a   : > { %v6155_v14 = vadd.f32 %v6154_v2, %v6153_v39 }
 0x76b   : > { %v6156_v24 = vpop.f32.mrf.mxu1 }
 0x76c   : > { %v4913_v44 = vpack.c.bf16 %v6155_v14, %v6152_v15 }
 0x76d   : > { %v6157_v18 = vpop.f32.mrf.mxu1 }
 0x76e   : > { %6586 = vmatprep.mubr.msk.bf16.mxu0 %vm3312_vm8, %v4913_v44  ;;  %v6158_v34 = vadd.f32 %v6157_v18, %v6156_v24 }
 0x76f   : > { %v6159_v55 = vpop.f32.mrf.mxu1 }
 0x771   : > { %v6160_v20 = vpop.f32.mrf.mxu1 }
 0x772   : > { %v6161_v62 = vadd.f32 %v6160_v20, %v6159_v55 }
 0x773   : > { %v6162_v8 = vpop.f32.mrf.mxu1 }
 0x774   : > { %v4914_v63 = vpack.c.bf16 %v6161_v62, %v6158_v34 }
 0x775   : > { %v6163_v37 = vpop.f32.mrf.mxu1 }
 0x776   : > { %6587 = vmatmul.mubr.msk.bf16.vlgmr.msra.gmra.mxu0 %vm3312_vm8, %v4914_v63  ;;  %v6164_v49 = vadd.f32 %v6163_v37, %v6162_v8 }
 0x777   : > { %v6165_v33 = vpop.f32.mrf.mxu1 }
 0x779   : > { %v6166_v23 = vpop.f32.mrf.mxu1 }
 0x77a   : > { %v6167_v56 = vadd.f32 %v6166_v23, %v6165_v33 }
 0x77b   : > { %v6168_v13 = vpop.f32.mrf.mxu1 }
 0x77c   : > { %v4915_v26 = vpack.c.bf16 %v6167_v56, %v6164_v49 }
 0x77d   : > { %v6169_v11 = vpop.f32.mrf.mxu1 }
 0x77e   : > { %6590 = vmatprep.mubr.msk.bf16.mxu0 %vm3312_vm8, %v4915_v26  ;;  %v6170_v5 = vadd.f32 %v6169_v11, %v6168_v13 }
 0x77f   : > { %v6171_v17 = vpop.f32.mrf.mxu1 }
 0x781   : > { %v6172_v35 = vpop.f32.mrf.mxu1 }
 0x782   : > { %v6173_v52 = vadd.f32 %v6172_v35, %v6171_v17 }
 0x784   : > { %v4916_v59 = vpack.c.bf16 %v6173_v52, %v6170_v5 }
 0x786   : > { %6591 = vmatmul.mubr.msk.bf16.gmra.mxu0 %vm3312_vm8, %v4916_v59 }
 0x816   : > { %v6576_v19 = vpop.f32.mrf.mxu0 }
 0x817   : > { %v4793_v48 = vadd.f32 %v6576_v19, %v8854_v40 }
 0x818   : > { %v4760_v58 = vpop.f32.mrf.mxu0 }
 0x819   : > { %v4791_v46 = vadd.f32 %v4760_v58, %v8856_v54 }
 0x81a   : > { %v6577_v16 = vpop.f32.mrf.mxu0 }
 0x81b   : > { %v4794_v3 = vadd.f32 %v6577_v16, %v8858_v53 }
 0x81c   : > { %v4763_v32 = vpop.f32.mrf.mxu0 }
 0x81d   : > { %v4792_v4 = vadd.f32 %v4763_v32, %v8860_v41 }
 0x826   : > { %v6580_v38 = vpop.f32.mrf.mxu0 }
 0x827   : > { %v4797_v47 = vadd.f32 %v6580_v38, %v8862_v9 }
 0x828   : > { %v4776_v31 = vpop.f32.mrf.mxu0 }
 0x829   : > { %v4795_v2 = vadd.f32 %v4776_v31, %v8864_v51 }
 0x82a   : > { %v6581_v50 = vpop.f32.mrf.mxu0 }
 0x82b   : > { %v4798_v24 = vadd.f32 %v6581_v50, %v8866_v1 }
 0x82c   : > { %v4779_v10 = vpop.f32.mrf.mxu0 }
 0x82d   : > { %v4796_v20 = vadd.f32 %v4779_v10, %v8868_v27 }
 0x836   : > { %v6588_v21 = vpop.f32.mrf.mxu0 }
 0x837   : > { %v5013_v57 = vadd.f32 %v6588_v21, %v4793_v48 }
 0x838   : > { %v4980_v36 = vpop.f32.mrf.mxu0 }
 0x839   : > { %v5028_v25 = vadd.f32 %v5594_v12, %v5013_v57  ;;  %v5011_v29 = vadd.f32 %v4980_v36, %v4791_v46 }
 0x83a   : > { %v6589_v45 = vpop.f32.mrf.mxu0 }
 0x83b   : > { %v5036_v60 = vmax.f32 %v5028_v25, 0.0  ;;  %v5026_v40 = vadd.f32 %v5594_v12, %v5011_v29  ;;  %v5014_v22 = vadd.f32 %v6589_v45, %v4794_v3 }
 0x83c   : > { %v4983_v54 = vpop.f32.mrf.mxu0 }
 0x83d   : > { %v5607_v53 = vpack.c.bf16 %v5036_v60, %v5036_v60  ;;  %v5034_v30 = vmax.f32 %v5026_v40, 0.0  ;;  %v5029_v28 = vadd.f32 %v5594_v12, %v5014_v22  ;;  %v5012_v42 = vadd.f32 %v4983_v54, %v4792_v4 }
 0x83f   : > { %5077 = vst.msk [vmem:[%s8892_s11 + $0x8] sm:$0xf] %vm5074_vm9, %v5607_v53  ;;  %v5605_v41 = vpack.c.bf16 %v5034_v30, %v5034_v30  ;;  %v5037_v43 = vmax.f32 %v5029_v28, 0.0  ;;  %v5027_v7 = vadd.f32 %v5594_v12, %v5012_v42 }
 0x841   : > { %5075 = vst.msk [vmem:[%s8892_s11] sm:$0xf] %vm5074_vm9, %v5605_v41  ;;  %v5608_v61 = vpack.c.bf16 %v5037_v43, %v5037_v43  ;;  %v5035_v0 = vmax.f32 %v5027_v7, 0.0 }
 0x843   : > { %5078 = vst.msk [vmem:[%s8892_s11 + $0xc] sm:$0xf] %vm5074_vm9, %v5608_v61  ;;  %v5606_v6 = vpack.c.bf16 %v5035_v0, %v5035_v0 }
 0x845   : > { %5076 = vst.msk [vmem:[%s8892_s11 + $0x4] sm:$0xf] %vm5074_vm9, %v5606_v6 }
 0x846   : > { %v6592_v39 = vpop.f32.mrf.mxu0 }
 0x847   : > { %v5017_v15 = vadd.f32 %v6592_v39, %v4797_v47 }
 0x848   : > { %v4996_v14 = vpop.f32.mrf.mxu0 }
 0x849   : > { %v5032_v44 = vadd.f32 %v5594_v12, %v5017_v15  ;;  %v5015_v18 = vadd.f32 %v4996_v14, %v4795_v2 }
 0x84a   : > { %v6593_v55 = vpop.f32.mrf.mxu0 }
 0x84b   : > { %v5040_v34 = vmax.f32 %v5032_v44, 0.0  ;;  %v5030_v62 = vadd.f32 %v5594_v12, %v5015_v18  ;;  %v5018_v9 = vadd.f32 %v6593_v55, %v4798_v24 }
 0x84c   : > { %v4999_v8 = vpop.f32.mrf.mxu0 }
 0x84d   : > { %v5611_v63 = vpack.c.bf16 %v5040_v34, %v5040_v34  ;;  %v5038_v37 = vmax.f32 %v5030_v62, 0.0  ;;  %v5033_v51 = vadd.f32 %v5594_v12, %v5018_v9  ;;  %v5016_v33 = vadd.f32 %v4999_v8, %v4796_v20 }
 0x84f   : > { %5081 = vst.msk [vmem:[%s8892_s11 + $0x18] sm:$0xf] %vm5074_vm9, %v5611_v63  ;;  %v5609_v23 = vpack.c.bf16 %v5038_v37, %v5038_v37  ;;  %v5041_v1 = vmax.f32 %v5033_v51, 0.0  ;;  %v5031_v49 = vadd.f32 %v5594_v12, %v5016_v33 }
 0x851   : > { %5079 = vst.msk [vmem:[%s8892_s11 + $0x10] sm:$0xf] %vm5074_vm9, %v5609_v23  ;;  %v5612_v56 = vpack.c.bf16 %v5041_v1, %v5041_v1  ;;  %v5039_v13 = vmax.f32 %v5031_v49, 0.0 }
 0x853   : > { %5082 = vst.msk [vmem:[%s8892_s11 + $0x1c] sm:$0xf] %vm5074_vm9, %v5612_v56  ;;  %v5610_v27 = vpack.c.bf16 %v5039_v13, %v5039_v13 }
 0x855   : > { %5080 = vst.msk [vmem:[%s8892_s11 + $0x14] sm:$0xf] %vm5074_vm9, %v5610_v27 }
 0x856 PF: > { %s16_s21 = sadd.s32 1, %s6765_s21  }
 0x857   : > { %p13_p5 = scmp.ge.s32.totalorder %s16_s21, 4  }
 0x859   :  { %15 = sbr.rel (!%p13_p5) target bundleno = 1 (0x1), region = 98 }

</bundles_post_ra>
